<compile_context>
chip_gen: v6e
topology: v6e:2x2x1
jax: 0.10.0
libtpu: 0.0.40
codegen_flags: <defaults>
</compile_context>

<pallas_src>
import math

import jax
import jax.numpy as jnp
from jax.experimental import pallas as pl
from jax.experimental.pallas import tpu as pltpu

EPS = 1e-5  # PyTorch nn.LayerNorm default eps


def _vmem_limit_bytes():
    """Generation-aware scoped-VMEM limit: ~3/4 of physical VMEM, capped."""
    cap = None
    try:
        cap = getattr(pltpu.get_tpu_info(), "vmem_capacity_bytes", None)
    except Exception:
        cap = None
    if not cap:
        return 32 * 1024 * 1024  # conservative default, safe on every gen
    return int(min(cap * 3 // 4, 100 * 1024 * 1024))


def _is_bf16(dtype):
    return jnp.dtype(dtype) == jnp.dtype(jnp.bfloat16)


def _full_spec(shape):
    """Grid-invariant (weight) block: constant index_map -> fetched once."""
    return pl.BlockSpec(shape, lambda i: (0,) * len(shape))


def _ln(x, g, b):
    """LayerNorm over last axis (torch.nn.LayerNorm semantics), f32 stats."""
    xf = x.astype(jnp.float32)
    mu = jnp.mean(xf, axis=-1, keepdims=True)
    xc = xf - mu
    var = jnp.mean(xc * xc, axis=-1, keepdims=True)
    return xc * jax.lax.rsqrt(var + EPS) * g + b


# ----------------------------------------------------------------------------
# In-kernel building blocks (traced inside the fused layer kernel)
# ----------------------------------------------------------------------------
def _split_heads_spatial(t, F, N, heads, dh):
    # (F*N, H*dh) -> (F*H, N, dh): attend over tokens n per (frame, head).
    return (t.reshape(F, N, heads, dh)
             .transpose(0, 2, 1, 3)
             .reshape(F * heads, N, dh))


def _merge_heads_spatial(o, F, N, heads, dh):
    return (o.reshape(F, heads, N, dh)
             .transpose(0, 2, 1, 3)
             .reshape(F * N, heads * dh))


def _split_heads_temporal(t, F, N, heads, dh):
    # (F*N, H*dh) -> (N*H, F, dh): attend over frames f per (token, head).
    # The '(b f) n d -> (b n) f d' rearrange of the reference module is folded
    # into this relayout, so no standalone activation transpose is needed.
    t = t.reshape(F, N, heads, dh).transpose(1, 0, 2, 3)       # (N, F, H, dh)
    return t.transpose(0, 2, 1, 3).reshape(N * heads, F, dh)   # (N*H, F, dh)


def _merge_heads_temporal(o, F, N, heads, dh):
    o = o.reshape(N, heads, F, dh).transpose(0, 2, 1, 3)        # (N, F, H, dh)
    return o.transpose(1, 0, 2, 3).reshape(F * N, heads * dh)   # (F*N, H*dh)


def _mhsa(x, g, b, wqkv, wo, bo, heads, dim_head, compute_dtype, temporal):
    """Pre-LN multi-head self-attention + residual on a (F, N, D) block.

    temporal=False: attention over tokens n (spatial attention).
    temporal=True : attention over frames f (temporal attention); the layout
                    swap is folded into the head split.  Output is (F, N, D)
                    in both cases.
    """
    F, N, D = x.shape
    inner = heads * dim_head
    scale = dim_head ** -0.5
    approx = _is_bf16(compute_dtype)

    xn = _ln(x, g, b)                                           # f32 stats
    rows = xn.astype(compute_dtype).reshape(F * N, D)
    # Fused QKV projection: one wide MXU matmul, f32 accumulation.
    qkv = jnp.dot(rows, wqkv, preferred_element_type=jnp.float32)  # (F*N, 3*inner)
    q = (qkv[:, :inner] * scale).astype(compute_dtype)          # fold softmax scale
    k = qkv[:, inner:2 * inner].astype(compute_dtype)
    v = qkv[:, 2 * inner:].astype(compute_dtype)

    split = _split_heads_temporal if temporal else _split_heads_spatial
    merge = _merge_heads_temporal if temporal else _merge_heads_spatial
    qh = split(q, F, N, heads, dim_head)                        # (B', S, dh)
    kh = split(k, F, N, heads, dim_head)
    vh = split(v, F, N, heads, dim_head)

    # Head-batched attention, f32 scores.
    s = jnp.einsum("bqd,bkd->bqk", qh, kh,
                   preferred_element_type=jnp.float32)          # (B', S, S)
    s = s - jnp.max(s, axis=-1, keepdims=True)
    p = jnp.exp(s)
    denom = jnp.sum(p, axis=-1, keepdims=True)
    # TODO(synk): nn.Dropout(0.5) on the attention weights is identity in eval.
    o = jnp.einsum("bqk,bkd->bqd", p.astype(compute_dtype), vh,
                   preferred_element_type=jnp.float32)          # (B', S, dh)
    # Flash-style late normalization: scale the (S, dh) output rather than the
    # (S, S) probability matrix.
    if approx:
        o = o * pl.reciprocal(denom, approx=True)               # EUP reciprocal
    else:
        o = o / denom                                           # exact f32 path
    o = merge(o.astype(compute_dtype), F, N, heads, dim_head)   # (F*N, inner)
    y = jnp.dot(o, wo, preferred_element_type=jnp.float32) + bo
    # Residual add in f32 (transient); the stream is carried in compute dtype.
    return (y.reshape(F, N, D) + x.astype(jnp.float32)).astype(x.dtype)


def _ff(x, g, b, w1, b1, w2, b2, compute_dtype):
    """Pre-LN MLP (Linear -> GELU -> Linear) + residual on (F, N, D)."""
    F, N, D = x.shape
    inv_sqrt2 = 1.0 / math.sqrt(2.0)
    xn = _ln(x, g, b)
    rows = xn.astype(compute_dtype).reshape(F * N, D)
    h = jnp.dot(rows, w1, preferred_element_type=jnp.float32) + b1
    h = 0.5 * h * (1.0 + jax.lax.erf(h * inv_sqrt2))            # exact GELU
    y = jnp.dot(h.astype(compute_dtype), w2, preferred_element_type=jnp.float32) + b2
    return (y.reshape(F, N, D) + x.astype(jnp.float32)).astype(x.dtype)


# ----------------------------------------------------------------------------
# Pallas kernels
# ----------------------------------------------------------------------------
def factorized_layer_pallas(x, sp, tp, fp, heads, dim_head, *,
                            final_norm=None, out_dtype=None,
                            compute_dtype=jnp.bfloat16):
    """One fused FactorizedTransformer layer on x: (B, F, N, D).

    spatial attention -> temporal attention -> FF (all with residuals),
    optionally followed by the final LayerNorm, in a single pallas_call with
    one (F, N, D) activation block per grid step (grid over batch).
    """
    B, F, N, D = x.shape
    inner = heads * dim_head
    Hd = fp["w1"].shape[1]
    has_final = final_norm is not None
    out_dtype = x.dtype if out_dtype is None else out_dtype
    cd = compute_dtype

    # Weight matrices in the compute dtype (cast once in XLA, amortized).
    swqkv, swo = sp["wqkv"].astype(cd), sp["wo"].astype(cd)
    twqkv, two = tp["wqkv"].astype(cd), tp["wo"].astype(cd)
    w1, w2 = fp["w1"].astype(cd), fp["w2"].astype(cd)

    def kernel(x_ref, sg, sb, swqkv_r, swo_r, sbo,
               tg, tb, twqkv_r, two_r, tbo,
               fg, fb, w1_r, b1_r, w2_r, b2_r, *rest):
        if has_final:
            ng, nb, o_ref = rest
        else:
            (o_ref,) = rest
        xb = x_ref[...]                                         # (F, N, D)
        y = _mhsa(xb, sg[0], sb[0], swqkv_r[...], swo_r[...], sbo[0],
                  heads, dim_head, cd, temporal=False)
        y = _mhsa(y, tg[0], tb[0], twqkv_r[...], two_r[...], tbo[0],
                  heads, dim_head, cd, temporal=True)
        y = _ff(y, fg[0], fb[0], w1_r[...], b1_r[0], w2_r[...], b2_r[0], cd)
        if has_final:
            y = _ln(y, ng[0], nb[0])        # per-row: layout-invariant
        o_ref[...] = y.astype(o_ref.dtype)

    in_specs = [
        pl.BlockSpec((None, F, N, D), lambda i: (i, 0, 0, 0)),
        _full_spec((1, D)), _full_spec((1, D)),
        _full_spec((D, 3 * inner)), _full_spec((inner, D)), _full_spec((1, D)),
        _full_spec((1, D)), _full_spec((1, D)),
        _full_spec((D, 3 * inner)), _full_spec((inner, D)), _full_spec((1, D)),
        _full_spec((1, D)), _full_spec((1, D)),
        _full_spec((D, Hd)), _full_spec((1, Hd)),
        _full_spec((Hd, D)), _full_spec((1, D)),
    ]
    args = [x, sp["g"], sp["b"], swqkv, swo, sp["bo"],
            tp["g"], tp["b"], twqkv, two, tp["bo"],
            fp["g"], fp["b"], w1, fp["b1"], w2, fp["b2"]]
    if has_final:
        in_specs += [_full_spec((1, D)), _full_spec((1, D))]
        args += [final_norm[0], final_norm[1]]

    return pl.pallas_call(
        kernel,
        out_shape=jax.ShapeDtypeStruct((B, F, N, D), out_dtype),
        grid=(B,),
        in_specs=in_specs,
        out_specs=pl.BlockSpec((None, F, N, D), lambda i: (i, 0, 0, 0)),
        compiler_params=pltpu.CompilerParams(
            dimension_semantics=("parallel",),
            vmem_limit_bytes=_vmem_limit_bytes()),
    )(*args)


def layernorm_pallas(x, g, b):
    """Standalone final LayerNorm (only used when depth == 0). x: (B,F,N,D)."""
    B, F, N, D = x.shape

    def kernel(x_ref, g_ref, b_ref, o_ref):
        o_ref[...] = _ln(x_ref[...], g_ref[0], b_ref[0]).astype(o_ref.dtype)

    return pl.pallas_call(
        kernel,
        out_shape=jax.ShapeDtypeStruct((B, F, N, D), x.dtype),
        grid=(B,),
        in_specs=[pl.BlockSpec((None, F, N, D), lambda i: (i, 0, 0, 0)),
                  _full_spec((1, D)), _full_spec((1, D))],
        out_specs=pl.BlockSpec((None, F, N, D), lambda i: (i, 0, 0, 0)),
        compiler_params=pltpu.CompilerParams(
            dimension_semantics=("parallel",),
            vmem_limit_bytes=_vmem_limit_bytes()),
    )(x, g, b)


# ----------------------------------------------------------------------------
# FactorizedTransformer forward
# ----------------------------------------------------------------------------
def factorized_transformer_pallas(x, params, heads, dim_head,
                                  compute_dtype=jnp.bfloat16):
    """Forward pass matching FactorizedTransformer.forward (eval mode)."""
    layers = params["layers"]
    if not layers:  # depth == 0: only the final LayerNorm
        return layernorm_pallas(x, params["norm_g"], params["norm_b"])
    in_dtype = x.dtype
    # Inter-layer activations carried in the compute dtype (bf16 fast path).
    y = x.astype(compute_dtype)
    final_norm = (params["norm_g"], params["norm_b"])
    for li, layer in enumerate(layers):
        last = li == len(layers) - 1
        y = factorized_layer_pallas(
            y, layer["spatial"], layer["temporal"], layer["ff"],
            heads, dim_head,
            final_norm=final_norm if last else None,
            out_dtype=in_dtype if last else compute_dtype,
            compute_dtype=compute_dtype)
    return y


# ----------------------------------------------------------------------------
# Pure-JAX f32 reference (PyTorch semantics, for correctness check)
# ----------------------------------------------------------------------------
def attention_ref(x, p, heads, dim_head):
    B, N, D = x.shape
    inner = heads * dim_head
    xn = _ln(x, p["g"][0], p["b"][0])
    qkv = xn @ p["wqkv"]
    q, k, v = qkv[..., :inner], qkv[..., inner:2 * inner], qkv[..., 2 * inner:]
    sp = lambda t: t.reshape(B, N, heads, dim_head).transpose(0, 2, 1, 3)
    q, k, v = sp(q), sp(k), sp(v)
    dots = jnp.einsum("bhnd,bhmd->bhnm", q, k) * (dim_head ** -0.5)
    attn = jax.nn.softmax(dots, axis=-1)
    out = jnp.einsum("bhnm,bhmd->bhnd", attn, v)
    out = out.transpose(0, 2, 1, 3).reshape(B, N, inner)
    return out @ p["wo"] + p["bo"][0] + x


def feedforward_ref(x, p):
    xn = _ln(x, p["g"][0], p["b"][0])
    h = xn @ p["w1"] + p["b1"][0]
    h = 0.5 * h * (1.0 + jax.lax.erf(h / math.sqrt(2.0)))
    return h @ p["w2"] + p["b2"][0] + x


def factorized_transformer_ref(x, params, heads, dim_head):
    b, f, n, d = x.shape
    for layer in params["layers"]:
        xs = x.reshape(b * f, n, d)
        xs = attention_ref(xs, layer["spatial"], heads, dim_head)
        xt = xs.reshape(b, f, n, d).transpose(0, 2, 1, 3).reshape(b * n, f, d)
        xt = attention_ref(xt, layer["temporal"], heads, dim_head)
        xt = feedforward_ref(xt, layer["ff"])
        x = xt.reshape(b, n, f, d).transpose(0, 2, 1, 3)
    return _ln(x, params["norm_g"][0], params["norm_b"][0])


# ----------------------------------------------------------------------------
# Deterministic parameter init (matches module shapes; synthetic values)
# ----------------------------------------------------------------------------
def init_params(key, dim, depth, heads, dim_head, mlp_dim):
    inner = heads * dim_head

    def attn_params(k):
        k0, k1 = jax.random.split(k, 2)
        s_in, s_out = dim ** -0.5, inner ** -0.5
        return dict(
            g=jnp.ones((1, dim), jnp.float32),
            b=jnp.zeros((1, dim), jnp.float32),
            # fused [to_q | to_k | to_v] weight (bias-free Linears in PyTorch)
            wqkv=s_in * jax.random.normal(k0, (dim, 3 * inner), jnp.float32),
            wo=s_out * jax.random.normal(k1, (inner, dim), jnp.float32),
            bo=jnp.zeros((1, dim), jnp.float32),
        )

    def ff_params(k):
        k0, k1 = jax.random.split(k, 2)
        return dict(
            g=jnp.ones((1, dim), jnp.float32),
            b=jnp.zeros((1, dim), jnp.float32),
            w1=(dim ** -0.5) * jax.random.normal(k0, (dim, mlp_dim), jnp.float32),
            b1=jnp.zeros((1, mlp_dim), jnp.float32),
            w2=(mlp_dim ** -0.5) * jax.random.normal(k1, (mlp_dim, dim), jnp.float32),
            b2=jnp.zeros((1, dim), jnp.float32),
        )

    keys = jax.random.split(key, max(depth * 3, 1))
    layers = []
    for i in range(depth):
        layers.append(dict(
            spatial=attn_params(keys[3 * i]),
            temporal=attn_params(keys[3 * i + 1]),
            ff=ff_params(keys[3 * i + 2]),
        ))
    return dict(
        layers=layers,
        norm_g=jnp.ones((1, dim), jnp.float32),
        norm_b=jnp.zeros((1, dim), jnp.float32),
    )


if __name__ == "__main__":
    # small shapes: batch=2, frames=4, tokens=8, dim=32
    b, f, n = 2, 4, 8
    dim, depth, heads, dim_head, mlp_dim = 32, 2, 4, 8, 64

    key = jax.random.PRNGKey(0)
    kx, kp = jax.random.split(key)
    x = jax.random.normal(kx, (b, f, n, dim), jnp.float32)
    params = init_params(kp, dim, depth, heads, dim_head, mlp_dim)

    ref = factorized_transformer_ref(x, params, heads, dim_head)

    # Strict check: f32 compute path must match PyTorch-semantics reference.
    out_f32 = jax.block_until_ready(
        factorized_transformer_pallas(x, params, heads, dim_head,
                                      compute_dtype=jnp.float32))
    err_f32 = float(jnp.max(jnp.abs(out_f32 - ref)))
    assert out_f32.shape == (b, f, n, dim)
    assert err_f32 < 1e-3, f"f32 path max abs error {err_f32}"

    # Fast path: bf16 matmuls + bf16 inter-layer activations (f32 LN/softmax).
    out_bf16 = jax.block_until_ready(
        factorized_transformer_pallas(x, params, heads, dim_head,
                                      compute_dtype=jnp.bfloat16))
    err_bf16 = float(jnp.max(jnp.abs(out_bf16.astype(jnp.float32) - ref)))
    assert out_bf16.shape == (b, f, n, dim)
    assert err_bf16 < 1e-1, f"bf16 path max abs error {err_bf16}"

    print("KERNEL_OK")
</pallas_src>

<mosaic_0001>
module attributes {stable_mosaic.version = 11 : i64} {
  func.func @kernel(%arg0: i32, %arg1: memref<1x4x8x32xf32, #tpu.memory_space<vmem>>, %arg2: memref<1x32xf32, #tpu.memory_space<vmem>>, %arg3: memref<1x32xf32, #tpu.memory_space<vmem>>, %arg4: memref<32x96xf32, #tpu.memory_space<vmem>>, %arg5: memref<32x32xf32, #tpu.memory_space<vmem>>, %arg6: memref<1x32xf32, #tpu.memory_space<vmem>>, %arg7: memref<1x32xf32, #tpu.memory_space<vmem>>, %arg8: memref<1x32xf32, #tpu.memory_space<vmem>>, %arg9: memref<32x96xf32, #tpu.memory_space<vmem>>, %arg10: memref<32x32xf32, #tpu.memory_space<vmem>>, %arg11: memref<1x32xf32, #tpu.memory_space<vmem>>, %arg12: memref<1x32xf32, #tpu.memory_space<vmem>>, %arg13: memref<1x32xf32, #tpu.memory_space<vmem>>, %arg14: memref<32x64xf32, #tpu.memory_space<vmem>>, %arg15: memref<1x64xf32, #tpu.memory_space<vmem>>, %arg16: memref<64x32xf32, #tpu.memory_space<vmem>>, %arg17: memref<1x32xf32, #tpu.memory_space<vmem>>, %arg18: memref<1x4x8x32xf32, #tpu.memory_space<vmem>>) attributes {dimension_semantics = [#tpu.dimension_semantics<parallel>], iteration_bounds = array<i64: 2>, scalar_prefetch = 0 : i64, scratch_operands = 0 : i64, tpu.core_type = #tpu.core_type<tc>, window_params = [{transform_indices = @transform_0, window_bounds = array<i64: 1, 4, 8, 32>}, {pipeline_mode = #tpu.pipeline_mode<synchronous>, transform_indices = @transform_1, window_bounds = array<i64: 1, 32>}, {pipeline_mode = #tpu.pipeline_mode<synchronous>, transform_indices = @transform_2, window_bounds = array<i64: 1, 32>}, {pipeline_mode = #tpu.pipeline_mode<synchronous>, transform_indices = @transform_3, window_bounds = array<i64: 32, 96>}, {pipeline_mode = #tpu.pipeline_mode<synchronous>, transform_indices = @transform_4, window_bounds = array<i64: 32, 32>}, {pipeline_mode = #tpu.pipeline_mode<synchronous>, transform_indices = @transform_5, window_bounds = array<i64: 1, 32>}, {pipeline_mode = #tpu.pipeline_mode<synchronous>, transform_indices = @transform_6, window_bounds = array<i64: 1, 32>}, {pipeline_mode = #tpu.pipeline_mode<synchronous>, transform_indices = @transform_7, window_bounds = array<i64: 1, 32>}, {pipeline_mode = #tpu.pipeline_mode<synchronous>, transform_indices = @transform_8, window_bounds = array<i64: 32, 96>}, {pipeline_mode = #tpu.pipeline_mode<synchronous>, transform_indices = @transform_9, window_bounds = array<i64: 32, 32>}, {pipeline_mode = #tpu.pipeline_mode<synchronous>, transform_indices = @transform_10, window_bounds = array<i64: 1, 32>}, {pipeline_mode = #tpu.pipeline_mode<synchronous>, transform_indices = @transform_11, window_bounds = array<i64: 1, 32>}, {pipeline_mode = #tpu.pipeline_mode<synchronous>, transform_indices = @transform_12, window_bounds = array<i64: 1, 32>}, {pipeline_mode = #tpu.pipeline_mode<synchronous>, transform_indices = @transform_13, window_bounds = array<i64: 32, 64>}, {pipeline_mode = #tpu.pipeline_mode<synchronous>, transform_indices = @transform_14, window_bounds = array<i64: 1, 64>}, {pipeline_mode = #tpu.pipeline_mode<synchronous>, transform_indices = @transform_15, window_bounds = array<i64: 64, 32>}, {pipeline_mode = #tpu.pipeline_mode<synchronous>, transform_indices = @transform_16, window_bounds = array<i64: 1, 32>}, {transform_indices = @transform_17, window_bounds = array<i64: 1, 4, 8, 32>}]} {
    %c0 = arith.constant 0 : index
    %c0_0 = arith.constant 0 : index
    %c0_1 = arith.constant 0 : index
    %c0_2 = arith.constant 0 : index
    %0 = vector.load %arg1[%c0, %c0_0, %c0_1, %c0_2] : memref<1x4x8x32xf32, #tpu.memory_space<vmem>>, vector<1x4x8x32xf32>
    %1 = vector.shape_cast %0 : vector<1x4x8x32xf32> to vector<4x8x32xf32>
    %c0_3 = arith.constant 0 : index
    %c0_4 = arith.constant 0 : index
    %2 = vector.load %arg2[%c0_3, %c0_4] : memref<1x32xf32, #tpu.memory_space<vmem>>, vector<1x32xf32>
    %3 = vector.shape_cast %2 : vector<1x32xf32> to vector<32xf32>
    %c0_5 = arith.constant 0 : index
    %c0_6 = arith.constant 0 : index
    %4 = vector.load %arg3[%c0_5, %c0_6] : memref<1x32xf32, #tpu.memory_space<vmem>>, vector<1x32xf32>
    %5 = vector.shape_cast %4 : vector<1x32xf32> to vector<32xf32>
    %c0_7 = arith.constant 0 : index
    %c0_8 = arith.constant 0 : index
    %6 = vector.load %arg4[%c0_7, %c0_8] : memref<32x96xf32, #tpu.memory_space<vmem>>, vector<32x96xf32>
    %c0_9 = arith.constant 0 : index
    %c0_10 = arith.constant 0 : index
    %7 = vector.load %arg5[%c0_9, %c0_10] : memref<32x32xf32, #tpu.memory_space<vmem>>, vector<32x32xf32>
    %c0_11 = arith.constant 0 : index
    %c0_12 = arith.constant 0 : index
    %8 = vector.load %arg6[%c0_11, %c0_12] : memref<1x32xf32, #tpu.memory_space<vmem>>, vector<1x32xf32>
    %9 = vector.shape_cast %8 : vector<1x32xf32> to vector<32xf32>
    %cst = arith.constant dense<0.000000e+00> : vector<4x8xf32>
    %10 = vector.multi_reduction <add>, %1, %cst [2] : vector<4x8x32xf32> to vector<4x8xf32>
    %11 = vector.shape_cast %10 : vector<4x8xf32> to vector<4x8x1xf32>
    %cst_13 = arith.constant 3.200000e+01 : f32
    %12 = vector.broadcast %cst_13 : f32 to vector<4x8x1xf32>
    %13 = arith.divf %11, %12 : vector<4x8x1xf32>
    %14 = vector.broadcast %13 : vector<4x8x1xf32> to vector<4x8x32xf32>
    %15 = arith.subf %1, %14 : vector<4x8x32xf32>
    %16 = arith.mulf %15, %15 : vector<4x8x32xf32>
    %cst_14 = arith.constant dense<0.000000e+00> : vector<4x8xf32>
    %17 = vector.multi_reduction <add>, %16, %cst_14 [2] : vector<4x8x32xf32> to vector<4x8xf32>
    %18 = vector.shape_cast %17 : vector<4x8xf32> to vector<4x8x1xf32>
    %cst_15 = arith.constant 3.200000e+01 : f32
    %19 = vector.broadcast %cst_15 : f32 to vector<4x8x1xf32>
    %20 = arith.divf %18, %19 : vector<4x8x1xf32>
    %cst_16 = arith.constant 9.99999974E-6 : f32
    %21 = vector.broadcast %cst_16 : f32 to vector<4x8x1xf32>
    %22 = arith.addf %20, %21 : vector<4x8x1xf32>
    %23 = math.rsqrt %22 : vector<4x8x1xf32>
    %24 = vector.broadcast %23 : vector<4x8x1xf32> to vector<4x8x32xf32>
    %25 = arith.mulf %15, %24 : vector<4x8x32xf32>
    %26 = vector.shape_cast %3 : vector<32xf32> to vector<1x1x32xf32>
    %27 = vector.broadcast %26 : vector<1x1x32xf32> to vector<4x8x32xf32>
    %28 = arith.mulf %25, %27 : vector<4x8x32xf32>
    %29 = vector.shape_cast %5 : vector<32xf32> to vector<1x1x32xf32>
    %30 = vector.broadcast %29 : vector<1x1x32xf32> to vector<4x8x32xf32>
    %31 = arith.addf %28, %30 : vector<4x8x32xf32>
    %32 = vector.shape_cast %31 : vector<4x8x32xf32> to vector<32x32xf32>
    %cst_17 = arith.constant dense<0.000000e+00> : vector<32x96xf32>
    %33 = tpu.matmul %32, %6, %cst_17 {dimension_numbers = #tpu.dot_dimension_numbers<[1], [0], [0], [1], [0, 0, 1, 1], [], []>} : vector<32x32xf32>, vector<32x96xf32>, vector<32x96xf32> -> vector<32x96xf32>
    %34 = vector.extract_strided_slice %33 {offsets = [0, 0], sizes = [32, 32], strides = [1, 1]} : vector<32x96xf32> to vector<32x32xf32>
    %cst_18 = arith.constant 0.353553385 : f32
    %35 = vector.broadcast %cst_18 : f32 to vector<32x32xf32>
    %36 = arith.mulf %34, %35 : vector<32x32xf32>
    %37 = vector.extract_strided_slice %33 {offsets = [0, 32], sizes = [32, 32], strides = [1, 1]} : vector<32x96xf32> to vector<32x32xf32>
    %38 = vector.extract_strided_slice %33 {offsets = [0, 64], sizes = [32, 32], strides = [1, 1]} : vector<32x96xf32> to vector<32x32xf32>
    %39 = vector.shape_cast %36 : vector<32x32xf32> to vector<4x8x4x8xf32>
    %40 = tpu.transpose %39, [0, 2, 1, 3] : vector<4x8x4x8xf32> -> vector<4x4x8x8xf32>
    %41 = vector.shape_cast %40 : vector<4x4x8x8xf32> to vector<16x8x8xf32>
    %42 = vector.shape_cast %37 : vector<32x32xf32> to vector<4x8x4x8xf32>
    %43 = tpu.transpose %42, [0, 2, 1, 3] : vector<4x8x4x8xf32> -> vector<4x4x8x8xf32>
    %44 = vector.shape_cast %43 : vector<4x4x8x8xf32> to vector<16x8x8xf32>
    %45 = vector.shape_cast %38 : vector<32x32xf32> to vector<4x8x4x8xf32>
    %46 = tpu.transpose %45, [0, 2, 1, 3] : vector<4x8x4x8xf32> -> vector<4x4x8x8xf32>
    %47 = vector.shape_cast %46 : vector<4x4x8x8xf32> to vector<16x8x8xf32>
    "tpu.trace_start"() <{level = 10 : i32, message = "bqd,bkd->bqk"}> : () -> ()
    %cst_19 = arith.constant dense<0.000000e+00> : vector<16x8x8xf32>
    %48 = tpu.matmul %41, %44, %cst_19 {dimension_numbers = #tpu.dot_dimension_numbers<[2], [2], [1], [1], [0, 0, 0, 1, 1, 1], [0], [0]>} : vector<16x8x8xf32>, vector<16x8x8xf32>, vector<16x8x8xf32> -> vector<16x8x8xf32>
    "tpu.trace_stop"() : () -> ()
    %cst_20 = arith.constant dense<0xFF800000> : vector<16x8xf32>
    %49 = vector.multi_reduction <maximumf>, %48, %cst_20 [2] : vector<16x8x8xf32> to vector<16x8xf32>
    %50 = vector.shape_cast %49 : vector<16x8xf32> to vector<16x8x1xf32>
    %51 = vector.broadcast %50 : vector<16x8x1xf32> to vector<16x8x8xf32>
    %52 = arith.subf %48, %51 : vector<16x8x8xf32>
    %53 = math.exp %52 : vector<16x8x8xf32>
    %cst_21 = arith.constant dense<0.000000e+00> : vector<16x8xf32>
    %54 = vector.multi_reduction <add>, %53, %cst_21 [2] : vector<16x8x8xf32> to vector<16x8xf32>
    %55 = vector.shape_cast %54 : vector<16x8xf32> to vector<16x8x1xf32>
    "tpu.trace_start"() <{level = 10 : i32, message = "bqk,bkd->bqd"}> : () -> ()
    %cst_22 = arith.constant dense<0.000000e+00> : vector<16x8x8xf32>
    %56 = tpu.matmul %53, %47, %cst_22 {dimension_numbers = #tpu.dot_dimension_numbers<[2], [1], [1], [2], [0, 0, 0, 1, 1, 2], [0], [0]>} : vector<16x8x8xf32>, vector<16x8x8xf32>, vector<16x8x8xf32> -> vector<16x8x8xf32>
    "tpu.trace_stop"() : () -> ()
    %57 = vector.broadcast %55 : vector<16x8x1xf32> to vector<16x8x8xf32>
    %58 = arith.divf %56, %57 : vector<16x8x8xf32>
    %59 = vector.shape_cast %58 : vector<16x8x8xf32> to vector<4x4x8x8xf32>
    %60 = tpu.transpose %59, [0, 2, 1, 3] : vector<4x4x8x8xf32> -> vector<4x8x4x8xf32>
    %61 = vector.shape_cast %60 : vector<4x8x4x8xf32> to vector<32x32xf32>
    %cst_23 = arith.constant dense<0.000000e+00> : vector<32x32xf32>
    %62 = tpu.matmul %61, %7, %cst_23 {dimension_numbers = #tpu.dot_dimension_numbers<[1], [0], [0], [1], [0, 0, 1, 1], [], []>} : vector<32x32xf32>, vector<32x32xf32>, vector<32x32xf32> -> vector<32x32xf32>
    %63 = vector.shape_cast %9 : vector<32xf32> to vector<1x32xf32>
    %64 = vector.broadcast %63 : vector<1x32xf32> to vector<32x32xf32>
    %65 = arith.addf %62, %64 : vector<32x32xf32>
    %66 = vector.shape_cast %65 : vector<32x32xf32> to vector<4x8x32xf32>
    %67 = arith.addf %66, %1 : vector<4x8x32xf32>
    %c0_24 = arith.constant 0 : index
    %c0_25 = arith.constant 0 : index
    %68 = vector.load %arg7[%c0_24, %c0_25] : memref<1x32xf32, #tpu.memory_space<vmem>>, vector<1x32xf32>
    %69 = vector.shape_cast %68 : vector<1x32xf32> to vector<32xf32>
    %c0_26 = arith.constant 0 : index
    %c0_27 = arith.constant 0 : index
    %70 = vector.load %arg8[%c0_26, %c0_27] : memref<1x32xf32, #tpu.memory_space<vmem>>, vector<1x32xf32>
    %71 = vector.shape_cast %70 : vector<1x32xf32> to vector<32xf32>
    %c0_28 = arith.constant 0 : index
    %c0_29 = arith.constant 0 : index
    %72 = vector.load %arg9[%c0_28, %c0_29] : memref<32x96xf32, #tpu.memory_space<vmem>>, vector<32x96xf32>
    %c0_30 = arith.constant 0 : index
    %c0_31 = arith.constant 0 : index
    %73 = vector.load %arg10[%c0_30, %c0_31] : memref<32x32xf32, #tpu.memory_space<vmem>>, vector<32x32xf32>
    %c0_32 = arith.constant 0 : index
    %c0_33 = arith.constant 0 : index
    %74 = vector.load %arg11[%c0_32, %c0_33] : memref<1x32xf32, #tpu.memory_space<vmem>>, vector<1x32xf32>
    %75 = vector.shape_cast %74 : vector<1x32xf32> to vector<32xf32>
    %cst_34 = arith.constant dense<0.000000e+00> : vector<4x8xf32>
    %76 = vector.multi_reduction <add>, %67, %cst_34 [2] : vector<4x8x32xf32> to vector<4x8xf32>
    %77 = vector.shape_cast %76 : vector<4x8xf32> to vector<4x8x1xf32>
    %cst_35 = arith.constant 3.200000e+01 : f32
    %78 = vector.broadcast %cst_35 : f32 to vector<4x8x1xf32>
    %79 = arith.divf %77, %78 : vector<4x8x1xf32>
    %80 = vector.broadcast %79 : vector<4x8x1xf32> to vector<4x8x32xf32>
    %81 = arith.subf %67, %80 : vector<4x8x32xf32>
    %82 = arith.mulf %81, %81 : vector<4x8x32xf32>
    %cst_36 = arith.constant dense<0.000000e+00> : vector<4x8xf32>
    %83 = vector.multi_reduction <add>, %82, %cst_36 [2] : vector<4x8x32xf32> to vector<4x8xf32>
    %84 = vector.shape_cast %83 : vector<4x8xf32> to vector<4x8x1xf32>
    %cst_37 = arith.constant 3.200000e+01 : f32
    %85 = vector.broadcast %cst_37 : f32 to vector<4x8x1xf32>
    %86 = arith.divf %84, %85 : vector<4x8x1xf32>
    %cst_38 = arith.constant 9.99999974E-6 : f32
    %87 = vector.broadcast %cst_38 : f32 to vector<4x8x1xf32>
    %88 = arith.addf %86, %87 : vector<4x8x1xf32>
    %89 = math.rsqrt %88 : vector<4x8x1xf32>
    %90 = vector.broadcast %89 : vector<4x8x1xf32> to vector<4x8x32xf32>
    %91 = arith.mulf %81, %90 : vector<4x8x32xf32>
    %92 = vector.shape_cast %69 : vector<32xf32> to vector<1x1x32xf32>
    %93 = vector.broadcast %92 : vector<1x1x32xf32> to vector<4x8x32xf32>
    %94 = arith.mulf %91, %93 : vector<4x8x32xf32>
    %95 = vector.shape_cast %71 : vector<32xf32> to vector<1x1x32xf32>
    %96 = vector.broadcast %95 : vector<1x1x32xf32> to vector<4x8x32xf32>
    %97 = arith.addf %94, %96 : vector<4x8x32xf32>
    %98 = vector.shape_cast %97 : vector<4x8x32xf32> to vector<32x32xf32>
    %cst_39 = arith.constant dense<0.000000e+00> : vector<32x96xf32>
    %99 = tpu.matmul %98, %72, %cst_39 {dimension_numbers = #tpu.dot_dimension_numbers<[1], [0], [0], [1], [0, 0, 1, 1], [], []>} : vector<32x32xf32>, vector<32x96xf32>, vector<32x96xf32> -> vector<32x96xf32>
    %100 = vector.extract_strided_slice %99 {offsets = [0, 0], sizes = [32, 32], strides = [1, 1]} : vector<32x96xf32> to vector<32x32xf32>
    %cst_40 = arith.constant 0.353553385 : f32
    %101 = vector.broadcast %cst_40 : f32 to vector<32x32xf32>
    %102 = arith.mulf %100, %101 : vector<32x32xf32>
    %103 = vector.extract_strided_slice %99 {offsets = [0, 32], sizes = [32, 32], strides = [1, 1]} : vector<32x96xf32> to vector<32x32xf32>
    %104 = vector.extract_strided_slice %99 {offsets = [0, 64], sizes = [32, 32], strides = [1, 1]} : vector<32x96xf32> to vector<32x32xf32>
    %105 = vector.shape_cast %102 : vector<32x32xf32> to vector<4x8x4x8xf32>
    %106 = tpu.transpose %105, [1, 0, 2, 3] : vector<4x8x4x8xf32> -> vector<8x4x4x8xf32>
    %107 = tpu.transpose %106, [0, 2, 1, 3] : vector<8x4x4x8xf32> -> vector<8x4x4x8xf32>
    %108 = vector.shape_cast %107 : vector<8x4x4x8xf32> to vector<32x4x8xf32>
    %109 = vector.shape_cast %103 : vector<32x32xf32> to vector<4x8x4x8xf32>
    %110 = tpu.transpose %109, [1, 0, 2, 3] : vector<4x8x4x8xf32> -> vector<8x4x4x8xf32>
    %111 = tpu.transpose %110, [0, 2, 1, 3] : vector<8x4x4x8xf32> -> vector<8x4x4x8xf32>
    %112 = vector.shape_cast %111 : vector<8x4x4x8xf32> to vector<32x4x8xf32>
    %113 = vector.shape_cast %104 : vector<32x32xf32> to vector<4x8x4x8xf32>
    %114 = tpu.transpose %113, [1, 0, 2, 3] : vector<4x8x4x8xf32> -> vector<8x4x4x8xf32>
    %115 = tpu.transpose %114, [0, 2, 1, 3] : vector<8x4x4x8xf32> -> vector<8x4x4x8xf32>
    %116 = vector.shape_cast %115 : vector<8x4x4x8xf32> to vector<32x4x8xf32>
    "tpu.trace_start"() <{level = 10 : i32, message = "bqd,bkd->bqk"}> : () -> ()
    %cst_41 = arith.constant dense<0.000000e+00> : vector<32x4x4xf32>
    %117 = tpu.matmul %108, %112, %cst_41 {dimension_numbers = #tpu.dot_dimension_numbers<[2], [2], [1], [1], [0, 0, 0, 1, 1, 1], [0], [0]>} : vector<32x4x8xf32>, vector<32x4x8xf32>, vector<32x4x4xf32> -> vector<32x4x4xf32>
    "tpu.trace_stop"() : () -> ()
    %cst_42 = arith.constant dense<0xFF800000> : vector<32x4xf32>
    %118 = vector.multi_reduction <maximumf>, %117, %cst_42 [2] : vector<32x4x4xf32> to vector<32x4xf32>
    %119 = vector.shape_cast %118 : vector<32x4xf32> to vector<32x4x1xf32>
    %120 = vector.broadcast %119 : vector<32x4x1xf32> to vector<32x4x4xf32>
    %121 = arith.subf %117, %120 : vector<32x4x4xf32>
    %122 = math.exp %121 : vector<32x4x4xf32>
    %cst_43 = arith.constant dense<0.000000e+00> : vector<32x4xf32>
    %123 = vector.multi_reduction <add>, %122, %cst_43 [2] : vector<32x4x4xf32> to vector<32x4xf32>
    %124 = vector.shape_cast %123 : vector<32x4xf32> to vector<32x4x1xf32>
    "tpu.trace_start"() <{level = 10 : i32, message = "bqk,bkd->bqd"}> : () -> ()
    %cst_44 = arith.constant dense<0.000000e+00> : vector<32x4x8xf32>
    %125 = tpu.matmul %122, %116, %cst_44 {dimension_numbers = #tpu.dot_dimension_numbers<[2], [1], [1], [2], [0, 0, 0, 1, 1, 2], [0], [0]>} : vector<32x4x4xf32>, vector<32x4x8xf32>, vector<32x4x8xf32> -> vector<32x4x8xf32>
    "tpu.trace_stop"() : () -> ()
    %126 = vector.broadcast %124 : vector<32x4x1xf32> to vector<32x4x8xf32>
    %127 = arith.divf %125, %126 : vector<32x4x8xf32>
    %128 = vector.shape_cast %127 : vector<32x4x8xf32> to vector<8x4x4x8xf32>
    %129 = tpu.transpose %128, [0, 2, 1, 3] : vector<8x4x4x8xf32> -> vector<8x4x4x8xf32>
    %130 = tpu.transpose %129, [1, 0, 2, 3] : vector<8x4x4x8xf32> -> vector<4x8x4x8xf32>
    %131 = vector.shape_cast %130 : vector<4x8x4x8xf32> to vector<32x32xf32>
    %cst_45 = arith.constant dense<0.000000e+00> : vector<32x32xf32>
    %132 = tpu.matmul %131, %73, %cst_45 {dimension_numbers = #tpu.dot_dimension_numbers<[1], [0], [0], [1], [0, 0, 1, 1], [], []>} : vector<32x32xf32>, vector<32x32xf32>, vector<32x32xf32> -> vector<32x32xf32>
    %133 = vector.shape_cast %75 : vector<32xf32> to vector<1x32xf32>
    %134 = vector.broadcast %133 : vector<1x32xf32> to vector<32x32xf32>
    %135 = arith.addf %132, %134 : vector<32x32xf32>
    %136 = vector.shape_cast %135 : vector<32x32xf32> to vector<4x8x32xf32>
    %137 = arith.addf %136, %67 : vector<4x8x32xf32>
    %c0_46 = arith.constant 0 : index
    %c0_47 = arith.constant 0 : index
    %138 = vector.load %arg12[%c0_46, %c0_47] : memref<1x32xf32, #tpu.memory_space<vmem>>, vector<1x32xf32>
    %139 = vector.shape_cast %138 : vector<1x32xf32> to vector<32xf32>
    %c0_48 = arith.constant 0 : index
    %c0_49 = arith.constant 0 : index
    %140 = vector.load %arg13[%c0_48, %c0_49] : memref<1x32xf32, #tpu.memory_space<vmem>>, vector<1x32xf32>
    %141 = vector.shape_cast %140 : vector<1x32xf32> to vector<32xf32>
    %c0_50 = arith.constant 0 : index
    %c0_51 = arith.constant 0 : index
    %142 = vector.load %arg14[%c0_50, %c0_51] : memref<32x64xf32, #tpu.memory_space<vmem>>, vector<32x64xf32>
    %c0_52 = arith.constant 0 : index
    %c0_53 = arith.constant 0 : index
    %143 = vector.load %arg15[%c0_52, %c0_53] : memref<1x64xf32, #tpu.memory_space<vmem>>, vector<1x64xf32>
    %144 = vector.shape_cast %143 : vector<1x64xf32> to vector<64xf32>
    %c0_54 = arith.constant 0 : index
    %c0_55 = arith.constant 0 : index
    %145 = vector.load %arg16[%c0_54, %c0_55] : memref<64x32xf32, #tpu.memory_space<vmem>>, vector<64x32xf32>
    %c0_56 = arith.constant 0 : index
    %c0_57 = arith.constant 0 : index
    %146 = vector.load %arg17[%c0_56, %c0_57] : memref<1x32xf32, #tpu.memory_space<vmem>>, vector<1x32xf32>
    %147 = vector.shape_cast %146 : vector<1x32xf32> to vector<32xf32>
    %cst_58 = arith.constant dense<0.000000e+00> : vector<4x8xf32>
    %148 = vector.multi_reduction <add>, %137, %cst_58 [2] : vector<4x8x32xf32> to vector<4x8xf32>
    %149 = vector.shape_cast %148 : vector<4x8xf32> to vector<4x8x1xf32>
    %cst_59 = arith.constant 3.200000e+01 : f32
    %150 = vector.broadcast %cst_59 : f32 to vector<4x8x1xf32>
    %151 = arith.divf %149, %150 : vector<4x8x1xf32>
    %152 = vector.broadcast %151 : vector<4x8x1xf32> to vector<4x8x32xf32>
    %153 = arith.subf %137, %152 : vector<4x8x32xf32>
    %154 = arith.mulf %153, %153 : vector<4x8x32xf32>
    %cst_60 = arith.constant dense<0.000000e+00> : vector<4x8xf32>
    %155 = vector.multi_reduction <add>, %154, %cst_60 [2] : vector<4x8x32xf32> to vector<4x8xf32>
    %156 = vector.shape_cast %155 : vector<4x8xf32> to vector<4x8x1xf32>
    %cst_61 = arith.constant 3.200000e+01 : f32
    %157 = vector.broadcast %cst_61 : f32 to vector<4x8x1xf32>
    %158 = arith.divf %156, %157 : vector<4x8x1xf32>
    %cst_62 = arith.constant 9.99999974E-6 : f32
    %159 = vector.broadcast %cst_62 : f32 to vector<4x8x1xf32>
    %160 = arith.addf %158, %159 : vector<4x8x1xf32>
    %161 = math.rsqrt %160 : vector<4x8x1xf32>
    %162 = vector.broadcast %161 : vector<4x8x1xf32> to vector<4x8x32xf32>
    %163 = arith.mulf %153, %162 : vector<4x8x32xf32>
    %164 = vector.shape_cast %139 : vector<32xf32> to vector<1x1x32xf32>
    %165 = vector.broadcast %164 : vector<1x1x32xf32> to vector<4x8x32xf32>
    %166 = arith.mulf %163, %165 : vector<4x8x32xf32>
    %167 = vector.shape_cast %141 : vector<32xf32> to vector<1x1x32xf32>
    %168 = vector.broadcast %167 : vector<1x1x32xf32> to vector<4x8x32xf32>
    %169 = arith.addf %166, %168 : vector<4x8x32xf32>
    %170 = vector.shape_cast %169 : vector<4x8x32xf32> to vector<32x32xf32>
    %cst_63 = arith.constant dense<0.000000e+00> : vector<32x64xf32>
    %171 = tpu.matmul %170, %142, %cst_63 {dimension_numbers = #tpu.dot_dimension_numbers<[1], [0], [0], [1], [0, 0, 1, 1], [], []>} : vector<32x32xf32>, vector<32x64xf32>, vector<32x64xf32> -> vector<32x64xf32>
    %172 = vector.shape_cast %144 : vector<64xf32> to vector<1x64xf32>
    %173 = vector.broadcast %172 : vector<1x64xf32> to vector<32x64xf32>
    %174 = arith.addf %171, %173 : vector<32x64xf32>
    %cst_64 = arith.constant 5.000000e-01 : f32
    %175 = vector.broadcast %cst_64 : f32 to vector<32x64xf32>
    %176 = arith.mulf %175, %174 : vector<32x64xf32>
    %cst_65 = arith.constant 0.707106769 : f32
    %177 = vector.broadcast %cst_65 : f32 to vector<32x64xf32>
    %178 = arith.mulf %174, %177 : vector<32x64xf32>
    %179 = math.erf %178 : vector<32x64xf32>
    %cst_66 = arith.constant 1.000000e+00 : f32
    %180 = vector.broadcast %cst_66 : f32 to vector<32x64xf32>
    %181 = arith.addf %180, %179 : vector<32x64xf32>
    %182 = arith.mulf %176, %181 : vector<32x64xf32>
    %cst_67 = arith.constant dense<0.000000e+00> : vector<32x32xf32>
    %183 = tpu.matmul %182, %145, %cst_67 {dimension_numbers = #tpu.dot_dimension_numbers<[1], [0], [0], [1], [0, 0, 1, 1], [], []>} : vector<32x64xf32>, vector<64x32xf32>, vector<32x32xf32> -> vector<32x32xf32>
    %184 = vector.shape_cast %147 : vector<32xf32> to vector<1x32xf32>
    %185 = vector.broadcast %184 : vector<1x32xf32> to vector<32x32xf32>
    %186 = arith.addf %183, %185 : vector<32x32xf32>
    %187 = vector.shape_cast %186 : vector<32x32xf32> to vector<4x8x32xf32>
    %188 = arith.addf %187, %137 : vector<4x8x32xf32>
    %c0_68 = arith.constant 0 : index
    %c0_69 = arith.constant 0 : index
    %c0_70 = arith.constant 0 : index
    %c0_71 = arith.constant 0 : index
    %189 = vector.load %arg18[%c0_68, %c0_69, %c0_70, %c0_71] : memref<1x4x8x32xf32, #tpu.memory_space<vmem>>, vector<1x4x8x32xf32>
    %190 = vector.shape_cast %189 : vector<1x4x8x32xf32> to vector<4x8x32xf32>
    %191 = vector.shape_cast %188 : vector<4x8x32xf32> to vector<1x4x8x32xf32>
    tpu.vector_store %arg18[%c0_68, %c0_69, %c0_70, %c0_71], %191 {strides = array<i32>} : memref<1x4x8x32xf32, #tpu.memory_space<vmem>>, vector<1x4x8x32xf32>,
    return
  }
  func.func @transform_0(%arg0: i32) -> (i32, i32, i32, i32) {
    %c0_i32 = arith.constant 0 : i32
    %c0_i32_0 = arith.constant 0 : i32
    %c0_i32_1 = arith.constant 0 : i32
    %c0_i32_2 = arith.constant 0 : i32
    return %arg0, %c0_i32, %c0_i32_0, %c0_i32_1 : i32, i32, i32, i32
  }
  func.func @transform_1(%arg0: i32) -> (i32, i32) {
    %c0_i32 = arith.constant 0 : i32
    %c0_i32_0 = arith.constant 0 : i32
    %c0_i32_1 = arith.constant 0 : i32
    return %c0_i32, %c0_i32_0 : i32, i32
  }
  func.func @transform_2(%arg0: i32) -> (i32, i32) {
    %c0_i32 = arith.constant 0 : i32
    %c0_i32_0 = arith.constant 0 : i32
    %c0_i32_1 = arith.constant 0 : i32
    return %c0_i32, %c0_i32_0 : i32, i32
  }
  func.func @transform_3(%arg0: i32) -> (i32, i32) {
    %c0_i32 = arith.constant 0 : i32
    %c0_i32_0 = arith.constant 0 : i32
    %c0_i32_1 = arith.constant 0 : i32
    return %c0_i32, %c0_i32_0 : i32, i32
  }
  func.func @transform_4(%arg0: i32) -> (i32, i32) {
    %c0_i32 = arith.constant 0 : i32
    %c0_i32_0 = arith.constant 0 : i32
    %c0_i32_1 = arith.constant 0 : i32
    return %c0_i32, %c0_i32_0 : i32, i32
  }
  func.func @transform_5(%arg0: i32) -> (i32, i32) {
    %c0_i32 = arith.constant 0 : i32
    %c0_i32_0 = arith.constant 0 : i32
    %c0_i32_1 = arith.constant 0 : i32
    return %c0_i32, %c0_i32_0 : i32, i32
  }
  func.func @transform_6(%arg0: i32) -> (i32, i32) {
    %c0_i32 = arith.constant 0 : i32
    %c0_i32_0 = arith.constant 0 : i32
    %c0_i32_1 = arith.constant 0 : i32
    return %c0_i32, %c0_i32_0 : i32, i32
  }
  func.func @transform_7(%arg0: i32) -> (i32, i32) {
    %c0_i32 = arith.constant 0 : i32
    %c0_i32_0 = arith.constant 0 : i32
    %c0_i32_1 = arith.constant 0 : i32
    return %c0_i32, %c0_i32_0 : i32, i32
  }
  func.func @transform_8(%arg0: i32) -> (i32, i32) {
    %c0_i32 = arith.constant 0 : i32
    %c0_i32_0 = arith.constant 0 : i32
    %c0_i32_1 = arith.constant 0 : i32
    return %c0_i32, %c0_i32_0 : i32, i32
  }
  func.func @transform_9(%arg0: i32) -> (i32, i32) {
    %c0_i32 = arith.constant 0 : i32
    %c0_i32_0 = arith.constant 0 : i32
    %c0_i32_1 = arith.constant 0 : i32
    return %c0_i32, %c0_i32_0 : i32, i32
  }
  func.func @transform_10(%arg0: i32) -> (i32, i32) {
    %c0_i32 = arith.constant 0 : i32
    %c0_i32_0 = arith.constant 0 : i32
    %c0_i32_1 = arith.constant 0 : i32
    return %c0_i32, %c0_i32_0 : i32, i32
  }
  func.func @transform_11(%arg0: i32) -> (i32, i32) {
    %c0_i32 = arith.constant 0 : i32
    %c0_i32_0 = arith.constant 0 : i32
    %c0_i32_1 = arith.constant 0 : i32
    return %c0_i32, %c0_i32_0 : i32, i32
  }
  func.func @transform_12(%arg0: i32) -> (i32, i32) {
    %c0_i32 = arith.constant 0 : i32
    %c0_i32_0 = arith.constant 0 : i32
    %c0_i32_1 = arith.constant 0 : i32
    return %c0_i32, %c0_i32_0 : i32, i32
  }
  func.func @transform_13(%arg0: i32) -> (i32, i32) {
    %c0_i32 = arith.constant 0 : i32
    %c0_i32_0 = arith.constant 0 : i32
    %c0_i32_1 = arith.constant 0 : i32
    return %c0_i32, %c0_i32_0 : i32, i32
  }
  func.func @transform_14(%arg0: i32) -> (i32, i32) {
    %c0_i32 = arith.constant 0 : i32
    %c0_i32_0 = arith.constant 0 : i32
    %c0_i32_1 = arith.constant 0 : i32
    return %c0_i32, %c0_i32_0 : i32, i32
  }
  func.func @transform_15(%arg0: i32) -> (i32, i32) {
    %c0_i32 = arith.constant 0 : i32
    %c0_i32_0 = arith.constant 0 : i32
    %c0_i32_1 = arith.constant 0 : i32
    return %c0_i32, %c0_i32_0 : i32, i32
  }
  func.func @transform_16(%arg0: i32) -> (i32, i32) {
    %c0_i32 = arith.constant 0 : i32
    %c0_i32_0 = arith.constant 0 : i32
    %c0_i32_1 = arith.constant 0 : i32
    return %c0_i32, %c0_i32_0 : i32, i32
  }
  func.func @transform_17(%arg0: i32) -> (i32, i32, i32, i32) {
    %c0_i32 = arith.constant 0 : i32
    %c0_i32_0 = arith.constant 0 : i32
    %c0_i32_1 = arith.constant 0 : i32
    %c0_i32_2 = arith.constant 0 : i32
    return %arg0, %c0_i32, %c0_i32_0, %c0_i32_1 : i32, i32, i32, i32
  }
}

</mosaic_0001>

<bundles_post_ra>
// kernel: tpu_custom_call.1
= control target key start
LH: loop header
LB: loop body
LE: loop exit
PB: predicated region body
PF: predicated region fallthrough
CT: control target
= control target key end

     0   :  { %s18788_s0 = inlined_call_operand.vmem [shape: f32[2,4,8,32], index: 0, kind: input, shape index: {}]   ;;  %s18789_s1 = inlined_call_operand.vmem [shape: f32[1,32], index: 1, kind: input, shape index: {}]   ;;  %s18790_s2 = inlined_call_operand.vmem [shape: f32[1,32], index: 2, kind: input, shape index: {}]   ;;  %s18791_s3 = inlined_call_operand.vmem [shape: f32[32,96], index: 3, kind: input, shape index: {}]   ;;  %s18792_s4 = inlined_call_operand.hbm [shape: f32[32,32], index: 4, kind: input, shape index: {}]   ;;  %s18793_s5 = inlined_call_operand.vmem [shape: f32[1,32], index: 5, kind: input, shape index: {}]   ;;  %s18794_s6 = inlined_call_operand.vmem [shape: f32[1,32], index: 6, kind: input, shape index: {}]   ;;  %s18795_s7 = inlined_call_operand.vmem [shape: f32[1,32], index: 7, kind: input, shape index: {}]   ;;  %s18796_s8 = inlined_call_operand.hbm [shape: f32[32,96], index: 8, kind: input, shape index: {}]   ;;  %s18797_s9 = inlined_call_operand.hbm [shape: f32[32,32], index: 9, kind: input, shape index: {}]   ;;  %s18798_s10 = inlined_call_operand.vmem [shape: f32[1,32], index: 10, kind: input, shape index: {}]   ;;  %s18799_s11 = inlined_call_operand.vmem [shape: f32[1,32], index: 11, kind: input, shape index: {}]   ;;  %s18800_s12 = inlined_call_operand.vmem [shape: f32[1,32], index: 12, kind: input, shape index: {}]   ;;  %s18801_s13 = inlined_call_operand.hbm [shape: f32[32,64], index: 13, kind: input, shape index: {}]   ;;  %s18802_s14 = inlined_call_operand.vmem [shape: f32[1,64], index: 14, kind: input, shape index: {}]   ;;  %s18803_s15 = inlined_call_operand.vmem [shape: f32[64,32], index: 15, kind: input, shape index: {}]   ;;  %s18804_s16 = inlined_call_operand.vmem [shape: f32[1,32], index: 16, kind: input, shape index: {}]   ;;  %s18805_s17 = inlined_call_operand.hbm [shape: f32[2,4,8,32], index: 17, kind: output, shape index: {}]  }
   0x1   :  { %18822 = sst [smem:[#allocation28_spill]] %s18788_s0 }
   0x2   :  { %18823 = sst [smem:[#allocation29_spill]] %s18789_s1 }
   0x3   :  { %22 = vsyncpa [#allocation3], 0 }
   0x4   :  { %23 = vsyncpa [#allocation6], 0 }
   0x5   :  { %24 = vsyncpa [#allocation9], 0 }
   0x6   :  { %25 = vsyncpa [#allocation4], 0 }
   0x7   :  { %27 = vsyncpa [#allocation4 + $0x1], 0  ;;  %s15939_s24 = smov 0   ;;  %s15941_s25 = smov 0  }
   0x8   :  { %s15943_s26 = smov 0   ;;  %s15945_s27 = smov 0  }
   0x9 LB: > { %18824 = sst [smem:[#allocation15_spill]] %s15815_s24  ;;  %s15960_s28 = sadd.s32 4294967295, %s15827_s27   ;;  %s15827_s27 = sphi %s15945_s27, %s18864_s27   ;;  %s15823_s26 = sphi %s15943_s26, %s18866_s26   ;;  %s15819_s25 = sphi %s15941_s25, %s18868_s25   ;;  %s15815_s24 = sphi %s15939_s24, %s18867_s24  }
   0xa   : > { %18825 = sst [smem:[#allocation16_spill]] %s15823_s26  ;;  %s14216_s29 = sadd.s32 4294967294, %s15827_s27  }
   0xb   : > { %18826 = sst [smem:[#allocation17_spill]] %s15827_s27  ;;  %s15964_s0 = sadd.s32 1, %s15827_s27  }
   0xc   : > { %18827 = sst [smem:[#allocation18_spill]] %s15964_s0  ;;  %s402_s30 = sadd.s32 1, %s15823_s26 }
   0xd   : > { %s399_s18 = ssub.s32 %s15827_s27, %s15964_s0  ;;  %p412_p0 = scmp.ne.s32.totalorder %s15823_s26, %s15819_s25 }
   0xe   : > { %p400_p1 = scmp.eq.s32.totalorder %s399_s18, 0  ;;  %p413_p2 = scmp.eq.s32.totalorder %s15960_s28, 1 }
   0xf   : > { %p418_p3 = scmp.ne.s32.totalorder %s15819_s25, %s15815_s24  ;;  %p419_p4 = scmp.eq.s32.totalorder %s14216_s29, 1 }
  0x10   : > { %s15975_s19 = scalar_select %p400_p1, %s15823_s26, %s402_s30  }
  0x11   : > { %p15977_p5 = por %p413_p2, %p412_p0  ;;  %p15981_p6 = por %p419_p4, %p418_p3 }
  0x12   : > { %18828 = sst [smem:[#allocation19_spill]] %s15975_s19  ;;  %p14217_p7 = scmp.ge.s32.totalorder %s15827_s27, 1 }
  0x13   : > { %s18830_s20 = scalar_select %p15981_p6, 1, 0 }
  0x14   : > { %p426_p8 = scmp.lt.s32.totalorder %s15827_s27, 3  ;;  %p15363_p9 = scmp.eq.s32.totalorder %s15960_s28, 0 }
  0x15   : > { %18831 = sst [smem:[#allocation20_spill]] %s18830_s20  ;;  %s15829_s22 = smov [#allocation5]  }
  0x16   : > { %p15988_p10 = pnand %p14217_p7, %p426_p8  ;;  %s469_s23 = sshll.u32 %s15829_s22, 4  ;;  %s470_s23 = int_to_ptr.vmem [resolvable:$true] %s469_s23 }
  0x17   : > { %s15830_s30 = smov [#allocation2]   ;;  %s15831_s19 = smov [#allocation7]  }
  0x18   : > { %p15346_p11 = pneg %p15988_p10  ;;  %s447_s18 = sshll.u32 %s15830_s30, 4  ;;  %s448_s18 = int_to_ptr.vmem [resolvable:$true] %s447_s18 }
  0x19   : > { %s482_s26 = sshll.u32 %s15831_s19, 4  ;;  %s15662_s0 = scalar_lea.vmem %s470_s23, 512  ;;  %s483_s26 = int_to_ptr.vmem [resolvable:$true] %s482_s26 }
  0x1a   : > { %p15996_p12 = pnand %p15363_p9, %p15346_p11  ;;  %p15663_p0 = scmp.ne.s32.totalorder %s470_s23, %s15662_s0 }
  0x1b   : > { %p15670_p3 = scmp.lt.s32.totalorder %s470_s23, %s470_s23  ;;  %p15671_p4 = scmp.lt.s32.totalorder %s15662_s0, %s15662_s0 }
  0x1c   : > { %p15653_p13 = pneg %p15996_p12 }
  0x1d   : > { %p15672_p7 = por %p15671_p4, %p15670_p3 }
  0x1e   : > { %p15665_p1 = pnand %p15663_p0, %p15653_p13 }
  0x20   : > { %p15666_p2 = pneg %p15665_p1 }
  0x22   : > { %p15673_p8 = pnand %p15672_p7, %p15666_p2 }
  0x24   : > { %15676 = shalt.err (!%p15673_p8)
}
  0x25   : > { %s15832_s22 = smov 128   ;;  %s15833_s30 = smov 8  }
  0x26   : > { %15352 = dma.hbm_to_vmem [thread:$0]  (!%p15996_p12), %s18796_s8, 512, %s470_s23, [#allocation6], %s15832_s22, %s15832_s22, %s15833_s30  }
  0x27   : > { %s15688_s24 = scalar_lea.vmem %s448_s18, 512  ;;  %p15696_p2 = scmp.lt.s32.totalorder %s448_s18, %s448_s18 }
  0x28   : > { %p15689_p11 = scmp.ne.s32.totalorder %s448_s18, %s15688_s24  ;;  %p15697_p3 = scmp.lt.s32.totalorder %s15688_s24, %s15688_s24 }
  0x2a   : > { %p15691_p0 = pnand %p15689_p11, %p15653_p13  ;;  %p15698_p4 = por %p15697_p3, %p15696_p2 }
  0x2c   : > { %p15692_p1 = pneg %p15691_p0 }
  0x2e   : > { %p15699_p7 = pnand %p15698_p4, %p15692_p1 }
  0x30   : > { %15702 = shalt.err (!%p15699_p7)
}
  0x31   : > { %15349 = dma.hbm_to_vmem [thread:$0]  (!%p15996_p12), %s18792_s4, 512, %s448_s18, [#allocation3], %s15832_s22, %s15832_s22, %s15833_s30  }
  0x32   : > { %s15714_s20 = scalar_lea.vmem %s483_s26, 512  ;;  %p15722_p2 = scmp.lt.s32.totalorder %s483_s26, %s483_s26 }
  0x33   : > { %p15715_p8 = scmp.ne.s32.totalorder %s483_s26, %s15714_s20  ;;  %p15723_p1 = scmp.lt.s32.totalorder %s15714_s20, %s15714_s20 }
  0x35   : > { %p15717_p11 = pnand %p15715_p8, %p15653_p13  ;;  %p15724_p3 = por %p15723_p1, %p15722_p2 }
  0x37   : > { %p15718_p0 = pneg %p15717_p11 }
  0x39   : > { %p15725_p4 = pnand %p15724_p3, %p15718_p0 }
  0x3b   : > { %15728 = shalt.err (!%p15725_p4)
}
  0x3c   : > { %15355 = dma.hbm_to_vmem [thread:$0]  (!%p15996_p12), %s18797_s9, 512, %s483_s26, [#allocation6], %s15832_s22, %s15832_s22, %s15833_s30  }
  0x3d   : > { %s15834_s23 = smov [#allocation8]  }
  0x3e   : > { %s504_s18 = sshll.u32 %s15834_s23, 4  ;;  %s505_s18 = int_to_ptr.vmem [resolvable:$true] %s504_s18 }
  0x3f   : > { %s15740_s19 = scalar_lea.vmem %s505_s18, 512  ;;  %p15748_p0 = scmp.lt.s32.totalorder %s505_s18, %s505_s18 }
  0x40   : > { %p15741_p7 = scmp.ne.s32.totalorder %s505_s18, %s15740_s19  ;;  %p15749_p2 = scmp.lt.s32.totalorder %s15740_s19, %s15740_s19 }
  0x42   : > { %p15743_p8 = pnand %p15741_p7, %p15653_p13  ;;  %p15750_p1 = por %p15749_p2, %p15748_p0 }
  0x44   : > { %p15744_p11 = pneg %p15743_p8 }
  0x46   : > { %p15751_p3 = pnand %p15750_p1, %p15744_p11 }
  0x48   : > { %15754 = shalt.err (!%p15751_p3)
}
  0x49   : > { %15358 = dma.hbm_to_vmem [thread:$0]  (!%p15996_p12), %s18801_s13, 512, %s505_s18, [#allocation9], %s15832_s22, %s15832_s22, %s15833_s30  }
  0x4a   : > { %537 = sbr.rel (%p15988_p10) target bundleno = 4342 (0x10f6), region = 88 }
  0x4f   : > { %15798 = dma.done.wait (%p15363_p9), [#allocation3], 512  }
  0x50   : > { %15800 = vsyncadd (%p15363_p9), [#allocation3], 4294966784 }
  0x51   : > { %15802 = dma.done.wait (%p15363_p9), [#allocation6], 1024  }
  0x52   : > { %15804 = vsyncadd (%p15363_p9), [#allocation6], 4294966272 }
  0x53   : > { %15806 = dma.done.wait (%p15363_p9), [#allocation9], 512  }
  0x54   : > { %15808 = vsyncadd (%p15363_p9), [#allocation9], 4294966784  ;;  %p601_p10 = scmp.lt.s32.totalorder %s15960_s28, 1  ;;  %s18834_s20 = sld [smem:[#allocation28_spill]]  ;;  %vm621_vm0 = vcmask 261120   ;;  %v615_v28 = vld [vmem:[%s18791_s3 + $0x18] sm:$0xff] }
  0x55   : > { %v614_v29 = vld [vmem:[%s18791_s3 + $0x10] sm:$0xff]  ;;  %14756 = vmatprep.subr.mxu0 %v615_v28  ;;  %v613_v30 = vld [vmem:[%s18791_s3 + $0x8] sm:$0xff]  ;;  %v612_v31 = vld [vmem:[%s18791_s3] sm:$0xff]  ;;  %s15835_s18 = smov 112   ;;  %s15836_s19 = smov 120   ;;  %vm15840_vm1 = vmmov 0  }
  0x56   : > { %s602_s21 = scalar_select %p601_p10, %s15960_s28, 1  ;;  %14757 = vmatpush3.msra.mxu0 %v615_v28  ;;  %v14232_v47 = vld [vmem:[%s18790_s2] ss:$0 sm:$0xff]  ;;  %vm2592_vm2 = vcmask 64512   ;;  %vm5749_vm3 = vcmask 130048   ;;  %vm5754_vm4 = vcmask 195584  }
  0x57   : > { %14758 = vmatprep.subr.mxu0 %v614_v29  ;;  %s15837_s26 = smov 104   ;;  %s15838_s0 = smov 96   ;;  %vm10278_vm5 = vcmask 27648   ;;  %vm10571_vm6 = vcmask 1043456   ;;  %vm10567_vm7 = vcmask 31744   ;;  %vm13993_vm8 = vcmask 523264  }
  0x58   : > { %s14510_s29 = sshll.u32 %s602_s21, 5  ;;  %14759 = vmatpush3.msra.mxu0 %v614_v29  ;;  %s15841_s21 = smov 64  }
  0x59   : > { %14760 = vmatprep.subr.mxu0 %v613_v30  ;;  %s15845_s22 = smov 8   ;;  %s15846_s30 = smov 24  }
  0x5a   : > { %s16065_s24 = scalar_lea.vmem %s18834_s20, %s14510_s29  ;;  %14761 = vmatpush3.msra.mxu0 %v613_v30  ;;  %s18835_s20 = sld [smem:[#allocation29_spill]] }
  0x5b   : > { %v606_v0 = vld [vmem:[%s16065_s24] sm:$0xff]  ;;  %v608_v1 = vld [vmem:[%s16065_s24 + $0x10] sm:$0xff]  ;;  %v607_v2 = vld [vmem:[%s16065_s24 + $0x8] sm:$0xff]  ;;  %14762 = vmatprep.subr.mxu0 %v612_v31  ;;  %s15844_s29 = smov 16   ;;  %s14511_s23 = sshll.u32 %s15960_s28, 9 }
  0x5c   : > { %v622_v3 = vsel %vm621_vm0, %v606_v0, 0.0  ;;  %v628_v4 = vsel %vm621_vm0, %v608_v1, 0.0  ;;  %v609_v5 = vld [vmem:[%s16065_s24 + $0x18] sm:$0xff]  ;;  %v625_v6 = vsel %vm621_vm0, %v607_v2, 0.0  ;;  %14763 = vmatpush3.msra.mxu0 %v612_v31  ;;  %v15843_v31 = vmov 1934713408  }
  0x5d   : > { %623 = vadd.xlane.f32.xlu0 %v622_v3  ;;  %629 = vadd.xlane.f32.xlu1 %v628_v4  ;;  %v631_v7 = vsel %vm621_vm0, %v609_v5, 0.0 }
  0x60   : > { %v14231_v45 = vld [vmem:[%s18835_s20] ss:$0 sm:$0xff] }
  0x61   : > { %626 = vadd.xlane.f32.xlu0 %v625_v6  ;;  %632 = vadd.xlane.f32.xlu1 %v631_v7 }
  0xe6   : > { %v624_v8 = vpop.xlane.xlu0 %623  ;;  %v630_v9 = vpop.xlane.xlu1 %629 }
  0xe7   : > { %v635_v10 = vmul.f32 0.03125, %v624_v8  ;;  %v637_v11 = vmul.f32 0.03125, %v630_v9 }
  0xe9   : > { %v639_v12 = vsub.f32 %v606_v0, %v635_v10  ;;  %v641_v13 = vsub.f32 %v608_v1, %v637_v11 }
  0xea   : > { %v627_v14 = vpop.xlane.xlu0 %626  ;;  %v633_v15 = vpop.xlane.xlu1 %632 }
  0xeb   : > { %v636_v16 = vmul.f32 0.03125, %v627_v14  ;;  %v638_v17 = vmul.f32 0.03125, %v633_v15  ;;  %v643_v18 = vmul.f32 %v639_v12, %v639_v12  ;;  %v645_v19 = vmul.f32 %v641_v13, %v641_v13 }
  0xed   : > { %v640_v20 = vsub.f32 %v607_v2, %v636_v16  ;;  %v642_v21 = vsub.f32 %v609_v5, %v638_v17  ;;  %v647_v22 = vsel %vm621_vm0, %v643_v18, 0.0  ;;  %v653_v23 = vsel %vm621_vm0, %v645_v19, 0.0 }
  0xee   : > { %648 = vadd.xlane.f32.xlu0 %v647_v22 }
  0xef   : > { %v644_v24 = vmul.f32 %v640_v20, %v640_v20  ;;  %v646_v25 = vmul.f32 %v642_v21, %v642_v21 }
  0xf1   : > { %v650_v26 = vsel %vm621_vm0, %v644_v24, 0.0  ;;  %v656_v27 = vsel %vm621_vm0, %v646_v25, 0.0  ;;  %v841_v25 = vlaneseq }
  0xf2   : > { %654 = vadd.xlane.f32.xlu0 %v653_v23  ;;  %651 = vadd.xlane.f32.xlu1 %v650_v26  ;;  %v15842_v23 = vmov 1983009808  }
  0xf3   : > { %v839_v24 = vunpack.c.l.s4 %v15842_v23 }
  0xf5   : > { %v840_v26 = vunpack.c.0.s8 %v839_v24 }
  0xf6   : > { %657 = vadd.xlane.f32.xlu1 %v656_v27  ;;  %v842_v27 = vshrl.u32 %v841_v25, 7 }
  0xf8   : > { %v16223_v30 = vsub.s32 %v840_v26, %v842_v27 }
 0x177   : > { %v649_v32 = vpop.xlane.xlu0 %648 }
 0x178   : > { %v659_v33 = vmul.f32 0.03125, %v649_v32  ;;  %v871_v32 = vunpack.c.l.s4 %v15843_v31 }
 0x17a   : > { %v663_v34 = vadd.f32 1e-05, %v659_v33 }
 0x17b   : > { %v652_v35 = vpop.xlane.xlu1 %651  ;;  %v655_v36 = vpop.xlane.xlu0 %654 }
 0x17c   : > { %15423 = vrsqrt.f32 %v663_v34  ;;  %v660_v37 = vmul.f32 0.03125, %v652_v35  ;;  %v661_v38 = vmul.f32 0.03125, %v655_v36 }
 0x17e   : > { %v664_v39 = vadd.f32 1e-05, %v660_v37  ;;  %v665_v40 = vadd.f32 1e-05, %v661_v38  ;;  %v872_v38 = vunpack.c.0.s8 %v871_v32 }
 0x17f   : > { %v658_v41 = vpop.xlane.xlu1 %657 }
 0x180   : > { %15425 = vrsqrt.f32 %v664_v39  ;;  %v662_v42 = vmul.f32 0.03125, %v658_v41 }
 0x181   : > { %15427 = vrsqrt.f32 %v665_v40 }
 0x182   : > { %v666_v43 = vadd.f32 1e-05, %v662_v42 }
 0x184   : > { %15429 = vrsqrt.f32 %v666_v43 }
 0x189   : > { %v15424_v44 = vpop.eup %15423 }
 0x18a   : > { %v671_v46 = vmul.f32 %v15424_v44, %v639_v12  ;;  %v18812_v12 = vmov 0.0  }
 0x18b   : > { %14770 = vmatprep.subr.mxu0 %v18812_v12  ;;  %14775 = vmatprep.subr.mxu1 %v18812_v12 }
 0x18c   : > { %v681_v48 = vmul.f32 %v14231_v45, %v671_v46  ;;  %14777 = vmatprep.mubr.msk.f32.mxu1 %vm15840_vm1, %v18812_v12  ;;  %v16231_v46 = vsub.s32 %v872_v38, %v842_v27 }
 0x18d   : > { %v15426_v49 = vpop.eup %15425 }
 0x18e   : > { %v15428_v50 = vpop.eup %15427  ;;  %v691_v51 = vadd.f32 %v14232_v47, %v681_v48  ;;  %v672_v52 = vmul.f32 %v15426_v49, %v640_v20 }
 0x18f   : > { %v673_v53 = vmul.f32 %v15428_v50, %v641_v13 }
 0x190   : > { %14764 = vmatprep.mubr.msk.f32.mxu0 %vm621_vm0, %v691_v51  ;;  %v682_v54 = vmul.f32 %v14231_v45, %v672_v52 }
 0x191   : > { %v15430_v55 = vpop.eup %15429  ;;  %v683_v56 = vmul.f32 %v14231_v45, %v673_v53 }
 0x192   : > { %v692_v57 = vadd.f32 %v14232_v47, %v682_v54  ;;  %v674_v58 = vmul.f32 %v15430_v55, %v642_v21 }
 0x193   : > { %v693_v59 = vadd.f32 %v14232_v47, %v683_v56 }
 0x194   : > { %14765 = vmatmul.mubr.msk.f32.vlgmr.msra.gmra.mxu0 %vm621_vm0, %v692_v57  ;;  %v684_v60 = vmul.f32 %v14231_v45, %v674_v58 }
 0x195   : > { %14767 = vmatprep.mubr.msk.f32.mxu0 %vm621_vm0, %v693_v59 }
 0x196   : > { %v694_v61 = vadd.f32 %v14232_v47, %v684_v60 }
 0x198   : > { %14768 = vmatmul.mubr.msk.f32.gmra.mxu0 %vm621_vm0, %v694_v61 }
 0x199   : > { %14772 = vmatprep.mubr.msk.f32.mxu0 %vm15840_vm1, %v18812_v12 }
 0x254   : > { %v16101_v62 = vpop.f32.mrf.mxu0 }
 0x255   : > { %v16145_v3 = vmul.f32 0.35355338, %v16101_v62 }
 0x256   : > { %v16103_v63 = vpop.f32.mrf.mxu0 }
 0x257   : > { %1392 = vrot.lane.b32.xlu1 %v16103_v63, %s15835_s18  ;;  %1384 = vrot.lane.b32.xlu0 %v16103_v63, %s15836_s19  ;;  %v16134_v2 = vmul.f32 0.35355338, %v16103_v63 }
 0x258   : > { %v16109_v0 = vpop.f32.mrf.mxu0 }
 0x259   : > { %v16188_v17 = vmul.f32 0.35355338, %v16109_v0 }
 0x25a   : > { %v16115_v1 = vpop.f32.mrf.mxu0 }
 0x25b   : > { %1400 = vrot.lane.b32.xlu1 %v16103_v63, %s15837_s26  ;;  %1394 = vrot.lane.b32.xlu0 %v16101_v62, %s15835_s18  ;;  %v16161_v10 = vmul.f32 0.35355338, %v16115_v1 }
 0x25f   : > { %1386 = vrot.lane.b32.xlu1 %v16101_v62, %s15836_s19  ;;  %1388 = vrot.lane.b32.xlu0 %v16115_v1, %s15836_s19 }
 0x263   : > { %1402 = vrot.lane.b32.xlu1 %v16101_v62, %s15837_s26  ;;  %1404 = vrot.lane.b32.xlu0 %v16115_v1, %s15837_s26 }
 0x267   : > { %1396 = vrot.lane.b32.xlu1 %v16115_v1, %s15835_s18  ;;  %1398 = vrot.lane.b32.xlu0 %v16109_v0, %s15835_s18 }
 0x26b   : > { %1390 = vrot.lane.b32.xlu1 %v16109_v0, %s15836_s19  ;;  %1408 = vrot.lane.b32.xlu0 %v16103_v63, %s15838_s0 }
 0x26f   : > { %1406 = vrot.lane.b32.xlu1 %v16109_v0, %s15837_s26  ;;  %800 = vrot.lane.b32.xlu0 %v16134_v2, %s15836_s19 }
 0x273   : > { %812 = vrot.lane.b32.xlu1 %v16134_v2, %s15835_s18  ;;  %824 = vrot.lane.b32.xlu0 %v16134_v2, %s15837_s26 }
 0x277   : > { %1410 = vrot.lane.b32.xlu1 %v16101_v62, %s15838_s0  ;;  %814 = vrot.lane.b32.xlu0 %v16145_v3, %s15835_s18 }
 0x27b   : > { %802 = vrot.lane.b32.xlu1 %v16145_v3, %s15836_s19 }
 0x27f   : > { %826 = vrot.lane.b32.xlu1 %v16145_v3, %s15837_s26 }
 0x2c9   : > { %v1393_v4 = vpop.permute.xlu1 %1392  ;;  %v1385_v5 = vpop.permute.xlu0 %1384 }
 0x2cd   : > { %v1401_v6 = vpop.permute.xlu1 %1400  ;;  %v1395_v7 = vpop.permute.xlu0 %1394 }
 0x2ce   : > { %1426 = vrot.lane.b32.xlu1 %v1395_v7, %s15838_s0 }
 0x2d1   : > { %v1387_v8 = vpop.permute.xlu1 %1386  ;;  %v1389_v11 = vpop.permute.xlu0 %1388 }
 0x2d2   : > { %1418 = vrot.lane.b32.xlu0 %v1387_v8, %s15838_s0  ;;  %1416 = vrot.lane.b32.xlu1 %v1385_v5, %s15838_s0 }
 0x2d5   : > { %v1403_v9 = vpop.permute.xlu1 %1402  ;;  %v1405_v13 = vpop.permute.xlu0 %1404 }
 0x2d6   : > { %1434 = vrot.lane.b32.xlu0 %v1403_v9, %s15838_s0  ;;  %1432 = vrot.lane.b32.xlu1 %v1401_v6, %s15838_s0 }
 0x2d9   : > { %v1397_v14 = vpop.permute.xlu1 %1396  ;;  %v16182_v15 = vpop.permute.xlu0 %1398 }
 0x2da   : > { %1424 = vrot.lane.b32.xlu0 %v1393_v4, %s15838_s0  ;;  %816 = vrot.lane.b32.xlu1 %v16161_v10, %s15835_s18 }
 0x2dd   : > { %v1391_v16 = vpop.permute.xlu1 %1390  ;;  %v16218_v20 = vpop.permute.xlu0 %1408 }
 0x2de   : > { %1412 = vrot.lane.b32.xlu0 %v16115_v1, %s15838_s0  ;;  %1414 = vrot.lane.b32.xlu1 %v16109_v0, %s15838_s0 }
 0x2e1   : > { %v16193_v18 = vpop.permute.xlu1 %1406  ;;  %v801_v22 = vpop.permute.xlu0 %800 }
 0x2e2   : > { %804 = vrot.lane.b32.xlu0 %v16161_v10, %s15836_s19  ;;  %1420 = vrot.lane.b32.xlu1 %v1389_v11, %s15838_s0 }
 0x2e5   : > { %v813_v19 = vpop.permute.xlu1 %812  ;;  %v825_v29 = vpop.permute.xlu0 %824 }
 0x2e6   : > { %828 = vrot.lane.b32.xlu0 %v16161_v10, %s15837_s26  ;;  %1436 = vrot.lane.b32.xlu1 %v1405_v13, %s15838_s0  ;;  %v836_v33 = vcombine.low %v16134_v2, %v813_v19  ;;  %v837_v34 = vcombine.high %v16134_v2, %v813_v19  ;;  %v852_v35 = vcombine.low %v801_v22, %v825_v29 }
 0x2e7   : > { %v853_v36 = vcombine.high %v801_v22, %v825_v29 }
 0x2e8   : > { %v844_v39 = vrot.slane %v836_v33, %v16223_v30  ;;  %v851_v40 = vrot.slane %v837_v34, %v16223_v30  ;;  %v860_v41 = vrot.slane %v852_v35, %v16223_v30 }
 0x2e9   : > { %v16221_v21 = vpop.permute.xlu1 %1410  ;;  %v867_v42 = vrot.slane %v853_v36, %v16223_v30  ;;  %v815_v43 = vpop.permute.xlu0 %814 }
 0x2ea   : > { %1428 = vrot.lane.b32.xlu0 %v1397_v14, %s15838_s0  ;;  %1430 = vrot.lane.b32.xlu1 %v16182_v15, %s15838_s0  ;;  %v904_v47 = vcombine.low %v16145_v3, %v815_v43  ;;  %v905_v48 = vcombine.high %v16145_v3, %v815_v43  ;;  %v868_v49 = vcombine.low %v844_v39, %v860_v41 }
 0x2eb   : > { %v869_v50 = vcombine.high %v844_v39, %v860_v41  ;;  %v884_v51 = vcombine.low %v851_v40, %v867_v42  ;;  %v885_v52 = vcombine.high %v851_v40, %v867_v42 }
 0x2ec   : > { %v912_v55 = vrot.slane %v904_v47, %v16223_v30  ;;  %v919_v56 = vrot.slane %v905_v48, %v16223_v30  ;;  %v876_v57 = vrot.slane %v868_v49, %v16231_v46 }
 0x2ed   : > { %v803_v28 = vpop.permute.xlu1 %802  ;;  %v883_v58 = vrot.slane %v869_v50, %v16231_v46  ;;  %v892_v59 = vrot.slane %v884_v51, %v16231_v46  ;;  %v899_v60 = vrot.slane %v885_v52, %v16231_v46 }
 0x2ee   : > { %1422 = vrot.lane.b32.xlu0 %v1391_v16, %s15838_s0  ;;  %806 = vrot.lane.b32.xlu1 %v16188_v17, %s15836_s19 }
 0x2ef   : > { %v14237_v2 = vcombine.high %v876_v57, %v883_v58  ;;  %v1124_v3 = vcombine.low %v892_v59, %v899_v60 }
 0x2f1   : > { %v827_v37 = vpop.permute.xlu1 %826 }
 0x2f2   : > { %1438 = vrot.lane.b32.xlu0 %v16193_v18, %s15838_s0  ;;  %830 = vrot.lane.b32.xlu1 %v16188_v17, %s15837_s26  ;;  %v920_v44 = vcombine.low %v803_v28, %v827_v37  ;;  %v921_v45 = vcombine.high %v803_v28, %v827_v37 }
 0x2f4   : > { %v928_v53 = vrot.slane %v920_v44, %v16223_v30  ;;  %v935_v54 = vrot.slane %v921_v45, %v16223_v30 }
 0x2f6   : > { %818 = vrot.lane.b32.xlu0 %v16188_v17, %s15835_s18  ;;  %2008 = vrot.lane.b32.xlu1 %v1385_v5, %s15841_s21  ;;  %v936_v61 = vcombine.low %v912_v55, %v928_v53 }
 0x2f8   : > { %v944_v5 = vrot.slane %v936_v61, %v16231_v46 }
 0x2fa   : > { %2000 = vrot.lane.b32.xlu0 %v16103_v63, %s15841_s21  ;;  %2016 = vrot.lane.b32.xlu1 %v1393_v4, %s15841_s21  ;;  %v952_v63 = vcombine.low %v919_v56, %v935_v54  ;;  %v14238_v4 = vcombine.high %v892_v59, %v899_v60 }
 0x2fe   : > { %2002 = vrot.lane.b32.xlu0 %v16101_v62, %s15841_s21  ;;  %2024 = vrot.lane.b32.xlu1 %v1401_v6, %s15841_s21  ;;  %v937_v62 = vcombine.high %v912_v55, %v928_v53 }
 0x300   : > { %v951_v6 = vrot.slane %v937_v62, %v16231_v46 }
 0x302   : > { %2004 = vrot.lane.b32.xlu0 %v16115_v1, %s15841_s21  ;;  %2010 = vrot.lane.b32.xlu1 %v1387_v8, %s15841_s21  ;;  %v1108_v1 = vcombine.low %v876_v57, %v883_v58  ;;  %v14239_v19 = vcombine.high %v944_v5, %v951_v6 }
 0x304   : > { %v1191_v31 = vrot.slane %v14239_v19, %v16223_v30 }
 0x306   : > { %2006 = vrot.lane.b32.xlu0 %v16109_v0, %s15841_s21  ;;  %2018 = vrot.lane.b32.xlu1 %v1395_v7, %s15841_s21  ;;  %v953_v0 = vcombine.high %v919_v56, %v935_v54  ;;  %v960_v7 = vrot.slane %v952_v63, %v16231_v46 }
 0x308   : > { %v967_v8 = vrot.slane %v953_v0, %v16231_v46 }
 0x30a   : > { %2026 = vrot.lane.b32.xlu1 %v1403_v9, %s15841_s21  ;;  %v1115_v9 = vrot.slane %v1108_v1, %v16223_v30  ;;  %v1192_v22 = vcombine.low %v960_v7, %v967_v8  ;;  %v14240_v23 = vcombine.high %v960_v7, %v967_v8 }
 0x30c   : > { %v1199_v32 = vrot.slane %v1192_v22, %v16223_v30  ;;  %v1207_v33 = vrot.slane %v14240_v23, %v16223_v30 }
 0x30e   : > { %2014 = vrot.lane.b32.xlu1 %v1391_v16, %s15841_s21  ;;  %v1176_v16 = vcombine.low %v944_v5, %v951_v6  ;;  %v1224_v39 = vcombine.low %v1199_v32, %v1207_v33  ;;  %v1225_v45 = vcombine.high %v1199_v32, %v1207_v33 }
 0x310   : > { %v1183_v29 = vrot.slane %v1176_v16, %v16223_v30  ;;  %v16281_v55 = vrot.slane %v1224_v39, %v16231_v46  ;;  %v16293_v1 = vrot.slane %v1225_v45, %v16231_v46 }
 0x312   : > { %2012 = vrot.lane.b32.xlu1 %v1389_v11, %s15841_s21  ;;  %v1123_v11 = vrot.slane %v14237_v2, %v16223_v30  ;;  %v1208_v38 = vcombine.low %v1183_v29, %v1191_v31  ;;  %v1209_v44 = vcombine.high %v1183_v29, %v1191_v31 }
 0x314   : > { %v1140_v25 = vcombine.low %v1115_v9, %v1123_v11  ;;  %v1141_v26 = vcombine.high %v1115_v9, %v1123_v11  ;;  %v16290_v0 = vrot.slane %v1209_v44, %v16231_v46 }
 0x316   : > { %2020 = vrot.lane.b32.xlu1 %v1397_v14, %s15841_s21  ;;  %v1139_v14 = vrot.slane %v14238_v4, %v16223_v30  ;;  %v16256_v36 = vrot.slane %v1140_v25, %v16231_v46  ;;  %v16262_v40 = vrot.slane %v1141_v26, %v16231_v46 }
 0x31a   : > { %2028 = vrot.lane.b32.xlu1 %v1405_v13, %s15841_s21  ;;  %v1131_v13 = vrot.slane %v1124_v3, %v16223_v30 }
 0x31c   : > { %v1156_v27 = vcombine.low %v1131_v13, %v1139_v14  ;;  %v1157_v28 = vcombine.high %v1131_v13, %v1139_v14 }
 0x31e   : > { %v16259_v37 = vrot.slane %v1156_v27, %v16231_v46  ;;  %v16265_v41 = vrot.slane %v1157_v28, %v16231_v46 }
 0x320   : > { %v1172_v51 = vcombine.low %v16256_v36, %v16259_v37  ;;  %v1173_v52 = vcombine.high %v16256_v36, %v16259_v37  ;;  %v1174_v53 = vcombine.low %v16262_v40, %v16265_v41  ;;  %v1175_v54 = vcombine.high %v16262_v40, %v16265_v41 }
 0x340   : > { %v1427_v24 = vpop.permute.xlu1 %1426 }
 0x341   : > { %v1524_v42 = vcombine.low %v16221_v21, %v1427_v24  ;;  %v1525_v43 = vcombine.high %v16221_v21, %v1427_v24  ;;  %v16278_v21 = vrot.slane %v1208_v38, %v16231_v46 }
 0x343   : > { %v1532_v56 = vrot.slane %v1524_v42, %v16223_v30  ;;  %v1539_v57 = vrot.slane %v1525_v43, %v16223_v30  ;;  %v1240_v8 = vcombine.low %v16278_v21, %v16281_v55  ;;  %v1241_v9 = vcombine.high %v16278_v21, %v16281_v55 }
 0x344   : > { %v1417_v34 = vpop.permute.xlu1 %1416  ;;  %v1419_v35 = vpop.permute.xlu0 %1418 }
 0x348   : > { %v1433_v47 = vpop.permute.xlu1 %1432  ;;  %v1435_v48 = vpop.permute.xlu0 %1434 }
 0x349   : > { %v1540_v49 = vcombine.low %v1419_v35, %v1435_v48  ;;  %v1541_v50 = vcombine.high %v1419_v35, %v1435_v48  ;;  %v1472_v60 = vcombine.low %v1417_v34, %v1433_v47  ;;  %v1473_v61 = vcombine.high %v1417_v34, %v1433_v47 }
 0x34b   : > { %v1548_v58 = vrot.slane %v1540_v49, %v16223_v30  ;;  %v1555_v59 = vrot.slane %v1541_v50, %v16223_v30  ;;  %v1480_v19 = vrot.slane %v1472_v60, %v16223_v30  ;;  %v1487_v22 = vrot.slane %v1473_v61, %v16223_v30 }
 0x34c   : > { %v16287_v62 = vpop.permute.xlu1 %816  ;;  %v1425_v63 = vpop.permute.xlu0 %1424 }
 0x34d   : > { %v1556_v2 = vcombine.low %v1532_v56, %v1548_v58  ;;  %v1557_v3 = vcombine.high %v1532_v56, %v1548_v58  ;;  %v1572_v4 = vcombine.low %v1539_v57, %v1555_v59  ;;  %v1573_v5 = vcombine.high %v1539_v57, %v1555_v59 }
 0x34e   : > { %v1456_v6 = vcombine.low %v16218_v20, %v1425_v63  ;;  %v1457_v7 = vcombine.high %v16218_v20, %v1425_v63  ;;  %v972_v57 = vcombine.low %v16161_v10, %v16287_v62  ;;  %v973_v58 = vcombine.high %v16161_v10, %v16287_v62 }
 0x34f   : > { %v1564_v11 = vrot.slane %v1556_v2, %v16231_v46  ;;  %v1571_v13 = vrot.slane %v1557_v3, %v16231_v46  ;;  %v1580_v14 = vrot.slane %v1572_v4, %v16231_v46  ;;  %v1587_v16 = vrot.slane %v1573_v5, %v16231_v46 }
 0x350   : > { %v1464_v20 = vrot.slane %v1456_v6, %v16223_v30  ;;  %v1471_v23 = vrot.slane %v1457_v7, %v16223_v30  ;;  %v16309_v24 = vpop.permute.xlu1 %1414  ;;  %v16311_v25 = vpop.permute.xlu0 %1412 }
 0x351   : > { %v1796_v26 = vcombine.low %v1564_v11, %v1571_v13  ;;  %v14247_v27 = vcombine.high %v1564_v11, %v1571_v13  ;;  %v1812_v28 = vcombine.low %v1580_v14, %v1587_v16  ;;  %v14248_v29 = vcombine.high %v1580_v14, %v1587_v16 }
 0x352   : > { %v1488_v31 = vcombine.low %v1464_v20, %v1480_v19  ;;  %v1489_v32 = vcombine.high %v1464_v20, %v1480_v19  ;;  %v1504_v33 = vcombine.low %v1471_v23, %v1487_v22  ;;  %v1505_v34 = vcombine.high %v1471_v23, %v1487_v22 }
 0x353   : > { %v1803_v35 = vrot.slane %v1796_v26, %v16223_v30  ;;  %v1811_v38 = vrot.slane %v14247_v27, %v16223_v30  ;;  %v1819_v39 = vrot.slane %v1812_v28, %v16223_v30  ;;  %v1827_v42 = vrot.slane %v14248_v29, %v16223_v30 }
 0x354   : > { %v1496_v43 = vrot.slane %v1488_v31, %v16231_v46  ;;  %v1503_v44 = vrot.slane %v1489_v32, %v16231_v46  ;;  %v1512_v45 = vrot.slane %v1504_v33, %v16231_v46  ;;  %v1519_v47 = vrot.slane %v1505_v34, %v16231_v46  ;;  %v1421_v48 = vpop.permute.xlu1 %1420  ;;  %v805_v49 = vpop.permute.xlu0 %804 }
 0x355   : > { %v1828_v50 = vcombine.low %v1803_v35, %v1811_v38  ;;  %v1844_v56 = vcombine.low %v1819_v39, %v1827_v42  ;;  %v1829_v2 = vcombine.high %v1803_v35, %v1811_v38  ;;  %v1845_v3 = vcombine.high %v1819_v39, %v1827_v42 }
 0x356   : > { %v1728_v59 = vcombine.low %v1496_v43, %v1503_v44  ;;  %v14245_v60 = vcombine.high %v1496_v43, %v1503_v44  ;;  %v1744_v61 = vcombine.low %v1512_v45, %v1519_v47  ;;  %v14246_v63 = vcombine.high %v1512_v45, %v1519_v47 }
 0x357   : > { %v16326_v4 = vrot.slane %v1828_v50, %v16231_v46  ;;  %v16329_v5 = vrot.slane %v1844_v56, %v16231_v46  ;;  %v1242_v19 = vcombine.low %v16290_v0, %v16293_v1  ;;  %v1243_v22 = vcombine.high %v16290_v0, %v16293_v1 }
 0x358   : > { %v1735_v6 = vrot.slane %v1728_v59, %v16223_v30  ;;  %v1743_v7 = vrot.slane %v14245_v60, %v16223_v30  ;;  %v1751_v11 = vrot.slane %v1744_v61, %v16223_v30  ;;  %v1759_v10 = vrot.slane %v14246_v63, %v16223_v30  ;;  %v829_v62 = vpop.permute.xlu0 %828  ;;  %v1437_v13 = vpop.permute.xlu1 %1436 }
 0x359   : > { %v988_v14 = vcombine.low %v805_v49, %v829_v62  ;;  %v989_v16 = vcombine.high %v805_v49, %v829_v62  ;;  %v980_v20 = vrot.slane %v972_v57, %v16223_v30  ;;  %v987_v23 = vrot.slane %v973_v58, %v16223_v30 }
 0x35a   : > { %v1760_v26 = vcombine.low %v1735_v6, %v1743_v7  ;;  %v1776_v27 = vcombine.low %v1751_v11, %v1759_v10  ;;  %v16344_v31 = vrot.slane %v1829_v2, %v16231_v46  ;;  %v16347_v32 = vrot.slane %v1845_v3, %v16231_v46 }
 0x35b   : > { %v996_v28 = vrot.slane %v988_v14, %v16223_v30  ;;  %v1003_v29 = vrot.slane %v989_v16, %v16223_v30  ;;  %v1608_v33 = vcombine.low %v1421_v48, %v1437_v13  ;;  %v1609_v34 = vcombine.high %v1421_v48, %v1437_v13 }
 0x35c   : > { %v1429_v35 = vpop.permute.xlu0 %1428  ;;  %v1860_v38 = vcombine.low %v16326_v4, %v16329_v5  ;;  %v1861_v39 = vcombine.high %v16326_v4, %v16329_v5  ;;  %v1761_v42 = vcombine.high %v1735_v6, %v1743_v7  ;;  %v1777_v43 = vcombine.high %v1751_v11, %v1759_v10  ;;  %v1431_v47 = vpop.permute.xlu1 %1430 }
 0x35d   : > { %v1004_v44 = vcombine.low %v980_v20, %v996_v28  ;;  %v1005_v45 = vcombine.high %v980_v20, %v996_v28  ;;  %v1020_v49 = vcombine.low %v987_v23, %v1003_v29  ;;  %v1021_v50 = vcombine.high %v987_v23, %v1003_v29 }
 0x35e   : > { %v1768_v56 = vrot.slane %v1760_v26, %v16231_v46  ;;  %v1784_v57 = vrot.slane %v1776_v27, %v16231_v46  ;;  %v1592_v59 = vcombine.low %v16311_v25, %v1429_v35  ;;  %v1593_v60 = vcombine.high %v16311_v25, %v1429_v35 }
 0x35f   : > { %v1012_v48 = vrot.slane %v1004_v44, %v16231_v46  ;;  %v1019_v58 = vrot.slane %v1005_v45, %v16231_v46  ;;  %v1616_v61 = vrot.slane %v1608_v33, %v16223_v30  ;;  %v1623_v63 = vrot.slane %v1609_v34, %v16223_v30 }
 0x360   : > { %v1660_v2 = vcombine.low %v16309_v24, %v1431_v47  ;;  %v1661_v3 = vcombine.high %v16309_v24, %v1431_v47  ;;  %v1423_v6 = vpop.permute.xlu0 %1422  ;;  %v1028_v7 = vrot.slane %v1020_v49, %v16231_v46  ;;  %v1035_v11 = vrot.slane %v1021_v50, %v16231_v46  ;;  %v807_v13 = vpop.permute.xlu1 %806 }
 0x361   : > { %v1600_v10 = vrot.slane %v1592_v59, %v16223_v30  ;;  %v1607_v62 = vrot.slane %v1593_v60, %v16223_v30  ;;  %v1244_v14 = vcombine.low %v1012_v48, %v1019_v58  ;;  %v14241_v25 = vcombine.high %v1012_v48, %v1019_v58 }
 0x362   : > { %v1792_v16 = vcombine.low %v1768_v56, %v1784_v57  ;;  %v1793_v20 = vcombine.high %v1768_v56, %v1784_v57  ;;  %v1775_v27 = vrot.slane %v1761_v42, %v16231_v46  ;;  %v1791_v24 = vrot.slane %v1777_v43, %v16231_v46 }
 0x363   : > { %v1624_v23 = vcombine.low %v1600_v10, %v1616_v61  ;;  %v1625_v26 = vcombine.high %v1600_v10, %v1616_v61  ;;  %v1668_v28 = vrot.slane %v1660_v2, %v16223_v30  ;;  %v16371_v29 = vrot.slane %v1661_v3, %v16223_v30 }
 0x364   : > { %v1640_v33 = vcombine.low %v1607_v62, %v1623_v63  ;;  %v1641_v34 = vcombine.high %v1607_v62, %v1623_v63  ;;  %14771 = vmatpush3.xpose.msk.msra.mxu0 %vm2592_vm2, %v1792_v16  ;;  %v1439_v35 = vpop.permute.xlu0 %1438  ;;  %v1260_v44 = vcombine.low %v1028_v7, %v1035_v11  ;;  %v14242_v45 = vcombine.high %v1028_v7, %v1035_v11  ;;  %v831_v42 = vpop.permute.xlu1 %830 }
 0x365   : > { %v1632_v47 = vrot.slane %v1624_v23, %v16231_v46  ;;  %v1639_v49 = vrot.slane %v1625_v26, %v16231_v46  ;;  %14776 = vmatpush3.xpose.msk.msra.mxu1 %vm2592_vm2, %v1793_v20  ;;  %v16378_v43 = vrot.slane %v1244_v14, %v16223_v30  ;;  %v16381_v50 = vrot.slane %v14241_v25, %v16223_v30 }
 0x366   : > { %v1648_v56 = vrot.slane %v1640_v33, %v16231_v46  ;;  %v1655_v57 = vrot.slane %v1641_v34, %v16231_v46  ;;  %14780 = vmatprep.subr.mxu1 %v18812_v12  ;;  %14785 = vmatprep.subr.mxu0 %v18812_v12  ;;  %v1794_v59 = vcombine.low %v1775_v27, %v1791_v24 }
 0x367   : > { %v1864_v48 = vcombine.low %v1632_v47, %v1639_v49  ;;  %v14249_v58 = vcombine.high %v1632_v47, %v1639_v49  ;;  %14773 = vmatmul.mubr.msk.f32.vlgmr.msra.gmra.mxu0 %vm2592_vm2, %v1172_v51  ;;  %v1795_v63 = vcombine.high %v1775_v27, %v1791_v24  ;;  %v1056_v2 = vcombine.low %v807_v13, %v831_v42 }
 0x368   : > { %v1880_v60 = vcombine.low %v1648_v56, %v1655_v57  ;;  %v14250_v61 = vcombine.high %v1648_v56, %v1655_v57  ;;  %14778 = vmatmul.mubr.msk.f32.vlgmr.msra.gmra.mxu1 %vm2592_vm2, %v1173_v52  ;;  %v16396_v3 = vrot.slane %v1260_v44, %v16223_v30  ;;  %v16399_v7 = vrot.slane %v14242_v45, %v16223_v30  ;;  %v819_v62 = vpop.permute.xlu0 %818  ;;  %v16431_v26 = vpop.permute.xlu1 %2008 }
 0x369   : > { %14781 = vmatpush3.xpose.msk.msra.mxu1 %vm2592_vm2, %v1794_v59  ;;  %v1057_v51 = vcombine.high %v807_v13, %v831_v42  ;;  %v1676_v11 = vcombine.low %v1423_v6, %v1439_v35  ;;  %v1276_v10 = vcombine.low %v16378_v43, %v16381_v50  ;;  %v1277_v36 = vcombine.high %v16378_v43, %v16381_v50 }
 0x36a   : > { %v16407_v37 = vrot.slane %v1864_v48, %v16223_v30  ;;  %14786 = vmatpush3.xpose.msk.msra.mxu0 %vm2592_vm2, %v1795_v63  ;;  %v1677_v52 = vcombine.high %v1423_v6, %v1439_v35  ;;  %v16411_v14 = vrot.slane %v14249_v58, %v16223_v30  ;;  %v16414_v25 = vrot.slane %v1880_v60, %v16223_v30 }
 0x36b   : > { %v16417_v13 = vrot.slane %v14250_v61, %v16223_v30  ;;  %v1684_v16 = vrot.slane %v1676_v11, %v16223_v30  ;;  %14782 = vmatprep.mubr.msk.f32.mxu1 %vm15840_vm1, %v18812_v12  ;;  %v1064_v20 = vrot.slane %v1056_v2, %v16223_v30  ;;  %v1071_v23 = vrot.slane %v1057_v51, %v16223_v30 }
 0x36c   : > { %v1691_v6 = vrot.slane %v1677_v52, %v16223_v30  ;;  %14787 = vmatprep.mubr.msk.f32.mxu0 %vm15840_vm1, %v18812_v12  ;;  %14783 = vmatmul.mubr.msk.f32.vlgmr.msra.gmra.mxu1 %vm2592_vm2, %v1174_v53  ;;  %v1040_v33 = vcombine.low %v16188_v17, %v819_v62  ;;  %v1041_v53 = vcombine.high %v16188_v17, %v819_v62  ;;  %v2017_v42 = vpop.permute.xlu1 %2016  ;;  %v2001_v2 = vpop.permute.xlu0 %2000 }
 0x36d   : > { %v1692_v27 = vcombine.low %v1668_v28, %v1684_v16  ;;  %v1693_v24 = vcombine.high %v1668_v28, %v1684_v16  ;;  %14788 = vmatmul.mubr.msk.f32.vlgmr.msra.gmra.mxu0 %vm2592_vm2, %v1175_v54  ;;  %14790 = vmatprep.subr.mxu1 %v18812_v12  ;;  %v1292_v59 = vcombine.low %v16396_v3, %v16399_v7 }
 0x36e   : > { %v1708_v34 = vcombine.low %v16371_v29, %v1691_v6  ;;  %v1709_v35 = vcombine.high %v16371_v29, %v1691_v6  ;;  %14795 = vmatprep.subr.mxu0 %v18812_v12  ;;  %14791 = vmatpush3.xpose.msk.msra.mxu1 %vm2592_vm2, %v1860_v38  ;;  %v1048_v54 = vrot.slane %v1040_v33, %v16223_v30 }
 0x36f   : > { %v1700_v40 = vrot.slane %v1692_v27, %v16231_v46  ;;  %v1707_v41 = vrot.slane %v1693_v24, %v16231_v46  ;;  %14796 = vmatpush3.xpose.msk.msra.mxu0 %vm2592_vm2, %v1861_v39  ;;  %14792 = vmatprep.mubr.msk.f32.mxu1 %vm15840_vm1, %v18812_v12  ;;  %v1055_v17 = vrot.slane %v1041_v53, %v16223_v30 }
 0x370   : > { %v1716_v28 = vrot.slane %v1708_v34, %v16231_v46  ;;  %v1723_v38 = vrot.slane %v1709_v35, %v16231_v46  ;;  %14797 = vmatprep.mubr.msk.f32.mxu0 %vm15840_vm1, %v18812_v12  ;;  %14800 = vmatprep.subr.mxu1 %v18812_v12  ;;  %v1072_v5 = vcombine.low %v1048_v54, %v1064_v20 }
 0x371   : > { %v1932_v29 = vcombine.low %v1700_v40, %v1707_v41  ;;  %v14251_v4 = vcombine.high %v1700_v40, %v1707_v41  ;;  %v1073_v39 = vcombine.high %v1048_v54, %v1064_v20  ;;  %14793 = vmatmul.mubr.msk.f32.vlgmr.msra.gmra.mxu1 %vm2592_vm2, %v1240_v8  ;;  %v1088_v47 = vcombine.low %v1055_v17, %v1071_v23 }
 0x372   : > { %v1948_v44 = vcombine.low %v1716_v28, %v1723_v38  ;;  %v14252_v45 = vcombine.high %v1716_v28, %v1723_v38  ;;  %v1089_v49 = vcombine.high %v1055_v17, %v1071_v23  ;;  %14798 = vmatmul.mubr.msk.f32.vlgmr.msra.gmra.mxu0 %vm2592_vm2, %v1241_v9  ;;  %v1080_v48 = vrot.slane %v1072_v5, %v16231_v46 }
 0x373   : > { %v16471_v56 = vrot.slane %v1932_v29, %v16223_v30  ;;  %v16474_v57 = vrot.slane %v14251_v4, %v16223_v30  ;;  %v1087_v8 = vrot.slane %v1073_v39, %v16231_v46  ;;  %14805 = vmatprep.subr.mxu0 %v18812_v12  ;;  %v1096_v55 = vrot.slane %v1088_v47, %v16231_v46 }
 0x374   : > { %v16480_v58 = vrot.slane %v1948_v44, %v16223_v30  ;;  %v16483_v21 = vrot.slane %v14252_v45, %v16223_v30  ;;  %v1103_v9 = vrot.slane %v1089_v49, %v16231_v46  ;;  %14802 = vmatprep.mubr.msk.f32.mxu1 %vm15840_vm1, %v18812_v12  ;;  %v1293_v60 = vcombine.high %v16396_v3, %v16399_v7 }
 0x375   : > { %v1896_v61 = vcombine.low %v16407_v37, %v16411_v14  ;;  %v1312_v63 = vcombine.low %v1080_v48, %v1087_v8  ;;  %14807 = vmatprep.mubr.msk.f32.mxu0 %vm15840_vm1, %v18812_v12  ;;  %v1897_v51 = vcombine.high %v16407_v37, %v16411_v14  ;;  %v1912_v11 = vcombine.low %v16414_v25, %v16417_v13 }
 0x376   : > { %v14243_v52 = vcombine.high %v1080_v48, %v1087_v8  ;;  %v1328_v62 = vcombine.low %v1096_v55, %v1103_v9  ;;  %v1913_v16 = vcombine.high %v16414_v25, %v16417_v13  ;;  %v1964_v3 = vcombine.low %v16471_v56, %v16474_v57  ;;  %v2025_v25 = vpop.permute.xlu1 %2024 }
 0x377   : > { %v1862_v7 = vcombine.low %v16344_v31, %v16347_v32  ;;  %v1863_v20 = vcombine.high %v16344_v31, %v16347_v32  ;;  %v1965_v37 = vcombine.high %v16471_v56, %v16474_v57  ;;  %v1980_v14 = vcombine.low %v16480_v58, %v16483_v21 }
 0x378   : > { %v1981_v23 = vcombine.high %v16480_v58, %v16483_v21  ;;  %v2048_v6 = vcombine.low %v2001_v2, %v2017_v42  ;;  %v16516_v13 = vrot.slane %v1312_v63, %v16223_v30  ;;  %v14244_v27 = vcombine.high %v1096_v55, %v1103_v9 }
 0x379   : > { %14801 = vmatpush3.xpose.msk.msra.mxu1 %vm2592_vm2, %v1862_v7  ;;  %14806 = vmatpush3.xpose.msk.msra.mxu0 %vm2592_vm2, %v1863_v20  ;;  %v1904_v31 = vrot.slane %v1896_v61, %v16231_v46  ;;  %v16522_v32 = vrot.slane %v14243_v52, %v16223_v30  ;;  %v16525_v24 = vrot.slane %v1328_v62, %v16223_v30 }
 0x37a   : > { %v2049_v33 = vcombine.high %v2001_v2, %v2017_v42  ;;  %v2056_v34 = vrot.slane %v2048_v6, %v16223_v30  ;;  %14810 = vmatprep.subr.mxu1 %v18812_v12  ;;  %14815 = vmatprep.subr.mxu0 %v18812_v12  ;;  %v1920_v35 = vrot.slane %v1912_v11, %v16231_v46 }
 0x37b   : > { %v2064_v53 = vcombine.low %v16431_v26, %v2025_v25  ;;  %v2065_v40 = vcombine.high %v16431_v26, %v2025_v25  ;;  %v1284_v41 = vrot.slane %v1276_v10, %v16231_v46  ;;  %v1300_v54 = vrot.slane %v1292_v59, %v16231_v46 }
 0x37c   : > { %14803 = vmatmul.mubr.msk.f32.vlgmr.msra.gmra.mxu1 %vm2592_vm2, %v1242_v19  ;;  %14808 = vmatmul.mubr.msk.f32.vlgmr.msra.gmra.mxu0 %vm2592_vm2, %v1243_v22  ;;  %v1911_v28 = vrot.slane %v1897_v51, %v16231_v46  ;;  %v1927_v26 = vrot.slane %v1913_v16, %v16231_v46  ;;  %v1928_v38 = vcombine.low %v1904_v31, %v1920_v35 }
 0x37d   : > { %v1929_v17 = vcombine.high %v1904_v31, %v1920_v35  ;;  %v2072_v10 = vrot.slane %v2064_v53, %v16223_v30  ;;  %v2079_v29 = vrot.slane %v2065_v40, %v16223_v30  ;;  %14812 = vmatprep.mubr.msk.f32.mxu1 %vm15840_vm1, %v18812_v12  ;;  %v16553_v19 = vrot.slane %v14244_v27, %v16223_v30 }
 0x37e   : > { %v1344_v0 = vcombine.low %v16516_v13, %v16522_v32  ;;  %v2063_v1 = vrot.slane %v2049_v33, %v16223_v30  ;;  %14817 = vmatprep.mubr.msk.f32.mxu0 %vm15840_vm1, %v18812_v12  ;;  %v1308_v22 = vcombine.low %v1284_v41, %v1300_v54  ;;  %14811 = vmatpush3.xpose.msk.msra.mxu1 %vm2592_vm2, %v1928_v38 }
 0x37f   : > { %14816 = vmatpush3.xpose.msk.msra.mxu0 %vm2592_vm2, %v1929_v17  ;;  %v2080_v4 = vcombine.low %v2056_v34, %v2072_v10  ;;  %v2081_v5 = vcombine.high %v2056_v34, %v2072_v10  ;;  %v1309_v39 = vcombine.high %v1284_v41, %v1300_v54  ;;  %14820 = vmatprep.subr.mxu1 %v18812_v12 }
 0x380   : > { %v2096_v44 = vcombine.low %v2063_v1, %v2079_v29  ;;  %14825 = vmatprep.subr.mxu0 %v18812_v12  ;;  %v1291_v45 = vrot.slane %v1277_v36, %v16231_v46  ;;  %v1307_v47 = vrot.slane %v1293_v60, %v16231_v46  ;;  %v2097_v49 = vcombine.high %v2063_v1, %v2079_v29 }
 0x381   : > { %v1930_v42 = vcombine.low %v1911_v28, %v1927_v26  ;;  %v1931_v48 = vcombine.high %v1911_v28, %v1927_v26  ;;  %v1972_v8 = vrot.slane %v1964_v3, %v16231_v46  ;;  %v1360_v55 = vcombine.low %v16525_v24, %v16553_v19  ;;  %14813 = vmatmul.mubr.msk.f32.vlgmr.msra.gmra.mxu1 %vm2592_vm2, %v1308_v22 }
 0x382   : > { %v2088_v9 = vrot.slane %v2080_v4, %v16231_v46  ;;  %v2095_v59 = vrot.slane %v2081_v5, %v16231_v46  ;;  %14818 = vmatmul.mubr.msk.f32.vlgmr.msra.gmra.mxu0 %vm2592_vm2, %v1309_v39  ;;  %v1345_v43 = vcombine.high %v16516_v13, %v16522_v32  ;;  %v1361_v50 = vcombine.high %v16525_v24, %v16553_v19 }
 0x383   : > { %14821 = vmatpush3.xpose.msk.msra.mxu1 %vm2592_vm2, %v1930_v42  ;;  %14826 = vmatpush3.xpose.msk.msra.mxu0 %vm2592_vm2, %v1931_v48  ;;  %v1988_v36 = vrot.slane %v1980_v14, %v16231_v46  ;;  %v2104_v60 = vrot.slane %v2096_v44, %v16231_v46  ;;  %v1310_v61 = vcombine.low %v1291_v45, %v1307_v47 }
 0x384   : > { %14822 = vmatprep.mubr.msk.f32.mxu1 %vm15840_vm1, %v18812_v12  ;;  %14827 = vmatprep.mubr.msk.f32.mxu0 %vm15840_vm1, %v18812_v12  ;;  %v1311_v63 = vcombine.high %v1291_v45, %v1307_v47  ;;  %v2111_v2 = vrot.slane %v2097_v49, %v16231_v46  ;;  %v2320_v52 = vcombine.low %v2088_v9, %v2095_v59 }
 0x385   : > { %14830 = vmatprep.subr.mxu1 %v18812_v12  ;;  %14835 = vmatprep.subr.mxu0 %v18812_v12  ;;  %v1996_v51 = vcombine.low %v1972_v8, %v1988_v36  ;;  %v1997_v11 = vcombine.high %v1972_v8, %v1988_v36  ;;  %v1352_v62 = vrot.slane %v1344_v0, %v16231_v46 }
 0x386   : > { %14823 = vmatmul.mubr.msk.f32.vlgmr.msra.gmra.mxu1 %vm2592_vm2, %v1310_v61  ;;  %14828 = vmatmul.mubr.msk.f32.vlgmr.msra.gmra.mxu0 %vm2592_vm2, %v1311_v63  ;;  %v1368_v16 = vrot.slane %v1360_v55, %v16231_v46  ;;  %v14253_v3 = vcombine.high %v2088_v9, %v2095_v59  ;;  %v1979_v7 = vrot.slane %v1965_v37, %v16231_v46 }
 0x387   : > { %14831 = vmatpush3.xpose.msk.msra.mxu1 %vm2592_vm2, %v1996_v51  ;;  %14836 = vmatpush3.xpose.msk.msra.mxu0 %vm2592_vm2, %v1997_v11  ;;  %v1995_v20 = vrot.slane %v1981_v23, %v16231_v46  ;;  %v2336_v25 = vcombine.low %v2104_v60, %v2111_v2  ;;  %v14254_v37 = vcombine.high %v2104_v60, %v2111_v2 }
 0x388   : > { %14832 = vmatprep.mubr.msk.f32.mxu1 %vm15840_vm1, %v18812_v12  ;;  %14837 = vmatprep.mubr.msk.f32.mxu0 %vm15840_vm1, %v18812_v12  ;;  %v1376_v14 = vcombine.low %v1352_v62, %v1368_v16  ;;  %v1377_v6 = vcombine.high %v1352_v62, %v1368_v16  ;;  %v1359_v58 = vrot.slane %v1345_v43, %v16231_v46 }
 0x389   : > { %14840 = vmatprep.subr.mxu1 %v18812_v12  ;;  %14845 = vmatprep.subr.mxu0 %v18812_v12  ;;  %v1998_v56 = vcombine.low %v1979_v7, %v1995_v20  ;;  %v1999_v57 = vcombine.high %v1979_v7, %v1995_v20  ;;  %v1375_v21 = vrot.slane %v1361_v50, %v16231_v46 }
 0x38a   : > { %14833 = vmatmul.mubr.msk.f32.vlgmr.msra.gmra.mxu1 %vm2592_vm2, %v1376_v14  ;;  %14838 = vmatmul.mubr.msk.f32.vlgmr.msra.gmra.mxu0 %vm2592_vm2, %v1377_v6  ;;  %v2327_v23 = vrot.slane %v2320_v52, %v16223_v30  ;;  %v2335_v13 = vrot.slane %v14253_v3, %v16223_v30  ;;  %v2343_v32 = vrot.slane %v2336_v25, %v16223_v30 }
 0x38b   : > { %14841 = vmatpush3.xpose.msk.msra.mxu1 %vm2592_vm2, %v1998_v56  ;;  %14846 = vmatpush3.xpose.msk.msra.mxu0 %vm2592_vm2, %v1999_v57  ;;  %v1378_v27 = vcombine.low %v1359_v58, %v1375_v21  ;;  %v1379_v31 = vcombine.high %v1359_v58, %v1375_v21  ;;  %v2351_v24 = vrot.slane %v14254_v37, %v16223_v30 }
 0x38c   : > { %14842 = vmatprep.mubr.msk.f32.mxu1 %vm15840_vm1, %v18812_v12  ;;  %14847 = vmatprep.mubr.msk.f32.mxu0 %vm15840_vm1, %v18812_v12  ;;  %v2352_v33 = vcombine.low %v2327_v23, %v2335_v13  ;;  %v2353_v40 = vcombine.high %v2327_v23, %v2335_v13 }
 0x38d   : > { %14850 = vmatprep.subr.mxu1 %v18812_v12  ;;  %14855 = vmatprep.subr.mxu0 %v18812_v12  ;;  %v2368_v34 = vcombine.low %v2343_v32, %v2351_v24  ;;  %v2369_v41 = vcombine.high %v2343_v32, %v2351_v24 }
 0x38e   : > { %14843 = vmatmul.mubr.msk.f32.vlgmr.msra.gmra.mxu1 %vm2592_vm2, %v1378_v27  ;;  %14848 = vmatmul.mubr.msk.f32.vlgmr.msra.gmra.mxu0 %vm2592_vm2, %v1379_v31  ;;  %v2360_v35 = vrot.slane %v2352_v33, %v16231_v46  ;;  %v16636_v26 = vrot.slane %v2353_v40, %v16231_v46 }
 0x38f   : > { %14852 = vmatprep.mubr.msk.f32.mxu1 %vm15840_vm1, %v18812_v12  ;;  %14857 = vmatprep.mubr.msk.f32.mxu0 %vm15840_vm1, %v18812_v12  ;;  %v2376_v53 = vrot.slane %v2368_v34, %v16231_v46  ;;  %v16639_v38 = vrot.slane %v2369_v41, %v16231_v46  ;;  %v2011_v34 = vpop.permute.xlu1 %2010  ;;  %v2003_v41 = vpop.permute.xlu0 %2002 }
 0x391   : > { %v2384_v54 = vcombine.low %v2360_v35, %v2376_v53  ;;  %v2385_v28 = vcombine.high %v2360_v35, %v2376_v53  ;;  %v2386_v17 = vcombine.low %v16636_v26, %v16639_v38  ;;  %v2387_v10 = vcombine.high %v16636_v26, %v16639_v38 }
 0x393   : > { %14851 = vmatpush3.msra.mxu1 %v2384_v54  ;;  %14856 = vmatpush3.msra.mxu0 %v2385_v28  ;;  %v2019_v35 = vpop.permute.xlu1 %2018  ;;  %v2005_v28 = vpop.permute.xlu0 %2004 }
 0x394   : > { %14860 = vmatprep.subr.mxu1 %v18812_v12  ;;  %14865 = vmatprep.subr.mxu0 %v18812_v12 }
 0x397   : > { %v2027_v53 = vpop.permute.xlu1 %2026 }
 0x39b   : > { %v16715_v40 = vpop.permute.xlu1 %2014 }
 0x39f   : > { %v2013_v54 = vpop.permute.xlu1 %2012 }
 0x427   : > { %v16647_v29 = vpop.f32.mrf.mxu0 }
 0x428   : > { %v16649_v19 = vpop.f32.mrf.mxu1  ;;  %v3809_v0 = vsel %vm2592_vm2, %v16647_v29, -inf }
 0x429   : > { %v3812_v1 = vsel %vm2592_vm2, %v16649_v19, -inf  ;;  %3810 = vmax.xlane.f32.xlu0 %v3809_v0  ;;  %v14774_v22 = vpop.f32.mrf.mxu0  ;;  %v2132_v0 = vcombine.low %v2011_v34, %v2027_v53 }
 0x42a   : > { %3813 = vmax.xlane.f32.xlu1 %v3812_v1  ;;  %v14779_v4 = vpop.f32.mrf.mxu1  ;;  %v2133_v1 = vcombine.high %v2011_v34, %v2027_v53  ;;  %v2021_v22 = vpop.permute.xlu1 %2020 }
 0x42b   : > { %v2116_v4 = vcombine.low %v2003_v41, %v2019_v35 }
 0x42c   : > { %v16655_v5 = vpop.f32.mrf.mxu1 }
 0x42d   : > { %v16657_v39 = vpop.f32.mrf.mxu0  ;;  %v3815_v44 = vsel %vm2592_vm2, %v16655_v5, -inf }
 0x42e   : > { %v14784_v45 = vpop.f32.mrf.mxu1  ;;  %3816 = vmax.xlane.f32.xlu0 %v3815_v44  ;;  %v3818_v42 = vsel %vm2592_vm2, %v16657_v39, -inf  ;;  %v2117_v44 = vcombine.high %v2003_v41, %v2019_v35 }
 0x42f   : > { %v14789_v47 = vpop.f32.mrf.mxu0  ;;  %v2140_v45 = vrot.slane %v2132_v0, %v16223_v30 }
 0x430   : > { %v2124_v47 = vrot.slane %v2116_v4, %v16223_v30 }
 0x431   : > { %v16661_v49 = vpop.f32.mrf.mxu1 }
 0x432   : > { %v16665_v48 = vpop.f32.mrf.mxu0  ;;  %3819 = vmax.xlane.f32.xlu0 %v3818_v42  ;;  %v3821_v59 = vsel %vm2592_vm2, %v16661_v49, -inf  ;;  %v2131_v42 = vrot.slane %v2117_v44, %v16223_v30 }
 0x433   : > { %v14794_v8 = vpop.f32.mrf.mxu1  ;;  %v3824_v55 = vsel %vm2592_vm2, %v16665_v48, -inf }
 0x434   : > { %3825 = vmax.xlane.f32.xlu1 %v3824_v55  ;;  %v14799_v9 = vpop.f32.mrf.mxu0  ;;  %v2029_v8 = vpop.permute.xlu1 %2028  ;;  %v2148_v55 = vcombine.low %v2124_v47, %v2140_v45 }
 0x435   : > { %v2149_v9 = vcombine.high %v2124_v47, %v2140_v45 }
 0x436   : > { %3822 = vmax.xlane.f32.xlu0 %v3821_v59 }
 0x43c   : > { %v16671_v43 = vpop.f32.mrf.mxu1  ;;  %v16673_v50 = vpop.f32.mrf.mxu0 }
 0x43d   : > { %v3830_v36 = vsel %vm2592_vm2, %v16673_v50, -inf  ;;  %v3827_v60 = vsel %vm2592_vm2, %v16671_v43, -inf }
 0x43e   : > { %v14804_v61 = vpop.f32.mrf.mxu1  ;;  %3831 = vmax.xlane.f32.xlu1 %v3830_v36  ;;  %v14809_v63 = vpop.f32.mrf.mxu0  ;;  %3828 = vmax.xlane.f32.xlu0 %v3827_v60 }
 0x441   : > { %v16679_v2 = vpop.f32.mrf.mxu1 }
 0x442   : > { %v16681_v51 = vpop.f32.mrf.mxu0  ;;  %v3833_v11 = vsel %vm2592_vm2, %v16679_v2, -inf }
 0x443   : > { %v14814_v52 = vpop.f32.mrf.mxu1  ;;  %3834 = vmax.xlane.f32.xlu0 %v3833_v11  ;;  %v3836_v20 = vsel %vm2592_vm2, %v16681_v51, -inf  ;;  %v2156_v11 = vrot.slane %v2148_v55, %v16231_v46 }
 0x444   : > { %v14819_v62 = vpop.f32.mrf.mxu0 }
 0x445   : > { %v2163_v62 = vrot.slane %v2149_v9, %v16231_v46 }
 0x446   : > { %v16685_v16 = vpop.f32.mrf.mxu1  ;;  %v16687_v3 = vpop.f32.mrf.mxu0 }
 0x447   : > { %v3842_v7 = vsel %vm2592_vm2, %v16687_v3, -inf  ;;  %3837 = vmax.xlane.f32.xlu0 %v3836_v20  ;;  %v3839_v57 = vsel %vm2592_vm2, %v16685_v16, -inf }
 0x448   : > { %3843 = vmax.xlane.f32.xlu1 %v3842_v7  ;;  %v14829_v14 = vpop.f32.mrf.mxu0  ;;  %v14824_v6 = vpop.f32.mrf.mxu1 }
 0x44a   : > { %v16693_v25 = vpop.f32.mrf.mxu1  ;;  %v16695_v56 = vpop.f32.mrf.mxu0 }
 0x44b   : > { %3840 = vmax.xlane.f32.xlu0 %v3839_v57  ;;  %v3845_v13 = vsel %vm2592_vm2, %v16693_v25, -inf  ;;  %v3848_v24 = vsel %vm2592_vm2, %v16695_v56, -inf  ;;  %v2200_v57 = vcombine.low %v2013_v54, %v2029_v8 }
 0x44c   : > { %v14834_v37 = vpop.f32.mrf.mxu1  ;;  %v14839_v58 = vpop.f32.mrf.mxu0 }
 0x44d   : > { %v2184_v58 = vcombine.low %v2005_v28, %v2021_v22  ;;  %v2208_v34 = vrot.slane %v2200_v57, %v16223_v30 }
 0x44e   : > { %v16699_v21 = vpop.f32.mrf.mxu1  ;;  %v16701_v23 = vpop.f32.mrf.mxu0 }
 0x44f   : > { %v3854_v27 = vsel %vm2592_vm2, %v16701_v23, -inf  ;;  %3846 = vmax.xlane.f32.xlu0 %v3845_v13  ;;  %v3851_v33 = vsel %vm2592_vm2, %v16699_v21, -inf  ;;  %v2201_v13 = vcombine.high %v2013_v54, %v2029_v8  ;;  %v2192_v53 = vrot.slane %v2184_v58, %v16223_v30 }
 0x450   : > { %v14844_v31 = vpop.f32.mrf.mxu1  ;;  %3855 = vmax.xlane.f32.xlu1 %v3854_v27  ;;  %v14849_v32 = vpop.f32.mrf.mxu0  ;;  %v2388_v27 = vcombine.low %v2156_v11, %v2163_v62 }
 0x451   : > { %v14255_v31 = vcombine.high %v2156_v11, %v2163_v62  ;;  %v2215_v41 = vrot.slane %v2201_v13, %v16223_v30  ;;  %v2217_v47 = vcombine.high %v2192_v53, %v2208_v34 }
 0x453   : > { %3849 = vmax.xlane.f32.xlu0 %v3848_v24  ;;  %v2185_v24 = vcombine.high %v2005_v28, %v2021_v22 }
 0x455   : > { %v2199_v22 = vrot.slane %v2185_v24, %v16223_v30 }
 0x457   : > { %3852 = vmax.xlane.f32.xlu0 %v3851_v33  ;;  %v2232_v8 = vcombine.low %v2199_v22, %v2215_v41  ;;  %v2233_v9 = vcombine.high %v2199_v22, %v2215_v41 }
 0x459   : > { %v2247_v62 = vrot.slane %v2233_v9, %v16231_v46 }
 0x461   : > { %2030 = vrot.lane.b32.xlu1 %v16193_v18, %s15841_s21  ;;  %v2147_v18 = vrot.slane %v2133_v1, %v16223_v30  ;;  %v2395_v1 = vrot.slane %v2388_v27, %v16223_v30 }
 0x463   : > { %v2164_v59 = vcombine.low %v2131_v42, %v2147_v18  ;;  %v2165_v36 = vcombine.high %v2131_v42, %v2147_v18  ;;  %v2216_v18 = vcombine.low %v2192_v53, %v2208_v34 }
 0x465   : > { %v2172_v7 = vrot.slane %v2164_v59, %v16231_v46  ;;  %v2179_v20 = vrot.slane %v2165_v36, %v16231_v46 }
 0x467   : > { %v2404_v32 = vcombine.low %v2172_v7, %v2179_v20 }
 0x469   : > { %v2411_v4 = vrot.slane %v2404_v32, %v16223_v30 }
 0x46d   : > { %2022 = vrot.lane.b32.xlu0 %v16182_v15, %s15841_s21  ;;  %v16720_v15 = vpop.permute.xlu0 %2006 }
 0x4b2   : > { %v3811_v60 = vpop.xlane.xlu0 %3810 }
 0x4b3   : > { %v3814_v61 = vpop.xlane.xlu1 %3813  ;;  %v3857_v63 = vsub.f32 %v16647_v29, %v3811_v60 }
 0x4b4   : > { %v3858_v52 = vsub.f32 %v16649_v19, %v3814_v61  ;;  %v14256_v19 = vcombine.high %v2172_v7, %v2179_v20  ;;  %v2224_v61 = vrot.slane %v2216_v18, %v16231_v46 }
 0x4b5   : > { %v3873_v14 = vmul.f32 1.442695, %v3857_v63  ;;  %v2231_v63 = vrot.slane %v2217_v47, %v16231_v46 }
 0x4b6   : > { %v3875_v6 = vmul.f32 1.442695, %v3858_v52  ;;  %v2419_v28 = vrot.slane %v14256_v19, %v16223_v30 }
 0x4b7   : > { %15431 = vpow2.f32 %v3873_v14  ;;  %v3817_v37 = vpop.xlane.xlu0 %3816 }
 0x4b8   : > { %15433 = vpow2.f32 %v3875_v6  ;;  %v3859_v29 = vsub.f32 %v16655_v5, %v3817_v37  ;;  %v2403_v5 = vrot.slane %v14255_v31, %v16223_v30  ;;  %v2436_v36 = vcombine.low %v2411_v4, %v2419_v28 }
 0x4b9   : > { %v2456_v6 = vcombine.low %v2224_v61, %v2231_v63  ;;  %v2437_v13 = vcombine.high %v2411_v4, %v2419_v28 }
 0x4ba   : > { %v3877_v33 = vmul.f32 1.442695, %v3859_v29  ;;  %v2420_v59 = vcombine.low %v2395_v1, %v2403_v5  ;;  %v2444_v20 = vrot.slane %v2436_v36, %v16231_v46  ;;  %v2421_v58 = vcombine.high %v2395_v1, %v2403_v5 }
 0x4bb   : > { %v3820_v35 = vpop.xlane.xlu0 %3819  ;;  %v14257_v29 = vcombine.high %v2224_v61, %v2231_v63 }
 0x4bc   : > { %15435 = vpow2.f32 %v3877_v33  ;;  %v3860_v0 = vsub.f32 %v16657_v39, %v3820_v35  ;;  %v2428_v7 = vrot.slane %v2420_v59, %v16231_v46  ;;  %v16773_v33 = vrot.slane %v2456_v6, %v16223_v30 }
 0x4bd   : > { %v3826_v54 = vpop.xlane.xlu1 %3825  ;;  %v16776_v34 = vrot.slane %v14257_v29, %v16223_v30 }
 0x4be   : > { %v3862_v44 = vsub.f32 %v16665_v48, %v3826_v54  ;;  %v3879_v45 = vmul.f32 1.442695, %v3860_v0  ;;  %v2240_v48 = vrot.slane %v2232_v8, %v16231_v46  ;;  %v2452_v24 = vcombine.low %v2428_v7, %v2444_v20 }
 0x4bf   : > { %v3823_v42 = vpop.xlane.xlu0 %3822  ;;  %v2453_v41 = vcombine.high %v2428_v7, %v2444_v20  ;;  %v2489_v63 = vcombine.high %v16773_v33, %v16776_v34 }
 0x4c0   : > { %v3883_v55 = vmul.f32 1.442695, %v3862_v44  ;;  %15437 = vpow2.f32 %v3879_v45  ;;  %v3861_v39 = vsub.f32 %v16661_v49, %v3823_v42  ;;  %v2472_v32 = vcombine.low %v2240_v48, %v2247_v62 }
 0x4c1   : > { %v14258_v19 = vcombine.high %v2240_v48, %v2247_v62  ;;  %v2488_v42 = vcombine.low %v16773_v33, %v16776_v34 }
 0x4c2   : > { %15439 = vpow2.f32 %v3883_v55  ;;  %v3881_v60 = vmul.f32 1.442695, %v3861_v39  ;;  %v2479_v0 = vrot.slane %v2472_v32, %v16223_v30 }
 0x4c3   : > { %v2487_v54 = vrot.slane %v14258_v19, %v16223_v30 }
 0x4c4   : > { %v15432_v11 = vpop.eup %15431  ;;  %15441 = vpow2.f32 %v3881_v60 }
 0x4c5   : > { %v15434_v52 = vpop.eup %15433  ;;  %14853 = vmatmul.mubr.msk.f32.vlgmr.msra.gmra.mxu1 %vm2592_vm2, %v15432_v11  ;;  %v3905_v49 = vsel %vm2592_vm2, %v15432_v11, 0.0  ;;  %v2504_v8 = vcombine.low %v2479_v0, %v2487_v54  ;;  %v2505_v11 = vcombine.high %v2479_v0, %v2487_v54 }
 0x4c6   : > { %14858 = vmatmul.mubr.msk.f32.vlgmr.msra.gmra.mxu0 %vm2592_vm2, %v15434_v52  ;;  %14861 = vmatpush3.msra.mxu1 %v2386_v17  ;;  %v3908_v14 = vsel %vm2592_vm2, %v15434_v52, 0.0 }
 0x4c7   : > { %v3832_v57 = vpop.xlane.xlu1 %3831  ;;  %v3829_v37 = vpop.xlane.xlu0 %3828  ;;  %14866 = vmatpush3.msra.mxu0 %v2387_v10  ;;  %3909 = vadd.xlane.f32.xlu1 %v3908_v14 }
 0x4c8   : > { %v3864_v27 = vsub.f32 %v16673_v50, %v3832_v57  ;;  %v3863_v31 = vsub.f32 %v16671_v43, %v3829_v37  ;;  %3906 = vadd.xlane.f32.xlu0 %v3905_v49  ;;  %14862 = vmatprep.mubr.msk.f32.mxu1 %vm15840_vm1, %v18812_v12  ;;  %v2435_v43 = vrot.slane %v2421_v58, %v16231_v46 }
 0x4c9   : > { %v15436_v17 = vpop.eup %15435  ;;  %14870 = vmatprep.subr.mxu1 %v18812_v12  ;;  %14867 = vmatprep.mubr.msk.f32.mxu0 %vm15840_vm1, %v18812_v12  ;;  %v2451_v50 = vrot.slane %v2437_v13, %v16231_v46  ;;  %v2503_v37 = vrot.slane %v2489_v63, %v16231_v46  ;;  %v2519_v58 = vrot.slane %v2505_v11, %v16231_v46 }
 0x4ca   : > { %v3887_v26 = vmul.f32 1.442695, %v3864_v27  ;;  %v3885_v38 = vmul.f32 1.442695, %v3863_v31  ;;  %14863 = vmatmul.mubr.msk.f32.vlgmr.msra.gmra.mxu1 %vm2592_vm2, %v15436_v17  ;;  %v3911_v10 = vsel %vm2592_vm2, %v15436_v17, 0.0  ;;  %14875 = vmatprep.subr.mxu0 %v18812_v12 }
 0x4cb   : > { %14871 = vmatpush3.msra.mxu1 %v2452_v24  ;;  %14872 = vmatprep.mubr.msk.f32.mxu1 %vm15840_vm1, %v18812_v12  ;;  %v2455_v47 = vcombine.high %v2435_v43, %v2451_v50  ;;  %v2522_v17 = vcombine.low %v2503_v37, %v2519_v58  ;;  %v2523_v33 = vcombine.high %v2503_v37, %v2519_v58 }
 0x4cc   : > { %15443 = vpow2.f32 %v3887_v26  ;;  %3912 = vadd.xlane.f32.xlu0 %v3911_v10  ;;  %14880 = vmatprep.subr.mxu1 %v18812_v12  ;;  %v3835_v53 = vpop.xlane.xlu0 %3834 }
 0x4cd   : > { %v15438_v35 = vpop.eup %15437  ;;  %15445 = vpow2.f32 %v3885_v38  ;;  %v3865_v1 = vsub.f32 %v16679_v2, %v3835_v53  ;;  %v2454_v2 = vcombine.low %v2435_v43, %v2451_v50 }
 0x4ce   : > { %14868 = vmatmul.mubr.msk.f32.vlgmr.msra.gmra.mxu0 %vm2592_vm2, %v15438_v35  ;;  %v3914_v5 = vsel %vm2592_vm2, %v15438_v35, 0.0 }
 0x4cf   : > { %v15440_v4 = vpop.eup %15439  ;;  %14876 = vmatpush3.msra.mxu0 %v2453_v41  ;;  %14877 = vmatprep.mubr.msk.f32.mxu0 %vm15840_vm1, %v18812_v12  ;;  %v3889_v28 = vmul.f32 1.442695, %v3865_v1 }
 0x4d0   : > { %v3920_v22 = vsel %vm2592_vm2, %v15440_v4, 0.0  ;;  %3915 = vadd.xlane.f32.xlu0 %v3914_v5  ;;  %14885 = vmatprep.subr.mxu0 %v18812_v12  ;;  %v3838_v18 = vpop.xlane.xlu0 %3837 }
 0x4d1   : > { %v15442_v44 = vpop.eup %15441  ;;  %v3844_v45 = vpop.xlane.xlu1 %3843  ;;  %3921 = vadd.xlane.f32.xlu1 %v3920_v22  ;;  %15447 = vpow2.f32 %v3889_v28  ;;  %v3866_v39 = vsub.f32 %v16681_v51, %v3838_v18  ;;  %v2496_v51 = vrot.slane %v2488_v42, %v16231_v46 }
 0x4d2   : > { %v3868_v55 = vsub.f32 %v16687_v3, %v3844_v45  ;;  %14873 = vmatmul.mubr.msk.f32.vlgmr.msra.gmra.mxu1 %vm2592_vm2, %v15442_v44  ;;  %14878 = vmatmul.mubr.msk.f32.vlgmr.msra.gmra.mxu0 %vm2592_vm2, %v15440_v4  ;;  %v3917_v9 = vsel %vm2592_vm2, %v15442_v44, 0.0  ;;  %v2512_v3 = vrot.slane %v2504_v8, %v16231_v46 }
 0x4d3   : > { %14881 = vmatpush3.msra.mxu1 %v2454_v2  ;;  %14886 = vmatpush3.msra.mxu0 %v2455_v47  ;;  %v3891_v59 = vmul.f32 1.442695, %v3866_v39 }
 0x4d4   : > { %3918 = vadd.xlane.f32.xlu0 %v3917_v9  ;;  %14882 = vmatprep.mubr.msk.f32.mxu1 %vm15840_vm1, %v18812_v12  ;;  %v3895_v36 = vmul.f32 1.442695, %v3868_v55  ;;  %v3841_v60 = vpop.xlane.xlu0 %3840  ;;  %v2520_v49 = vcombine.low %v2496_v51, %v2512_v3 }
 0x4d5   : > { %14887 = vmatprep.mubr.msk.f32.mxu0 %vm15840_vm1, %v18812_v12  ;;  %14890 = vmatprep.subr.mxu1 %v18812_v12  ;;  %v3867_v61 = vsub.f32 %v16685_v16, %v3841_v60  ;;  %15449 = vpow2.f32 %v3891_v59  ;;  %v2521_v16 = vcombine.high %v2496_v51, %v2512_v3 }
 0x4d6   : > { %14895 = vmatprep.subr.mxu0 %v18812_v12  ;;  %15451 = vpow2.f32 %v3895_v36 }
 0x4d7   : > { %v3893_v48 = vmul.f32 1.442695, %v3867_v61 }
 0x4d8   : > { %v3847_v62 = vpop.xlane.xlu0 %3846 }
 0x4d9   : > { %v15444_v52 = vpop.eup %15443  ;;  %15453 = vpow2.f32 %v3893_v48  ;;  %v3856_v20 = vpop.xlane.xlu1 %3855  ;;  %v3869_v6 = vsub.f32 %v16693_v25, %v3847_v62 }
 0x4da   : > { %v15446_v7 = vpop.eup %15445  ;;  %v3926_v14 = vsel %vm2592_vm2, %v15444_v52, 0.0  ;;  %14888 = vmatmul.mubr.msk.f32.vlgmr.msra.gmra.mxu0 %vm2592_vm2, %v15444_v52  ;;  %v3872_v13 = vsub.f32 %v16701_v23, %v3856_v20 }
 0x4db   : > { %3927 = vadd.xlane.f32.xlu1 %v3926_v14  ;;  %14883 = vmatmul.mubr.msk.f32.vlgmr.msra.gmra.mxu1 %vm2592_vm2, %v15446_v7  ;;  %v3923_v57 = vsel %vm2592_vm2, %v15446_v7, 0.0  ;;  %v3897_v29 = vmul.f32 1.442695, %v3869_v6 }
 0x4dc   : > { %14891 = vmatpush3.msra.mxu1 %v2520_v49  ;;  %14896 = vmatpush3.msra.mxu0 %v2521_v16  ;;  %v3850_v27 = vpop.xlane.xlu0 %3849  ;;  %v3903_v23 = vmul.f32 1.442695, %v3872_v13 }
 0x4dd   : > { %3924 = vadd.xlane.f32.xlu0 %v3923_v57  ;;  %14892 = vmatprep.mubr.msk.f32.mxu1 %vm15840_vm1, %v18812_v12  ;;  %15455 = vpow2.f32 %v3897_v29  ;;  %v3870_v25 = vsub.f32 %v16695_v56, %v3850_v27  ;;  %v2031_v32 = vpop.permute.xlu1 %2030 }
 0x4de   : > { %14900 = vmatprep.subr.mxu1 %v18812_v12  ;;  %14897 = vmatprep.mubr.msk.f32.mxu0 %vm15840_vm1, %v18812_v12  ;;  %v15448_v31 = vpop.eup %15447  ;;  %v2268_v38 = vcombine.low %v16715_v40, %v2031_v32  ;;  %v2269_v43 = vcombine.high %v16715_v40, %v2031_v32 }
 0x4df   : > { %14905 = vmatprep.subr.mxu0 %v18812_v12  ;;  %v3899_v19 = vmul.f32 1.442695, %v3870_v25  ;;  %14893 = vmatmul.mubr.msk.f32.vlgmr.msra.gmra.mxu1 %vm2592_vm2, %v15448_v31  ;;  %v3929_v24 = vsel %vm2592_vm2, %v15448_v31, 0.0 }
 0x4e0   : > { %14901 = vmatpush3.msra.mxu1 %v2522_v17  ;;  %v3853_v26 = vpop.xlane.xlu0 %3852  ;;  %14902 = vmatprep.mubr.msk.f32.mxu1 %vm15840_vm1, %v18812_v12  ;;  %v2276_v54 = vrot.slane %v2268_v38, %v16223_v30  ;;  %v2283_v40 = vrot.slane %v2269_v43, %v16223_v30 }
 0x4e1   : > { %3930 = vadd.xlane.f32.xlu0 %v3929_v24  ;;  %15457 = vpow2.f32 %v3899_v19  ;;  %v3871_v56 = vsub.f32 %v16699_v21, %v3853_v26  ;;  %14910 = vmatprep.subr.mxu1 %v18812_v12 }
 0x4e2   : > { %v15450_v10 = vpop.eup %15449  ;;  %15459 = vpow2.f32 %v3903_v23 }
 0x4e3   : > { %v3901_v50 = vmul.f32 1.442695, %v3871_v56  ;;  %14898 = vmatmul.mubr.msk.f32.vlgmr.msra.gmra.mxu0 %vm2592_vm2, %v15450_v10  ;;  %v3932_v34 = vsel %vm2592_vm2, %v15450_v10, 0.0  ;;  %v15452_v53 = vpop.eup %15451 }
 0x4e4   : > { %v2023_v35 = vpop.permute.xlu0 %2022  ;;  %14906 = vmatpush3.msra.mxu0 %v2523_v33  ;;  %3933 = vadd.xlane.f32.xlu1 %v3932_v34 }
 0x4e5   : > { %15461 = vpow2.f32 %v3901_v50  ;;  %v2252_v21 = vcombine.low %v16720_v15, %v2023_v35  ;;  %v2253_v41 = vcombine.high %v16720_v15, %v2023_v35  ;;  %14907 = vmatprep.mubr.msk.f32.mxu0 %vm15840_vm1, %v18812_v12  ;;  %14915 = vmatprep.subr.mxu0 %v18812_v12  ;;  %v3938_v15 = vsel %vm2592_vm2, %v15452_v53, 0.0 }
 0x4e6   : > { %v15454_v0 = vpop.eup %15453 }
 0x4e7   : > { %v2260_v1 = vrot.slane %v2252_v21, %v16223_v30  ;;  %v2267_v5 = vrot.slane %v2253_v41, %v16223_v30  ;;  %14903 = vmatmul.mubr.msk.f32.vlgmr.msra.gmra.mxu1 %vm2592_vm2, %v15454_v0  ;;  %v3935_v4 = vsel %vm2592_vm2, %v15454_v0, 0.0  ;;  %14908 = vmatmul.mubr.msk.f32.vlgmr.msra.gmra.mxu0 %vm2592_vm2, %v15452_v53 }
 0x4e8   : > { %3936 = vadd.xlane.f32.xlu0 %v3935_v4  ;;  %3939 = vadd.xlane.f32.xlu1 %v3938_v15 }
 0x4e9   : > { %v2284_v28 = vcombine.low %v2260_v1, %v2276_v54  ;;  %v2285_v22 = vcombine.high %v2260_v1, %v2276_v54  ;;  %v2300_v44 = vcombine.low %v2267_v5, %v2283_v40  ;;  %v2301_v45 = vcombine.high %v2267_v5, %v2283_v40  ;;  %14912 = vmatprep.mubr.msk.f32.mxu1 %vm15840_vm1, %v18812_v12 }
 0x4ea   : > { %v15456_v18 = vpop.eup %15455  ;;  %14917 = vmatprep.mubr.msk.f32.mxu0 %vm15840_vm1, %v18812_v12 }
 0x4eb   : > { %v2292_v2 = vrot.slane %v2284_v28, %v16231_v46  ;;  %v2299_v47 = vrot.slane %v2285_v22, %v16231_v46  ;;  %v2308_v42 = vrot.slane %v2300_v44, %v16231_v46  ;;  %v2315_v8 = vrot.slane %v2301_v45, %v16231_v46 }
 0x4ec   : > { %v3941_v55 = vsel %vm2592_vm2, %v15456_v18, 0.0 }
 0x4ed   : > { %v2524_v39 = vcombine.low %v2292_v2, %v2299_v47  ;;  %v14259_v9 = vcombine.high %v2292_v2, %v2299_v47  ;;  %v2540_v59 = vcombine.low %v2308_v42, %v2315_v8  ;;  %v14260_v36 = vcombine.high %v2308_v42, %v2315_v8  ;;  %3942 = vadd.xlane.f32.xlu0 %v3941_v55 }
 0x4ee   : > { %v15458_v60 = vpop.eup %15457 }
 0x4ef   : > { %v3944_v51 = vsel %vm2592_vm2, %v15458_v60, 0.0  ;;  %v2531_v3 = vrot.slane %v2524_v39, %v16223_v30  ;;  %v2539_v61 = vrot.slane %v14259_v9, %v16223_v30  ;;  %v2547_v63 = vrot.slane %v2540_v59, %v16223_v30  ;;  %v15460_v11 = vpop.eup %15459 }
 0x4f0   : > { %3945 = vadd.xlane.f32.xlu1 %v3944_v51  ;;  %v2555_v48 = vrot.slane %v14260_v36, %v16223_v30  ;;  %v3950_v14 = vsel %vm2592_vm2, %v15460_v11, 0.0 }
 0x4f1   : > { %v2556_v52 = vcombine.low %v2531_v3, %v2539_v61  ;;  %v2557_v62 = vcombine.high %v2531_v3, %v2539_v61 }
 0x4f2   : > { %v15462_v49 = vpop.eup %15461  ;;  %v2572_v7 = vcombine.low %v2547_v63, %v2555_v48  ;;  %v2573_v20 = vcombine.high %v2547_v63, %v2555_v48 }
 0x4f3   : > { %v3947_v6 = vsel %vm2592_vm2, %v15462_v49, 0.0  ;;  %v2564_v16 = vrot.slane %v2556_v52, %v16231_v46  ;;  %v2571_v37 = vrot.slane %v2557_v62, %v16231_v46 }
 0x4f4   : > { %3951 = vadd.xlane.f32.xlu1 %v3950_v14  ;;  %3948 = vadd.xlane.f32.xlu0 %v3947_v6  ;;  %v2580_v57 = vrot.slane %v2572_v7, %v16231_v46  ;;  %v2587_v58 = vrot.slane %v2573_v20, %v16231_v46 }
 0x4f6   : > { %v2588_v13 = vcombine.low %v2564_v16, %v2580_v57  ;;  %v2589_v29 = vcombine.high %v2564_v16, %v2580_v57  ;;  %v2590_v27 = vcombine.low %v2571_v37, %v2587_v58  ;;  %v2591_v25 = vcombine.high %v2571_v37, %v2587_v58 }
 0x4f8   : > { %14911 = vmatpush3.msra.mxu1 %v2588_v13  ;;  %14916 = vmatpush3.msra.mxu0 %v2589_v29 }
 0x4f9   : > { %14913 = vmatmul.mubr.msk.f32.vlgmr.msra.gmra.mxu1 %vm2592_vm2, %v15456_v18  ;;  %14918 = vmatmul.mubr.msk.f32.vlgmr.msra.gmra.mxu0 %vm2592_vm2, %v15458_v60 }
 0x4fa   : > { %14920 = vmatprep.subr.mxu1 %v18812_v12  ;;  %14925 = vmatprep.subr.mxu0 %v18812_v12 }
 0x4fb   : > { %14921 = vmatpush3.msra.mxu1 %v2590_v27  ;;  %14926 = vmatpush3.msra.mxu0 %v2591_v25 }
 0x4fc   : > { %14922 = vmatprep.mubr.msk.f32.mxu1 %vm15840_vm1, %v18812_v12  ;;  %14927 = vmatprep.mubr.msk.f32.mxu0 %vm15840_vm1, %v18812_v12 }
 0x4fd   : > { %14923 = vmatmul.mubr.msk.f32.vlgmr.msra.gmra.mxu1 %vm2592_vm2, %v15462_v49  ;;  %14928 = vmatmul.mubr.msk.f32.vlgmr.msra.gmra.mxu0 %vm2592_vm2, %v15460_v11 }
 0x550   : > { %v3910_v23 = vpop.xlane.xlu1 %3909 }
 0x551   : > { %v3907_v31 = vpop.xlane.xlu0 %3906 }
 0x555   : > { %v3913_v17 = vpop.xlane.xlu0 %3912 }
 0x556   : > { %15463 = vrcp.f32 %v3913_v17 }
 0x557   : > { %15465 = vrcp.f32 %v3907_v31 }
 0x558   : > { %15467 = vrcp.f32 %v3910_v23 }
 0x559   : > { %v3916_v32 = vpop.xlane.xlu0 %3915 }
 0x55a   : > { %15469 = vrcp.f32 %v3916_v32  ;;  %v3922_v19 = vpop.xlane.xlu1 %3921 }
 0x55b   : > { %15471 = vrcp.f32 %v3922_v19 }
 0x55d   : > { %v3919_v24 = vpop.xlane.xlu0 %3918 }
 0x55e   : > { %15473 = vrcp.f32 %v3919_v24 }
 0x563   : > { %v15464_v43 = vpop.eup %15463 }
 0x564   : > { %v3928_v50 = vpop.xlane.xlu1 %3927  ;;  %v15466_v53 = vpop.eup %15465 }
 0x565   : > { %v15468_v41 = vpop.eup %15467  ;;  %15475 = vrcp.f32 %v3928_v50 }
 0x566   : > { %v3925_v34 = vpop.xlane.xlu0 %3924 }
 0x567   : > { %v15470_v54 = vpop.eup %15469  ;;  %15477 = vrcp.f32 %v3925_v34 }
 0x568   : > { %v15472_v62 = vpop.eup %15471 }
 0x56a   : > { %v3931_v2 = vpop.xlane.xlu0 %3930 }
 0x56b   : > { %15479 = vrcp.f32 %v3931_v2  ;;  %v15474_v49 = vpop.eup %15473 }
 0x56d   : > { %v3934_v47 = vpop.xlane.xlu1 %3933 }
 0x56e   : > { %15481 = vrcp.f32 %v3934_v47 }
 0x571   : > { %v3937_v61 = vpop.xlane.xlu0 %3936  ;;  %v3940_v7 = vpop.xlane.xlu1 %3939 }
 0x572   : > { %v15476_v57 = vpop.eup %15475  ;;  %15483 = vrcp.f32 %v3937_v61 }
 0x573   : > { %15485 = vrcp.f32 %v3940_v7 }
 0x574   : > { %v15478_v13 = vpop.eup %15477 }
 0x579   : > { %v3946_v61 = vpop.xlane.xlu1 %3945 }
 0x585   : > { %v4022_v26 = vpop.f32.mrf.mxu1 }
 0x586   : > { %v4095_v56 = vpop.f32.mrf.mxu0  ;;  %v5122_v0 = vmul.f32 %v15466_v53, %v4022_v26 }
 0x587   : > { %v14854_v38 = vpop.f32.mrf.mxu1  ;;  %v5124_v1 = vmul.f32 %v15468_v41, %v4095_v56 }
 0x588   : > { %v14859_v10 = vpop.f32.mrf.mxu0 }
 0x58a   : > { %v4168_v33 = vpop.f32.mrf.mxu1 }
 0x58b   : > { %v5126_v35 = vmul.f32 %v15464_v43, %v4168_v33 }
 0x58c   : > { %v14864_v21 = vpop.f32.mrf.mxu1 }
 0x58d   : > { %v5153_v5 = vcombine.low %v5122_v0, %v5126_v35  ;;  %v5154_v4 = vcombine.high %v5122_v0, %v5126_v35 }
 0x58e   : > { %v4241_v40 = vpop.f32.mrf.mxu0 }
 0x58f   : > { %v5128_v15 = vmul.f32 %v15470_v54, %v4241_v40  ;;  %v5161_v42 = vrot.slane %v5153_v5, %v16223_v30  ;;  %v5168_v8 = vrot.slane %v5154_v4, %v16223_v30 }
 0x590   : > { %v14869_v28 = vpop.f32.mrf.mxu0 }
 0x591   : > { %v5169_v22 = vcombine.low %v5124_v1, %v5128_v15  ;;  %v5170_v44 = vcombine.high %v5124_v1, %v5128_v15 }
 0x592   : > { %v4314_v45 = vpop.f32.mrf.mxu1  ;;  %v4387_v18 = vpop.f32.mrf.mxu0 }
 0x593   : > { %v5177_v55 = vrot.slane %v5169_v22, %v16223_v30  ;;  %v5184_v39 = vrot.slane %v5170_v44, %v16223_v30  ;;  %v5132_v37 = vmul.f32 %v15472_v62, %v4387_v18  ;;  %v5130_v23 = vmul.f32 %v15474_v49, %v4314_v45  ;;  %v15480_v18 = vpop.eup %15479 }
 0x594   : > { %v14874_v9 = vpop.f32.mrf.mxu1  ;;  %v14879_v59 = vpop.f32.mrf.mxu0 }
 0x595   : > { %v5185_v36 = vcombine.low %v5161_v42, %v5177_v55  ;;  %v5186_v60 = vcombine.high %v5161_v42, %v5177_v55  ;;  %v5201_v51 = vcombine.low %v5168_v8, %v5184_v39  ;;  %v5202_v3 = vcombine.high %v5168_v8, %v5184_v39  ;;  %v619_v8 = vld [vmem:[#allocation2 + $0x18] sm:$0xff] }
 0x596   : > { %14930 = vmatprep.subr.mxu1 %v619_v8 }
 0x597   : > { %v5193_v63 = vrot.slane %v5185_v36, %v16231_v46  ;;  %v5200_v11 = vrot.slane %v5186_v60, %v16231_v46  ;;  %v5209_v48 = vrot.slane %v5201_v51, %v16231_v46  ;;  %v5216_v52 = vrot.slane %v5202_v3, %v16231_v46  ;;  %v618_v36 = vld [vmem:[#allocation2 + $0x10] sm:$0xff]  ;;  %v15482_v60 = vpop.eup %15481  ;;  %v3943_v3 = vpop.xlane.xlu0 %3942  ;;  %14931 = vmatpush3.msra.mxu1 %v619_v8 }
 0x598   : > { %v15484_v62 = vpop.eup %15483  ;;  %14932 = vmatprep.subr.mxu1 %v618_v36  ;;  %15487 = vrcp.f32 %v3943_v3 }
 0x599   : > { %v5425_v20 = vcombine.low %v5193_v63, %v5200_v11  ;;  %v14309_v14 = vcombine.high %v5193_v63, %v5200_v11  ;;  %v5441_v6 = vcombine.low %v5209_v48, %v5216_v52  ;;  %v14310_v16 = vcombine.high %v5209_v48, %v5216_v52  ;;  %14933 = vmatpush3.msra.mxu1 %v618_v36 }
 0x59a   : > { %v4533_v58 = vpop.f32.mrf.mxu0  ;;  %15489 = vrcp.f32 %v3946_v61 }
 0x59b   : > { %v4460_v29 = vpop.f32.mrf.mxu1  ;;  %v5136_v27 = vmul.f32 %v15476_v57, %v4533_v58  ;;  %v5432_v25 = vrot.slane %v5425_v20, %v16223_v30  ;;  %v5440_v31 = vrot.slane %v14309_v14, %v16223_v30  ;;  %v5448_v17 = vrot.slane %v5441_v6, %v16223_v30  ;;  %v617_v20 = vld [vmem:[#allocation2 + $0x8] sm:$0xff]  ;;  %v616_v58 = vld [vmem:[#allocation2] sm:$0xff] }
 0x59c   : > { %v5134_v32 = vmul.f32 %v15478_v13, %v4460_v29  ;;  %v14889_v19 = vpop.f32.mrf.mxu0  ;;  %v5456_v24 = vrot.slane %v14310_v16, %v16223_v30  ;;  %v15486_v13 = vpop.eup %15485  ;;  %14934 = vmatprep.subr.mxu1 %v617_v20 }
 0x59d   : > { %v5237_v26 = vcombine.low %v5132_v37, %v5136_v27  ;;  %v5238_v56 = vcombine.high %v5132_v37, %v5136_v27  ;;  %v14884_v38 = vpop.f32.mrf.mxu1  ;;  %v5458_v10 = vcombine.high %v5432_v25, %v5440_v31  ;;  %v5457_v43 = vcombine.low %v5432_v25, %v5440_v31  ;;  %14935 = vmatpush3.msra.mxu1 %v617_v20 }
 0x59e   : > { %v5221_v50 = vcombine.low %v5130_v23, %v5134_v32  ;;  %v5222_v33 = vcombine.high %v5130_v23, %v5134_v32  ;;  %v5474_v34 = vcombine.high %v5448_v17, %v5456_v24  ;;  %v5473_v35 = vcombine.low %v5448_v17, %v5456_v24  ;;  %14936 = vmatprep.subr.mxu1 %v616_v58 }
 0x59f   : > { %v5245_v53 = vrot.slane %v5237_v26, %v16223_v30  ;;  %v5252_v21 = vrot.slane %v5238_v56, %v16223_v30  ;;  %v5472_v41 = vrot.slane %v5458_v10, %v16231_v46  ;;  %v16889_v0 = vrot.slane %v5457_v43, %v16231_v46  ;;  %v4606_v1 = vpop.f32.mrf.mxu1  ;;  %v3952_v43 = vpop.xlane.xlu1 %3951  ;;  %14937 = vmatpush3.msra.mxu1 %v616_v58 }
 0x5a0   : > { %v5229_v54 = vrot.slane %v5221_v50, %v16223_v30  ;;  %v5236_v40 = vrot.slane %v5222_v33, %v16223_v30  ;;  %v5488_v5 = vrot.slane %v5474_v34, %v16231_v46  ;;  %v16895_v4 = vrot.slane %v5473_v35, %v16231_v46  ;;  %14958 = vmatprep.subr.mxu1 %v18812_v12 }
 0x5a1   : > { %v14894_v45 = vpop.f32.mrf.mxu1  ;;  %v5138_v29 = vmul.f32 %v15480_v18, %v4606_v1  ;;  %15491 = vrcp.f32 %v3952_v43 }
 0x5a2   : > { %v5253_v15 = vcombine.low %v5229_v54, %v5245_v53  ;;  %v5254_v28 = vcombine.high %v5229_v54, %v5245_v53  ;;  %v5269_v22 = vcombine.low %v5236_v40, %v5252_v21  ;;  %v5270_v44 = vcombine.high %v5236_v40, %v5252_v21  ;;  %v3949_v40 = vpop.xlane.xlu0 %3948 }
 0x5a3   : > { %v5491_v2 = vcombine.low %v5472_v41, %v5488_v5  ;;  %v5490_v47 = vcombine.high %v16889_v0, %v16895_v4  ;;  %v5489_v42 = vcombine.low %v16889_v0, %v16895_v4  ;;  %v4679_v51 = vpop.f32.mrf.mxu0  ;;  %v5492_v7 = vcombine.high %v5472_v41, %v5488_v5 }
 0x5a4   : > { %v5261_v55 = vrot.slane %v5253_v15, %v16231_v46  ;;  %v5268_v39 = vrot.slane %v5254_v28, %v16231_v46  ;;  %v5277_v9 = vrot.slane %v5269_v22, %v16231_v46  ;;  %v5284_v59 = vrot.slane %v5270_v44, %v16231_v46 }
 0x5a5   : > { %5717 = vrot.lane.b32.xlu1 %v5491_v2, %s15844_s29  ;;  %5701 = vrot.lane.b32.xlu0 %v5490_v47, %s15845_s22  ;;  %v14899_v49 = vpop.f32.mrf.mxu0  ;;  %v5140_v27 = vmul.f32 %v15482_v60, %v4679_v51  ;;  %15493 = vrcp.f32 %v3949_v40  ;;  %v15488_v3 = vpop.eup %15487 }
 0x5a6   : > { %v5493_v63 = vcombine.low %v5261_v55, %v5268_v39  ;;  %v14311_v11 = vcombine.high %v5261_v55, %v5268_v39  ;;  %v5509_v48 = vcombine.low %v5277_v9, %v5284_v59  ;;  %v14312_v52 = vcombine.high %v5277_v9, %v5284_v59 }
 0x5a7   : > { %v4752_v37 = vpop.f32.mrf.mxu1  ;;  %v4825_v31 = vpop.f32.mrf.mxu0 }
 0x5a8   : > { %v5500_v14 = vrot.slane %v5493_v63, %v16223_v30  ;;  %v5508_v6 = vrot.slane %v14311_v11, %v16223_v30  ;;  %v5516_v16 = vrot.slane %v5509_v48, %v16223_v30  ;;  %v5524_v57 = vrot.slane %v14312_v52, %v16223_v30  ;;  %v15490_v52 = vpop.eup %15489 }
 0x5a9   : > { %v5142_v25 = vmul.f32 %v15484_v62, %v4752_v37  ;;  %5733 = vrot.lane.b32.xlu0 %v5492_v7, %s15846_s30  ;;  %v5144_v17 = vmul.f32 %v15486_v13, %v4825_v31  ;;  %v14904_v23 = vpop.f32.mrf.mxu1  ;;  %v14909_v38 = vpop.f32.mrf.mxu0 }
 0x5aa   : > { %v5525_v32 = vcombine.low %v5500_v14, %v5508_v6  ;;  %v5541_v19 = vcombine.low %v5516_v16, %v5524_v57  ;;  %v5526_v24 = vcombine.high %v5500_v14, %v5508_v6  ;;  %v5542_v10 = vcombine.high %v5516_v16, %v5524_v57 }
 0x5ab   : > { %v5289_v26 = vcombine.low %v5138_v29, %v5142_v25  ;;  %v5290_v56 = vcombine.high %v5138_v29, %v5142_v25  ;;  %v5305_v50 = vcombine.low %v5140_v27, %v5144_v17  ;;  %v5306_v33 = vcombine.high %v5140_v27, %v5144_v17 }
 0x5ac   : > { %v16913_v34 = vrot.slane %v5525_v32, %v16231_v46  ;;  %v16916_v35 = vrot.slane %v5541_v19, %v16231_v46  ;;  %v5540_v41 = vrot.slane %v5526_v24, %v16231_v46  ;;  %v5556_v54 = vrot.slane %v5542_v10, %v16231_v46 }
 0x5ad   : > { %v5297_v53 = vrot.slane %v5289_v26, %v16223_v30  ;;  %v5304_v21 = vrot.slane %v5290_v56, %v16223_v30  ;;  %v5313_v1 = vrot.slane %v5305_v50, %v16223_v30  ;;  %v5320_v5 = vrot.slane %v5306_v33, %v16223_v30 }
 0x5ae   : > { %v5558_v15 = vcombine.high %v16913_v34, %v16916_v35  ;;  %v5557_v28 = vcombine.low %v16913_v34, %v16916_v35  ;;  %v5559_v2 = vcombine.low %v5540_v41, %v5556_v54  ;;  %v5560_v51 = vcombine.high %v5540_v41, %v5556_v54  ;;  %v15492_v37 = vpop.eup %15491 }
 0x5af   : > { %v5321_v22 = vcombine.low %v5297_v53, %v5313_v1  ;;  %v5322_v44 = vcombine.high %v5297_v53, %v5313_v1  ;;  %v5337_v45 = vcombine.low %v5304_v21, %v5320_v5  ;;  %v5338_v18 = vcombine.high %v5304_v21, %v5320_v5 }
 0x5b0   : > { %5703 = vrot.lane.b32.xlu1 %v5558_v15, %s15845_s22 }
 0x5b1   : > { %v5329_v47 = vrot.slane %v5321_v22, %v16231_v46  ;;  %v5336_v8 = vrot.slane %v5322_v44, %v16231_v46  ;;  %v5345_v55 = vrot.slane %v5337_v45, %v16231_v46  ;;  %v5352_v39 = vrot.slane %v5338_v18, %v16231_v46 }
 0x5b2   : > { %v15494_v17 = vpop.eup %15493 }
 0x5b3   : > { %v5561_v9 = vcombine.low %v5329_v47, %v5336_v8  ;;  %v14313_v59 = vcombine.high %v5329_v47, %v5336_v8  ;;  %v5577_v36 = vcombine.low %v5345_v55, %v5352_v39  ;;  %v14314_v60 = vcombine.high %v5345_v55, %v5352_v39 }
 0x5b4   : > { %5719 = vrot.lane.b32.xlu1 %v5559_v2, %s15844_s29 }
 0x5b5   : > { %v5568_v61 = vrot.slane %v5561_v9, %v16223_v30  ;;  %v5576_v63 = vrot.slane %v14313_v59, %v16223_v30  ;;  %v5584_v11 = vrot.slane %v5577_v36, %v16223_v30  ;;  %v5592_v48 = vrot.slane %v14314_v60, %v16223_v30 }
 0x5b7   : > { %v5593_v62 = vcombine.low %v5568_v61, %v5576_v63  ;;  %v5609_v49 = vcombine.low %v5584_v11, %v5592_v48  ;;  %v5594_v7 = vcombine.high %v5568_v61, %v5576_v63  ;;  %v5610_v20 = vcombine.high %v5584_v11, %v5592_v48 }
 0x5b8   : > { %5735 = vrot.lane.b32.xlu1 %v5560_v51, %s15846_s30 }
 0x5b9   : > { %v4898_v14 = vpop.f32.mrf.mxu1  ;;  %v4971_v6 = vpop.f32.mrf.mxu0  ;;  %v16941_v16 = vrot.slane %v5593_v62, %v16231_v46  ;;  %v16944_v57 = vrot.slane %v5609_v49, %v16231_v46  ;;  %v5608_v27 = vrot.slane %v5594_v7, %v16231_v46  ;;  %v5624_v25 = vrot.slane %v5610_v20, %v16231_v46 }
 0x5ba   : > { %v5146_v19 = vmul.f32 %v15488_v3, %v4898_v14  ;;  %v5148_v24 = vmul.f32 %v15490_v52, %v4971_v6 }
 0x5bb   : > { %v14914_v58 = vpop.f32.mrf.mxu1  ;;  %v14919_v13 = vpop.f32.mrf.mxu0  ;;  %v5626_v29 = vcombine.high %v16941_v16, %v16944_v57  ;;  %v5625_v31 = vcombine.low %v16941_v16, %v16944_v57  ;;  %v5627_v43 = vcombine.low %v5608_v27, %v5624_v25  ;;  %v5628_v5 = vcombine.high %v5608_v27, %v5624_v25  ;;  %v14317_v57 = vld [vmem:[%s18793_s5] ss:$0 sm:$0xff] }
 0x5bd   : > { %v5044_v23 = vpop.f32.mrf.mxu1  ;;  %v5117_v32 = vpop.f32.mrf.mxu0  ;;  %5705 = vrot.lane.b32.xlu0 %v5626_v29, %s15845_s22 }
 0x5be   : > { %v5150_v26 = vmul.f32 %v15494_v17, %v5044_v23  ;;  %v5152_v56 = vmul.f32 %v15492_v37, %v5117_v32 }
 0x5bf   : > { %v14924_v38 = vpop.f32.mrf.mxu1  ;;  %v14929_v10 = vpop.f32.mrf.mxu0 }
 0x5c0   : > { %v5357_v50 = vcombine.low %v5146_v19, %v5150_v26  ;;  %v5358_v33 = vcombine.high %v5146_v19, %v5150_v26  ;;  %v5373_v53 = vcombine.low %v5148_v24, %v5152_v56  ;;  %v5374_v21 = vcombine.high %v5148_v24, %v5152_v56 }
 0x5c1   : > { %5721 = vrot.lane.b32.xlu0 %v5627_v43, %s15844_s29 }
 0x5c2   : > { %v5365_v41 = vrot.slane %v5357_v50, %v16223_v30  ;;  %v5372_v54 = vrot.slane %v5358_v33, %v16223_v30  ;;  %v5381_v40 = vrot.slane %v5373_v53, %v16223_v30  ;;  %v5388_v1 = vrot.slane %v5374_v21, %v16223_v30 }
 0x5c4   : > { %v5389_v15 = vcombine.low %v5365_v41, %v5381_v40  ;;  %v5390_v22 = vcombine.high %v5365_v41, %v5381_v40  ;;  %v5405_v44 = vcombine.low %v5372_v54, %v5388_v1  ;;  %v5406_v45 = vcombine.high %v5372_v54, %v5388_v1  ;;  %v15647_v41 = vld [vmem:[%s16065_s24 + $0x8] sm:$0xff]  ;;  %v15648_v1 = vld [vmem:[%s16065_s24] sm:$0xff] }
 0x5c5   : > { %5737 = vrot.lane.b32.xlu0 %v5628_v5, %s15846_s30 }
 0x5c6   : > { %v5397_v18 = vrot.slane %v5389_v15, %v16231_v46  ;;  %v5404_v2 = vrot.slane %v5390_v22, %v16231_v46  ;;  %v5413_v47 = vrot.slane %v5405_v44, %v16231_v46  ;;  %v5420_v8 = vrot.slane %v5406_v45, %v16231_v46 }
 0x5c8   : > { %v5629_v55 = vcombine.low %v5397_v18, %v5404_v2  ;;  %v14315_v39 = vcombine.high %v5397_v18, %v5404_v2  ;;  %v5645_v9 = vcombine.low %v5413_v47, %v5420_v8  ;;  %v14316_v59 = vcombine.high %v5413_v47, %v5420_v8  ;;  %v15649_v47 = vld [vmem:[%s16065_s24 + $0x10] sm:$0xff] }
 0x5ca   : > { %v5636_v36 = vrot.slane %v5629_v55, %v16223_v30  ;;  %v5644_v60 = vrot.slane %v14315_v39, %v16223_v30  ;;  %v5652_v51 = vrot.slane %v5645_v9, %v16223_v30  ;;  %v5660_v3 = vrot.slane %v14316_v59, %v16223_v30  ;;  %v15650_v55 = vld [vmem:[%s16065_s24 + $0x18] sm:$0xff] }
 0x5cc   : > { %v5661_v61 = vcombine.low %v5636_v36, %v5644_v60  ;;  %v5677_v63 = vcombine.low %v5652_v51, %v5660_v3  ;;  %v5662_v11 = vcombine.high %v5636_v36, %v5644_v60  ;;  %v5678_v48 = vcombine.high %v5652_v51, %v5660_v3 }
 0x5ce   : > { %v5669_v52 = vrot.slane %v5661_v61, %v16231_v46  ;;  %v5685_v62 = vrot.slane %v5677_v63, %v16231_v46  ;;  %v5676_v7 = vrot.slane %v5662_v11, %v16231_v46  ;;  %v5692_v20 = vrot.slane %v5678_v48, %v16231_v46 }
 0x5d0   : > { %v5694_v49 = vcombine.high %v5669_v52, %v5685_v62  ;;  %v5693_v14 = vcombine.low %v5669_v52, %v5685_v62  ;;  %v5695_v6 = vcombine.low %v5676_v7, %v5692_v20  ;;  %v5696_v37 = vcombine.high %v5676_v7, %v5692_v20  ;;  %v5870_v7 = vld [vmem:[#allocation5 + $0x10] sm:$0xff]  ;;  %v5869_v20 = vld [vmem:[#allocation5 + $0x8] sm:$0xff] }
 0x5d2   : > { %5707 = vrot.lane.b32.xlu1 %v5694_v49, %s15845_s22  ;;  %v5871_v49 = vld [vmem:[#allocation5 + $0x18] sm:$0xff] }
 0x5d3   : > { %14944 = vmatprep.subr.mxu0 %v5871_v49 }
 0x5d4   : > { %14945 = vmatpush3.msra.mxu0 %v5871_v49 }
 0x5d5   : > { %14946 = vmatprep.subr.mxu0 %v5870_v7 }
 0x5d6   : > { %5723 = vrot.lane.b32.xlu1 %v5695_v6, %s15844_s29  ;;  %14947 = vmatpush3.msra.mxu0 %v5870_v7 }
 0x5d7   : > { %14948 = vmatprep.subr.mxu0 %v5869_v20 }
 0x5d8   : > { %14949 = vmatpush3.msra.mxu0 %v5869_v20 }
 0x5da   : > { %5739 = vrot.lane.b32.xlu1 %v5696_v37, %s15846_s30 }
 0x617   : > { %v5702_v58 = vpop.permute.xlu0 %5701  ;;  %v5718_v13 = vpop.permute.xlu1 %5717 }
 0x618   : > { %v5745_v29 = vsel %vm2592_vm2, %v5489_v42, %v5702_v58 }
 0x619   : > { %v5750_v27 = vsel %vm5749_vm3, %v5745_v29, %v5718_v13 }
 0x61b   : > { %v5734_v25 = vpop.permute.xlu0 %5733 }
 0x61c   : > { %v5755_v17 = vsel %vm5754_vm4, %v5750_v27, %v5734_v25 }
 0x61d   : > { %14938 = vmatprep.mubr.msk.f32.mxu1 %vm621_vm0, %v5755_v17 }
 0x622   : > { %v5704_v23 = vpop.permute.xlu1 %5703 }
 0x623   : > { %v5746_v19 = vsel %vm2592_vm2, %v5557_v28, %v5704_v23 }
 0x626   : > { %v5720_v32 = vpop.permute.xlu1 %5719 }
 0x627   : > { %v5751_v0 = vsel %vm5749_vm3, %v5746_v19, %v5720_v32 }
 0x62a   : > { %v5736_v4 = vpop.permute.xlu1 %5735 }
 0x62b   : > { %v5756_v42 = vsel %vm5754_vm4, %v5751_v0, %v5736_v4 }
 0x62c   : > { %14939 = vmatmul.mubr.msk.f32.vlgmr.msra.gmra.mxu1 %vm621_vm0, %v5756_v42 }
 0x62f   : > { %v5706_v24 = vpop.permute.xlu0 %5705 }
 0x630   : > { %v5747_v56 = vsel %vm2592_vm2, %v5625_v31, %v5706_v24 }
 0x633   : > { %v5722_v26 = vpop.permute.xlu0 %5721 }
 0x634   : > { %v5752_v38 = vsel %vm5749_vm3, %v5747_v56, %v5722_v26 }
 0x637   : > { %v5738_v34 = vpop.permute.xlu0 %5737 }
 0x638   : > { %v5757_v35 = vsel %vm5754_vm4, %v5752_v38, %v5738_v34  ;;  %v14322_v38 = vld [vmem:[%s18794_s6] ss:$0 sm:$0xff] }
 0x639   : > { %14941 = vmatprep.mubr.msk.f32.mxu1 %vm621_vm0, %v5757_v35 }
 0x644   : > { %v5708_v28 = vpop.permute.xlu1 %5707 }
 0x645   : > { %v5748_v43 = vsel %vm2592_vm2, %v5693_v14, %v5708_v28  ;;  %v5868_v14 = vld [vmem:[#allocation5] sm:$0xff] }
 0x646   : > { %14950 = vmatprep.subr.mxu0 %v5868_v14 }
 0x647   : > { %14951 = vmatpush3.msra.mxu0 %v5868_v14 }
 0x648   : > { %v5724_v10 = vpop.permute.xlu1 %5723  ;;  %14963 = vmatprep.subr.mxu0 %v18812_v12 }
 0x649   : > { %v5753_v50 = vsel %vm5749_vm3, %v5748_v43, %v5724_v10  ;;  %v14323_v43 = vld [vmem:[%s18795_s7] ss:$0 sm:$0xff] }
 0x64c   : > { %v5740_v33 = vpop.permute.xlu1 %5739 }
 0x64d   : > { %v5758_v16 = vsel %vm5754_vm4, %v5753_v50, %v5740_v33 }
 0x64e   : > { %14942 = vmatmul.mubr.msk.f32.gmra.mxu1 %vm621_vm0, %v5758_v16 }
 0x64f   : > { %14960 = vmatprep.mubr.msk.f32.mxu1 %vm15840_vm1, %v18812_v12 }
 0x6ec   : > { %v14940_v31 = vpop.f32.mrf.mxu1 }
 0x6ed   : > { %v5849_v53 = vadd.f32 %v14940_v31, %v14317_v57 }
 0x6ee   : > { %v5843_v21 = vpop.f32.mrf.mxu1 }
 0x6ef   : > { %v17005_v54 = vadd.f32 %v15647_v41, %v5849_v53  ;;  %v5844_v40 = vadd.f32 %v14317_v57, %v5843_v21 }
 0x6f1   : > { %18836 = vst [vmem:[#allocation21_spill] sm:$0xff] %v17005_v54  ;;  %v17008_v5 = vadd.f32 %v15648_v1, %v5844_v40  ;;  %v5880_v15 = vsel %vm621_vm0, %v17005_v54, 0.0 }
 0x6f2   : > { %5881 = vadd.xlane.f32.xlu1 %v5880_v15 }
 0x6f3   : > { %18837 = vst [vmem:[#allocation22_spill] sm:$0xff] %v17008_v5  ;;  %v5877_v22 = vsel %vm621_vm0, %v17008_v5, 0.0 }
 0x6f4   : > { %5878 = vadd.xlane.f32.xlu0 %v5877_v22 }
 0x70e   : > { %v14943_v44 = vpop.f32.mrf.mxu1 }
 0x70f   : > { %v5859_v18 = vadd.f32 %v14943_v44, %v14317_v57 }
 0x710   : > { %v5853_v45 = vpop.f32.mrf.mxu1 }
 0x711   : > { %v5854_v2 = vadd.f32 %v14317_v57, %v5853_v45  ;;  %v17018_v39 = vadd.f32 %v15650_v55, %v5859_v18 }
 0x713   : > { %v17015_v8 = vadd.f32 %v15649_v47, %v5854_v2  ;;  %18839 = vst [vmem:[#allocation24_spill] sm:$0xff] %v17018_v39  ;;  %v5886_v59 = vsel %vm621_vm0, %v17018_v39, 0.0 }
 0x715   : > { %18838 = vst [vmem:[#allocation23_spill] sm:$0xff] %v17015_v8  ;;  %v5883_v9 = vsel %vm621_vm0, %v17015_v8, 0.0 }
 0x716   : > { %5884 = vadd.xlane.f32.xlu0 %v5883_v9 }
 0x71a   : > { %5887 = vadd.xlane.f32.xlu0 %v5886_v59 }
 0x77b   : > { %v5882_v36 = vpop.xlane.xlu1 %5881 }
 0x77c   : > { %v5890_v60 = vmul.f32 0.03125, %v5882_v36 }
 0x77d   : > { %v5879_v51 = vpop.xlane.xlu0 %5878 }
 0x77e   : > { %v5894_v3 = vsub.f32 %v17005_v54, %v5890_v60  ;;  %v5889_v61 = vmul.f32 0.03125, %v5879_v51 }
 0x780   : > { %v5893_v63 = vsub.f32 %v17008_v5, %v5889_v61  ;;  %v5898_v11 = vmul.f32 %v5894_v3, %v5894_v3 }
 0x782   : > { %v5904_v48 = vsel %vm621_vm0, %v5898_v11, 0.0  ;;  %v5897_v52 = vmul.f32 %v5893_v63, %v5893_v63 }
 0x783   : > { %5905 = vadd.xlane.f32.xlu1 %v5904_v48 }
 0x784   : > { %v5901_v62 = vsel %vm621_vm0, %v5897_v52, 0.0 }
 0x785   : > { %5902 = vadd.xlane.f32.xlu0 %v5901_v62 }
 0x79f   : > { %v5885_v6 = vpop.xlane.xlu0 %5884 }
 0x7a0   : > { %v5891_v37 = vmul.f32 0.03125, %v5885_v6 }
 0x7a2   : > { %v5895_v58 = vsub.f32 %v17015_v8, %v5891_v37 }
 0x7a3   : > { %v5888_v13 = vpop.xlane.xlu0 %5887 }
 0x7a4   : > { %v5892_v29 = vmul.f32 0.03125, %v5888_v13  ;;  %v5899_v27 = vmul.f32 %v5895_v58, %v5895_v58 }
 0x7a6   : > { %v5896_v25 = vsub.f32 %v17018_v39, %v5892_v29  ;;  %v5907_v17 = vsel %vm621_vm0, %v5899_v27, 0.0 }
 0x7a7   : > { %5908 = vadd.xlane.f32.xlu0 %v5907_v17 }
 0x7a8   : > { %v5900_v23 = vmul.f32 %v5896_v25, %v5896_v25 }
 0x7aa   : > { %v5910_v32 = vsel %vm621_vm0, %v5900_v23, 0.0 }
 0x7ab   : > { %5911 = vadd.xlane.f32.xlu1 %v5910_v32 }
 0x80c   : > { %v5906_v19 = vpop.xlane.xlu1 %5905 }
 0x80d   : > { %v5914_v0 = vmul.f32 0.03125, %v5906_v19 }
 0x80e   : > { %v5903_v4 = vpop.xlane.xlu0 %5902 }
 0x80f   : > { %v5918_v42 = vadd.f32 1e-05, %v5914_v0  ;;  %v5913_v24 = vmul.f32 0.03125, %v5903_v4 }
 0x811   : > { %15495 = vrsqrt.f32 %v5918_v42  ;;  %v5917_v26 = vadd.f32 1e-05, %v5913_v24 }
 0x813   : > { %15497 = vrsqrt.f32 %v5917_v26 }
 0x81e   : > { %v15496_v56 = vpop.eup %15495 }
 0x81f   : > { %v5926_v34 = vmul.f32 %v15496_v56, %v5894_v3 }
 0x820   : > { %v15498_v35 = vpop.eup %15497 }
 0x821   : > { %v5925_v28 = vmul.f32 %v15498_v35, %v5893_v63  ;;  %v5936_v10 = vmul.f32 %v14322_v38, %v5926_v34 }
 0x823   : > { %v5935_v50 = vmul.f32 %v14322_v38, %v5925_v28  ;;  %v5946_v16 = vadd.f32 %v14323_v43, %v5936_v10 }
 0x825   : > { %v5945_v33 = vadd.f32 %v14323_v43, %v5935_v50 }
 0x827   : > { %14952 = vmatprep.mubr.msk.f32.mxu0 %vm621_vm0, %v5945_v33 }
 0x828   : > { %14953 = vmatmul.mubr.msk.f32.vlgmr.msra.gmra.mxu0 %vm621_vm0, %v5946_v16 }
 0x830   : > { %v5909_v57 = vpop.xlane.xlu0 %5908 }
 0x831   : > { %v5915_v31 = vmul.f32 0.03125, %v5909_v57 }
 0x833   : > { %v5919_v53 = vadd.f32 1e-05, %v5915_v31 }
 0x834   : > { %v5912_v21 = vpop.xlane.xlu1 %5911 }
 0x835   : > { %15499 = vrsqrt.f32 %v5919_v53  ;;  %v5916_v41 = vmul.f32 0.03125, %v5912_v21 }
 0x837   : > { %v5920_v40 = vadd.f32 1e-05, %v5916_v41 }
 0x839   : > { %15501 = vrsqrt.f32 %v5920_v40 }
 0x842   : > { %v15500_v1 = vpop.eup %15499 }
 0x843   : > { %v5927_v15 = vmul.f32 %v15500_v1, %v5895_v58 }
 0x845   : > { %v5937_v22 = vmul.f32 %v14322_v38, %v5927_v15 }
 0x846   : > { %v15502_v44 = vpop.eup %15501 }
 0x847   : > { %v5947_v45 = vadd.f32 %v14323_v43, %v5937_v22  ;;  %v5928_v18 = vmul.f32 %v15502_v44, %v5896_v25 }
 0x849   : > { %14955 = vmatprep.mubr.msk.f32.mxu0 %vm621_vm0, %v5947_v45  ;;  %v5938_v2 = vmul.f32 %v14322_v38, %v5928_v18 }
 0x84b   : > { %v5948_v47 = vadd.f32 %v14323_v43, %v5938_v2 }
 0x84d   : > { %14956 = vmatmul.mubr.msk.f32.gmra.mxu0 %vm621_vm0, %v5948_v47 }
 0x84e   : > { %14965 = vmatprep.mubr.msk.f32.mxu0 %vm15840_vm1, %v18812_v12 }
 0x8e8   : > { %v14954_v55 = vpop.f32.mrf.mxu0 }
 0x8e9   : > { %6640 = vrot.lane.b32.xlu1 %v14954_v55, %s15836_s19  ;;  %v17066_v51 = vmul.f32 0.35355338, %v14954_v55 }
 0x8ea   : > { %v6027_v9 = vpop.f32.mrf.mxu0 }
 0x8eb   : > { %6638 = vrot.lane.b32.xlu0 %v6027_v9, %s15836_s19  ;;  %v17057_v60 = vmul.f32 0.35355338, %v6027_v9 }
 0x8ed   : > { %6648 = vrot.lane.b32.xlu1 %v14954_v55, %s15835_s18 }
 0x8ef   : > { %6646 = vrot.lane.b32.xlu0 %v6027_v9, %s15835_s18 }
 0x8f1   : > { %6656 = vrot.lane.b32.xlu1 %v14954_v55, %s15837_s26 }
 0x8f3   : > { %6654 = vrot.lane.b32.xlu0 %v6027_v9, %s15837_s26 }
 0x90d   : > { %v14957_v59 = vpop.f32.mrf.mxu0 }
 0x90e   : > { %6644 = vrot.lane.b32.xlu1 %v14957_v59, %s15836_s19  ;;  %v17081_v61 = vmul.f32 0.35355338, %v14957_v59 }
 0x90f   : > { %v6037_v36 = vpop.f32.mrf.mxu0 }
 0x910   : > { %6650 = vrot.lane.b32.xlu0 %v6037_v36, %s15835_s18  ;;  %v17073_v3 = vmul.f32 0.35355338, %v6037_v36 }
 0x912   : > { %6652 = vrot.lane.b32.xlu1 %v14957_v59, %s15835_s18 }
 0x914   : > { %6658 = vrot.lane.b32.xlu0 %v6037_v36, %s15837_s26 }
 0x916   : > { %6642 = vrot.lane.b32.xlu1 %v6037_v36, %s15836_s19 }
 0x918   : > { %6662 = vrot.lane.b32.xlu0 %v6027_v9, %s15838_s0 }
 0x91a   : > { %6660 = vrot.lane.b32.xlu1 %v14957_v59, %s15837_s26 }
 0x91c   : > { %6054 = vrot.lane.b32.xlu0 %v17057_v60, %s15836_s19 }
 0x91e   : > { %6664 = vrot.lane.b32.xlu1 %v14954_v55, %s15838_s0 }
 0x920   : > { %6066 = vrot.lane.b32.xlu0 %v17057_v60, %s15835_s18 }
 0x922   : > { %6668 = vrot.lane.b32.xlu1 %v14957_v59, %s15838_s0 }
 0x924   : > { %6078 = vrot.lane.b32.xlu0 %v17057_v60, %s15837_s26 }
 0x926   : > { %6056 = vrot.lane.b32.xlu1 %v17066_v51, %s15836_s19 }
 0x928   : > { %6666 = vrot.lane.b32.xlu0 %v6037_v36, %s15838_s0 }
 0x92a   : > { %6068 = vrot.lane.b32.xlu1 %v17066_v51, %s15835_s18 }
 0x92c   : > { %6058 = vrot.lane.b32.xlu0 %v17073_v3, %s15836_s19 }
 0x92e   : > { %6080 = vrot.lane.b32.xlu1 %v17066_v51, %s15837_s26 }
 0x930   : > { %6070 = vrot.lane.b32.xlu0 %v17073_v3, %s15835_s18 }
 0x932   : > { %6060 = vrot.lane.b32.xlu1 %v17081_v61, %s15836_s19 }
 0x936   : > { %6072 = vrot.lane.b32.xlu1 %v17081_v61, %s15835_s18  ;;  %s18744_s18 = scalar_lea.hbm %s18805_s17, %s14511_s23 }
 0x95b   : > { %v6641_v63 = vpop.permute.xlu1 %6640 }
 0x95c   : > { %6672 = vrot.lane.b32.xlu1 %v6641_v63, %s15838_s0 }
 0x95d   : > { %v6639_v11 = vpop.permute.xlu0 %6638 }
 0x95e   : > { %6670 = vrot.lane.b32.xlu0 %v6639_v11, %s15838_s0 }
 0x95f   : > { %v6649_v48 = vpop.permute.xlu1 %6648 }
 0x960   : > { %6680 = vrot.lane.b32.xlu1 %v6649_v48, %s15838_s0 }
 0x961   : > { %v6647_v52 = vpop.permute.xlu0 %6646 }
 0x962   : > { %6678 = vrot.lane.b32.xlu0 %v6647_v52, %s15838_s0 }
 0x963   : > { %v6657_v62 = vpop.permute.xlu1 %6656 }
 0x964   : > { %6688 = vrot.lane.b32.xlu1 %v6657_v62, %s15838_s0 }
 0x965   : > { %v6655_v49 = vpop.permute.xlu0 %6654 }
 0x966   : > { %6686 = vrot.lane.b32.xlu0 %v6655_v49, %s15838_s0 }
 0x980   : > { %v6645_v7 = vpop.permute.xlu1 %6644 }
 0x981   : > { %6676 = vrot.lane.b32.xlu1 %v6645_v7, %s15838_s0 }
 0x982   : > { %v6651_v6 = vpop.permute.xlu0 %6650 }
 0x984   : > { %v6653_v20 = vpop.permute.xlu1 %6652 }
 0x985   : > { %6684 = vrot.lane.b32.xlu1 %v6653_v20, %s15838_s0 }
 0x986   : > { %v6659_v58 = vpop.permute.xlu0 %6658 }
 0x988   : > { %v6643_v14 = vpop.permute.xlu1 %6642 }
 0x989   : > { %6674 = vrot.lane.b32.xlu0 %v6643_v14, %s15838_s0 }
 0x98a   : > { %v17125_v29 = vpop.permute.xlu0 %6662 }
 0x98c   : > { %v17098_v37 = vpop.permute.xlu1 %6660 }
 0x98d   : > { %18840 = vst [vmem:[#allocation25_spill] sm:$0xff] %v17098_v37  ;;  %6692 = vrot.lane.b32.xlu1 %v17098_v37, %s15838_s0  ;;  %6682 = vrot.lane.b32.xlu0 %v6651_v6, %s15838_s0 }
 0x98e   : > { %v6055_v25 = vpop.permute.xlu0 %6054 }
 0x990   : > { %v17123_v13 = vpop.permute.xlu1 %6664 }
 0x991   : > { %6084 = vrot.lane.b32.xlu1 %v17081_v61, %s15837_s26  ;;  %6690 = vrot.lane.b32.xlu0 %v6659_v58, %s15838_s0  ;;  %s15847_s0 = smov [#allocation10]  }
 0x992   : > { %v6067_v23 = vpop.permute.xlu0 %6066 }
 0x994   : > { %v17127_v27 = vpop.permute.xlu1 %6668 }
 0x995   : > { %7256 = vrot.lane.b32.xlu1 %v14954_v55, %s15841_s21  ;;  %6082 = vrot.lane.b32.xlu0 %v17073_v3, %s15837_s26  ;;  %s598_s26 = sand.u32 1, %s15819_s25  }
 0x996   : > { %v6079_v19 = vpop.permute.xlu0 %6078  ;;  %s18747_s28 = scalar_lea.sflag [#allocation4], %s598_s26 }
 0x998   : > { %v17129_v17 = vpop.permute.xlu1 %6056 }
 0x999   : > { %7258 = vrot.lane.b32.xlu1 %v6037_v36, %s15841_s21  ;;  %7254 = vrot.lane.b32.xlu0 %v6027_v9, %s15841_s21 }
 0x99a   : > { %v17135_v4 = vpop.permute.xlu0 %6666 }
 0x99c   : > { %v17131_v32 = vpop.permute.xlu1 %6068 }
 0x99d   : > { %7260 = vrot.lane.b32.xlu1 %v14957_v59, %s15841_s21  ;;  %7262 = vrot.lane.b32.xlu0 %v6639_v11, %s15841_s21  ;;  %v6106_v59 = vcombine.low %v6055_v25, %v6079_v19 }
 0x99e   : > { %v17139_v24 = vpop.permute.xlu0 %6058 }
 0x9a0   : > { %v17133_v0 = vpop.permute.xlu1 %6080 }
 0x9a1   : > { %7264 = vrot.lane.b32.xlu1 %v6641_v63, %s15841_s21  ;;  %7270 = vrot.lane.b32.xlu0 %v6647_v52, %s15841_s21 }
 0x9a2   : > { %v17145_v38 = vpop.permute.xlu0 %6070 }
 0x9a4   : > { %v17137_v42 = vpop.permute.xlu1 %6060 }
 0x9a5   : > { %7268 = vrot.lane.b32.xlu1 %v6645_v7, %s15841_s21  ;;  %7278 = vrot.lane.b32.xlu0 %v6655_v49, %s15841_s21  ;;  %v6107_v49 = vcombine.high %v6055_v25, %v6079_v19  ;;  %v6174_v25 = vcombine.low %v17129_v17, %v17133_v0 }
 0x9a8   : > { %v17141_v26 = vpop.permute.xlu1 %6072 }
 0x9a9   : > { %7272 = vrot.lane.b32.xlu1 %v6649_v48, %s15841_s21  ;;  %7266 = vrot.lane.b32.xlu0 %v6643_v14, %s15841_s21  ;;  %v6294_v19 = vcombine.low %v17081_v61, %v17141_v26 }
 0x9ad   : > { %7276 = vrot.lane.b32.xlu1 %v6653_v20, %s15841_s21  ;;  %7274 = vrot.lane.b32.xlu0 %v6651_v6, %s15841_s21 }
 0x9b1   : > { %7280 = vrot.lane.b32.xlu1 %v6657_v62, %s15841_s21  ;;  %7282 = vrot.lane.b32.xlu0 %v6659_v58, %s15841_s21  ;;  %v6090_v62 = vcombine.low %v17057_v60, %v6067_v23  ;;  %v6091_v58 = vcombine.high %v17057_v60, %v6067_v23  ;;  %v6158_v23 = vcombine.low %v17066_v51, %v17131_v32 }
 0x9ce   : > { %v17143_v56 = vpop.permute.xlu1 %6672 }
 0x9d0   : > { %v17147_v34 = vpop.permute.xlu0 %6670 }
 0x9d2   : > { %v17149_v35 = vpop.permute.xlu1 %6680 }
 0x9d3   : > { %v6778_v22 = vcombine.low %v17123_v13, %v17149_v35 }
 0x9d4   : > { %v17151_v28 = vpop.permute.xlu0 %6678 }
 0x9d5   : > { %v6710_v18 = vcombine.low %v17125_v29, %v17151_v28  ;;  %v17201_v36 = vrot.slane %v6778_v22, %v16223_v30 }
 0x9d6   : > { %v17153_v10 = vpop.permute.xlu1 %6688 }
 0x9d7   : > { %v6794_v41 = vcombine.low %v17143_v56, %v17153_v10  ;;  %v17211_v52 = vrot.slane %v6710_v18, %v16223_v30  ;;  %v6105_v18 = vrot.slane %v6091_v58, %v16223_v30  ;;  %v6159_v58 = vcombine.high %v17066_v51, %v17131_v32 }
 0x9d8   : > { %v17157_v50 = vpop.permute.xlu0 %6686 }
 0x9d9   : > { %v6726_v15 = vcombine.low %v17147_v34, %v17157_v50  ;;  %v17189_v2 = vrot.slane %v6794_v41, %v16223_v30 }
 0x9db   : > { %v17198_v9 = vrot.slane %v6726_v15, %v16223_v30  ;;  %v6810_v7 = vcombine.low %v17201_v36, %v17189_v2  ;;  %v6121_v15 = vrot.slane %v6107_v49, %v16223_v30 }
 0x9dd   : > { %v6742_v14 = vcombine.low %v17211_v52, %v17198_v9  ;;  %v17237_v60 = vrot.slane %v6810_v7, %v16231_v46  ;;  %v6182_v7 = vrot.slane %v6174_v25, %v16223_v30  ;;  %v6138_v12 = vcombine.low %v6105_v18, %v6121_v15 }
 0x9df   : > { %v6750_v22 = vrot.slane %v6742_v14, %v16231_v46 }
 0x9f3   : > { %v17155_v43 = vpop.permute.xlu1 %6676 }
 0x9f7   : > { %v17161_v16 = vpop.permute.xlu1 %6684 }
 0x9f8   : > { %v6914_v40 = vcombine.low %v17127_v27, %v17161_v16 }
 0x9fa   : > { %v17192_v47 = vrot.slane %v6914_v40, %v16223_v30 }
 0x9fb   : > { %v17159_v33 = vpop.permute.xlu0 %6674 }
 0x9ff   : > { %v17163_v57 = vpop.permute.xlu0 %6682  ;;  %v17165_v31 = vpop.permute.xlu1 %6692 }
 0xa00   : > { %v6930_v53 = vcombine.low %v17155_v43, %v17165_v31  ;;  %v6846_v45 = vcombine.low %v17135_v4, %v17163_v57 }
 0xa02   : > { %v17182_v44 = vrot.slane %v6930_v53, %v16223_v30  ;;  %v17206_v11 = vrot.slane %v6846_v45, %v16223_v30  ;;  %v6114_v53 = vrot.slane %v6106_v59, %v16223_v30 }
 0xa03   : > { %v17169_v21 = vpop.permute.xlu0 %6690  ;;  %v17208_v48 = vpop.permute.xlu1 %6084 }
 0xa04   : > { %v6862_v1 = vcombine.low %v17159_v33, %v17169_v21  ;;  %v6946_v63 = vcombine.low %v17192_v47, %v17182_v44  ;;  %v6310_v6 = vcombine.low %v17137_v42, %v17208_v48 }
 0xa06   : > { %v17195_v55 = vrot.slane %v6862_v1, %v16223_v30  ;;  %v17225_v41 = vrot.slane %v6946_v63, %v16231_v46  ;;  %v6098_v1 = vrot.slane %v6090_v62, %v16223_v30  ;;  %v17243_v45 = vrot.slane %v6310_v6, %v16223_v30 }
 0xa07   : > { %v6175_v63 = vcombine.high %v17129_v17, %v17133_v0  ;;  %v6139_v6 = vcombine.high %v6105_v18, %v6121_v15  ;;  %v17257_v39 = vpop.permute.xlu0 %6082  ;;  %v6166_v17 = vrot.slane %v6158_v23, %v16223_v30  ;;  %v6226_v0 = vcombine.low %v17073_v3, %v17145_v38 }
 0xa08   : > { %v6878_v20 = vcombine.low %v17206_v11, %v17195_v55  ;;  %v6122_v59 = vcombine.low %v6098_v1, %v6114_v53  ;;  %v6990_v62 = vcombine.low %v17237_v60, %v17225_v41  ;;  %v6123_v49 = vcombine.high %v6098_v1, %v6114_v53 }
 0xa09   : > { %v6190_v32 = vcombine.low %v6166_v17, %v6182_v7  ;;  %v6242_v23 = vcombine.low %v17139_v24, %v17257_v39  ;;  %v17276_v18 = vrot.slane %v6138_v12, %v16231_v46  ;;  %v17279_v8 = vrot.slane %v6139_v6, %v16231_v46 }
 0xa0a   : > { %v17232_v40 = vrot.slane %v6878_v20, %v16231_v46  ;;  %v17252_v20 = vrot.slane %v6294_v19, %v16223_v30  ;;  %v17266_v19 = vrot.slane %v6175_v63, %v16223_v30  ;;  %v6997_v1 = vrot.slane %v6990_v62, %v16223_v30 }
 0xa0b   : > { %v6130_v15 = vrot.slane %v6122_v59, %v16231_v46  ;;  %v17271_v51 = vrot.slane %v6123_v49, %v16231_v46  ;;  %v17282_v63 = vrot.slane %v6159_v58, %v16223_v30  ;;  %v6227_v59 = vcombine.high %v17073_v3, %v17145_v38 }
 0xa0c   : > { %v6982_v14 = vcombine.low %v6750_v22, %v17232_v40  ;;  %v6326_v53 = vcombine.low %v17252_v20, %v17243_v45  ;;  %v17287_v62 = vrot.slane %v6226_v0, %v16223_v30  ;;  %v17291_v5 = vrot.slane %v6242_v23, %v16223_v30 }
 0xa0d   : > { %v6191_v12 = vcombine.high %v6166_v17, %v6182_v7  ;;  %v6206_v6 = vcombine.low %v17282_v63, %v17266_v19  ;;  %v6295_v58 = vcombine.high %v17081_v61, %v17141_v26  ;;  %v6198_v37 = vrot.slane %v6190_v32, %v16231_v46 }
 0xa0e   : > { %v6989_v25 = vrot.slane %v6982_v14, %v16223_v30  ;;  %v6334_v49 = vrot.slane %v6326_v53, %v16231_v46  ;;  %v6779_v3 = vcombine.high %v17123_v13, %v17149_v35  ;;  %v6795_v38 = vcombine.high %v17143_v56, %v17153_v10 }
 0xa0f   : > { %v6258_v0 = vcombine.low %v17287_v62, %v17291_v5  ;;  %v6207_v7 = vcombine.high %v17282_v63, %v17266_v19  ;;  %v6711_v17 = vcombine.high %v17125_v29, %v17151_v28  ;;  %v14336_v61 = vcombine.high %v6750_v22, %v17232_v40 }
 0xa10   : > { %v6998_v14 = vcombine.low %v6989_v25, %v6997_v1  ;;  %v18841_v26 = vmov 0.0   ;;  %v17313_v13 = vrot.slane %v6227_v59, %v16223_v30  ;;  %v6727_v56 = vcombine.high %v17147_v34, %v17157_v50 }
 0xa11   : > { %v6370_v35 = vcombine.low %v6198_v37, %v6334_v49  ;;  %v6266_v10 = vrot.slane %v6258_v0, %v16231_v46  ;;  %v17320_v32 = vrot.slane %v6191_v12, %v16231_v46  ;;  %v17323_v29 = vrot.slane %v6206_v6, %v16231_v46 }
 0xa12   : > { %v7006_v54 = vrot.slane %v6998_v14, %v16231_v46  ;;  %v17326_v28 = vrot.slane %v6295_v58, %v16223_v30  ;;  %v17332_v34 = vrot.slane %v6779_v3, %v16223_v30  ;;  %v17335_v50 = vrot.slane %v6795_v38, %v16223_v30 }
 0xa13   : > { %v6811_v40 = vcombine.high %v17201_v36, %v17189_v2  ;;  %v6362_v22 = vcombine.low %v6130_v15, %v6266_v10  ;;  %v17341_v23 = vrot.slane %v6711_v17, %v16223_v30  ;;  %v7023_v14 = vrot.slane %v14336_v61, %v16223_v30 }
 0xa14   : > { %14959 = vmatpush3.xpose.msk.msra.mxu1 %vm2592_vm2, %v7006_v54  ;;  %v7014_v53 = vcombine.high %v7006_v54, %v18841_v26  ;;  %v14337_v54 = vcombine.high %v17237_v60, %v17225_v41  ;;  %v14328_v41 = vcombine.high %v6130_v15, %v6266_v10  ;;  %v6999_v60 = vcombine.high %v6989_v25, %v6997_v1 }
 0xa15   : > { %14968 = vmatprep.subr.mxu1 %v18841_v26  ;;  %v17345_v59 = vrot.slane %v6727_v56, %v16223_v30  ;;  %v6743_v12 = vcombine.high %v17211_v52, %v17198_v9  ;;  %v6377_v6 = vrot.slane %v6370_v35, %v16223_v30  ;;  %v6369_v2 = vrot.slane %v6362_v22, %v16223_v30 }
 0xa16   : > { %14964 = vmatpush3.xpose.msk.msra.mxu0 %vm2592_vm2, %v7014_v53  ;;  %v6947_v36 = vcombine.high %v17192_v47, %v17182_v44  ;;  %v7031_v58 = vrot.slane %v14337_v54, %v16223_v30  ;;  %v14329_v3 = vcombine.high %v6198_v37, %v6334_v49  ;;  %v6879_v15 = vcombine.high %v17206_v11, %v17195_v55 }
 0xa17   : > { %14973 = vmatprep.subr.mxu0 %v18841_v26  ;;  %v17357_v25 = vrot.slane %v6811_v40, %v16231_v46  ;;  %v6826_v1 = vcombine.low %v17332_v34, %v17335_v50  ;;  %v6827_v9 = vcombine.high %v17332_v34, %v17335_v50  ;;  %v6378_v52 = vcombine.low %v6369_v2, %v6377_v6 }
 0xa18   : > { %v17364_v38 = vrot.slane %v14328_v41, %v16223_v30  ;;  %v7013_v44 = vrot.slane %v6999_v60, %v16231_v46  ;;  %v6379_v47 = vcombine.high %v6369_v2, %v6377_v6  ;;  %v7032_v37 = vcombine.low %v7023_v14, %v7031_v58 }
 0xa19   : > { %v17368_v49 = vrot.slane %v6743_v12, %v16231_v46  ;;  %v6758_v55 = vcombine.low %v17341_v23, %v17345_v59  ;;  %v6863_v11 = vcombine.high %v17159_v33, %v17169_v21  ;;  %v6386_v0 = vrot.slane %v6378_v52, %v16231_v46 }
 0xa1a   : > { %v6915_v17 = vcombine.high %v17127_v27, %v17161_v16  ;;  %v17378_v61 = vrot.slane %v6947_v36, %v16231_v46  ;;  %v17381_v53 = vrot.slane %v14329_v3, %v16223_v30  ;;  %v17384_v56 = vrot.slane %v6879_v15, %v16231_v46 }
 0xa1b   : > { %v6931_v35 = vcombine.high %v17155_v43, %v17165_v31  ;;  %v6259_v33 = vcombine.high %v17287_v62, %v17291_v5  ;;  %14961 = vmatmul.mubr.msk.f32.vlgmr.msra.gmra.mxu1 %vm2592_vm2, %v6386_v0  ;;  %v6394_v21 = vcombine.high %v6386_v0, %v18841_v26  ;;  %v6393_v27 = vrot.slane %v6379_v47, %v16231_v46 }
 0xa1c   : > { %14969 = vmatpush3.xpose.msk.msra.mxu1 %vm2592_vm2, %v7013_v44  ;;  %v7015_v16 = vcombine.high %v7013_v44, %v18841_v26  ;;  %14970 = vmatprep.mubr.msk.f32.mxu1 %vm15840_vm1, %v18841_v26  ;;  %v7040_v10 = vrot.slane %v7032_v37, %v16231_v46  ;;  %v6412_v43 = vcombine.low %v17364_v38, %v17381_v53 }
 0xa1d   : > { %v6847_v5 = vcombine.high %v17135_v4, %v17163_v57  ;;  %v17403_v31 = vrot.slane %v6863_v11, %v16223_v30  ;;  %14966 = vmatmul.mubr.msk.f32.vlgmr.msra.gmra.mxu0 %vm2592_vm2, %v6394_v21  ;;  %14978 = vmatprep.subr.mxu1 %v18841_v26  ;;  %v7033_v62 = vcombine.high %v7023_v14, %v7031_v58 }
 0xa1e   : > { %v7058_v54 = vcombine.low %v17357_v25, %v17378_v61  ;;  %v6327_v40 = vcombine.high %v17252_v20, %v17243_v45  ;;  %v7050_v22 = vcombine.low %v17368_v49, %v17384_v56  ;;  %14974 = vmatpush3.xpose.msk.msra.mxu0 %vm2592_vm2, %v7015_v16  ;;  %14975 = vmatprep.mubr.msk.f32.mxu0 %vm15840_vm1, %v18841_v26 }
 0xa1f   : > { %v6243_v4 = vcombine.high %v17139_v24, %v17257_v39  ;;  %14971 = vmatmul.mubr.msk.f32.vlgmr.msra.gmra.mxu1 %vm2592_vm2, %v6393_v27  ;;  %14983 = vmatprep.subr.mxu0 %v18841_v26  ;;  %v6395_v57 = vcombine.high %v6393_v27, %v18841_v26  ;;  %v6420_v14 = vrot.slane %v6412_v43, %v16231_v46 }
 0xa20   : > { %v6273_v45 = vrot.slane %v6259_v33, %v16231_v46  ;;  %14979 = vmatpush3.xpose.msk.msra.mxu1 %vm2592_vm2, %v7040_v10  ;;  %v7048_v20 = vcombine.high %v7040_v10, %v18841_v26  ;;  %14980 = vmatprep.mubr.msk.f32.mxu1 %vm15840_vm1, %v18841_v26  ;;  %v7047_v41 = vrot.slane %v7033_v62, %v16231_v46 }
 0xa21   : > { %v17429_v39 = vrot.slane %v6931_v35, %v16223_v30  ;;  %v17432_v24 = vrot.slane %v6847_v5, %v16223_v30  ;;  %v6311_v60 = vcombine.high %v17137_v42, %v17208_v48  ;;  %14976 = vmatmul.mubr.msk.f32.vlgmr.msra.gmra.mxu0 %vm2592_vm2, %v6395_v57  ;;  %14988 = vmatprep.subr.mxu1 %v18841_v26 }
 0xa22   : > { %v17439_v12 = vrot.slane %v6915_v17, %v16223_v30  ;;  %v6341_v6 = vrot.slane %v6327_v40, %v16231_v46  ;;  %v17443_v2 = vrot.slane %v7050_v22, %v16223_v30  ;;  %14984 = vmatpush3.xpose.msk.msra.mxu0 %vm2592_vm2, %v7048_v20  ;;  %14985 = vmatprep.mubr.msk.f32.mxu0 %vm15840_vm1, %v18841_v26 }
 0xa23   : > { %v6894_v42 = vcombine.low %v17432_v24, %v17403_v31  ;;  %v17451_v48 = vrot.slane %v6243_v4, %v16223_v30  ;;  %14981 = vmatmul.mubr.msk.f32.vlgmr.msra.gmra.mxu1 %vm2592_vm2, %v6420_v14  ;;  %14993 = vmatprep.subr.mxu0 %v18841_v26  ;;  %v6428_v36 = vcombine.high %v6420_v14, %v18841_v26 }
 0xa24   : > { %v7065_v58 = vrot.slane %v7058_v54, %v16223_v30  ;;  %v6430_v3 = vcombine.low %v17271_v51, %v6273_v45  ;;  %14989 = vmatpush3.xpose.msk.msra.mxu1 %vm2592_vm2, %v7047_v41  ;;  %v7049_v15 = vcombine.high %v7047_v41, %v18841_v26  ;;  %14990 = vmatprep.mubr.msk.f32.mxu1 %vm15840_vm1, %v18841_v26 }
 0xa25   : > { %v6962_v52 = vcombine.low %v17439_v12, %v17429_v39  ;;  %v17465_v44 = vrot.slane %v6311_v60, %v16223_v30  ;;  %v14338_v47 = vcombine.high %v17368_v49, %v17384_v56  ;;  %14986 = vmatmul.mubr.msk.f32.vlgmr.msra.gmra.mxu0 %vm2592_vm2, %v6428_v36  ;;  %14998 = vmatprep.subr.mxu1 %v18841_v26 }
 0xa26   : > { %v6438_v37 = vcombine.low %v17320_v32, %v6341_v6  ;;  %14994 = vmatpush3.xpose.msk.msra.mxu0 %vm2592_vm2, %v7049_v15  ;;  %v6413_v11 = vcombine.high %v17364_v38, %v17381_v53  ;;  %v7066_v0 = vcombine.low %v17443_v2, %v7065_v58  ;;  %14995 = vmatprep.mubr.msk.f32.mxu0 %vm15840_vm1, %v18841_v26 }
 0xa27   : > { %v17482_v49 = vrot.slane %v6826_v1, %v16231_v46  ;;  %v14339_v17 = vcombine.high %v17357_v25, %v17378_v61  ;;  %v17487_v56 = vrot.slane %v6894_v42, %v16231_v46  ;;  %v6274_v38 = vcombine.low %v17313_v13, %v17451_v48  ;;  %15003 = vmatprep.subr.mxu0 %v18841_v26 }
 0xa28   : > { %v6437_v53 = vrot.slane %v6430_v3, %v16223_v30  ;;  %v14330_v35 = vcombine.high %v17271_v51, %v6273_v45  ;;  %v6427_v33 = vrot.slane %v6413_v11, %v16231_v46  ;;  %v7074_v1 = vrot.slane %v7066_v0, %v16231_v46 }
 0xa29   : > { %v17500_v25 = vrot.slane %v6827_v9, %v16231_v46  ;;  %v6759_v61 = vcombine.high %v17341_v23, %v17345_v59  ;;  %v17508_v21 = vrot.slane %v6758_v55, %v16231_v46  ;;  %v7091_v51 = vrot.slane %v14338_v47, %v16223_v30 }
 0xa2a   : > { %v17512_v27 = vrot.slane %v6962_v52, %v16231_v46  ;;  %v6342_v16 = vcombine.low %v17326_v28, %v17465_v44  ;;  %v6445_v34 = vrot.slane %v6438_v37, %v16223_v30  ;;  %v14331_v50 = vcombine.high %v17320_v32, %v6341_v6  ;;  %14991 = vmatmul.mubr.msk.f32.vlgmr.msra.gmra.mxu1 %vm2592_vm2, %v6427_v33 }
 0xa2b   : > { %v7099_v9 = vrot.slane %v14339_v17, %v16223_v30  ;;  %v7118_v23 = vcombine.low %v17508_v21, %v17487_v56  ;;  %v17523_v59 = vrot.slane %v6274_v38, %v16231_v46  ;;  %14999 = vmatpush3.xpose.msk.msra.mxu1 %vm2592_vm2, %v7074_v1  ;;  %v6429_v55 = vcombine.high %v6427_v33, %v18841_v26 }
 0xa2c   : > { %v17528_v10 = vrot.slane %v14330_v35, %v16223_v30  ;;  %v7082_v43 = vcombine.high %v7074_v1, %v18841_v26  ;;  %15000 = vmatprep.mubr.msk.f32.mxu1 %vm15840_vm1, %v18841_v26  ;;  %15008 = vmatprep.subr.mxu1 %v18841_v26  ;;  %v6446_v32 = vcombine.low %v6437_v53, %v6445_v34 }
 0xa2d   : > { %v6963_v5 = vcombine.high %v17439_v12, %v17429_v39  ;;  %14996 = vmatmul.mubr.msk.f32.vlgmr.msra.gmra.mxu0 %vm2592_vm2, %v6429_v55  ;;  %v7067_v62 = vcombine.high %v17443_v2, %v7065_v58  ;;  %v6447_v54 = vcombine.high %v6437_v53, %v6445_v34  ;;  %v7100_v40 = vcombine.low %v7091_v51, %v7099_v9 }
 0xa2e   : > { %v17539_v22 = vrot.slane %v6342_v16, %v16231_v46  ;;  %v6479_v4 = vrot.slane %v14331_v50, %v16223_v30  ;;  %15004 = vmatpush3.xpose.msk.msra.mxu0 %vm2592_vm2, %v7082_v43  ;;  %v6454_v57 = vrot.slane %v6446_v32, %v16231_v46  ;;  %15005 = vmatprep.mubr.msk.f32.mxu0 %vm15840_vm1, %v18841_v26 }
 0xa2f   : > { %v17547_v14 = vrot.slane %v6759_v61, %v16231_v46  ;;  %v7126_v45 = vcombine.low %v17482_v49, %v17512_v27  ;;  %v6498_v20 = vcombine.low %v17276_v18, %v17523_v59  ;;  %v7081_v41 = vrot.slane %v7067_v62, %v16231_v46  ;;  %15013 = vmatprep.subr.mxu0 %v18841_v26 }
 0xa30   : > { %v17556_v39 = vrot.slane %v7118_v23, %v16223_v30  ;;  %15001 = vmatmul.mubr.msk.f32.vlgmr.msra.gmra.mxu1 %vm2592_vm2, %v6454_v57  ;;  %v6462_v60 = vcombine.high %v6454_v57, %v18841_v26  ;;  %v6461_v12 = vrot.slane %v6447_v54, %v16231_v46  ;;  %v6480_v6 = vcombine.low %v17528_v10, %v6479_v4 }
 0xa31   : > { %15009 = vmatpush3.xpose.msk.msra.mxu1 %vm2592_vm2, %v7081_v41  ;;  %v7083_v2 = vcombine.high %v7081_v41, %v18841_v26  ;;  %15010 = vmatprep.mubr.msk.f32.mxu1 %vm15840_vm1, %v18841_v26  ;;  %v7108_v42 = vrot.slane %v7100_v40, %v16231_v46  ;;  %v7101_v36 = vcombine.high %v7091_v51, %v7099_v9 }
 0xa32   : > { %v17568_v58 = vrot.slane %v6963_v5, %v16231_v46  ;;  %v6506_v3 = vcombine.low %v17323_v29, %v17539_v22  ;;  %v6895_v15 = vcombine.high %v17432_v24, %v17403_v31  ;;  %15006 = vmatmul.mubr.msk.f32.vlgmr.msra.gmra.mxu0 %vm2592_vm2, %v6462_v60  ;;  %15018 = vmatprep.subr.mxu1 %v18841_v26 }
 0xa33   : > { %v7133_v52 = vrot.slane %v7126_v45, %v16223_v30  ;;  %v14340_v47 = vcombine.high %v17508_v21, %v17487_v56  ;;  %v17580_v37 = vrot.slane %v6498_v20, %v16223_v30  ;;  %15014 = vmatpush3.xpose.msk.msra.mxu0 %vm2592_vm2, %v7083_v2  ;;  %15015 = vmatprep.mubr.msk.f32.mxu0 %vm15840_vm1, %v18841_v26 }
 0xa34   : > { %15011 = vmatmul.mubr.msk.f32.vlgmr.msra.gmra.mxu1 %vm2592_vm2, %v6461_v12  ;;  %15023 = vmatprep.subr.mxu0 %v18841_v26  ;;  %v6463_v31 = vcombine.high %v6461_v12, %v18841_v26  ;;  %v6488_v24 = vrot.slane %v6480_v6, %v16231_v46  ;;  %v6481_v11 = vcombine.high %v17528_v10, %v6479_v4 }
 0xa35   : > { %15019 = vmatpush3.xpose.msk.msra.mxu1 %vm2592_vm2, %v7108_v42  ;;  %v7116_v0 = vcombine.high %v7108_v42, %v18841_v26  ;;  %15020 = vmatprep.mubr.msk.f32.mxu1 %vm15840_vm1, %v18841_v26  ;;  %v7115_v17 = vrot.slane %v7101_v36, %v16231_v46  ;;  %v7134_v56 = vcombine.low %v17556_v39, %v7133_v52 }
 0xa36   : > { %v14341_v38 = vcombine.high %v17482_v49, %v17512_v27  ;;  %v6513_v53 = vrot.slane %v6506_v3, %v16223_v30  ;;  %v17600_v35 = vrot.slane %v6895_v15, %v16231_v46  ;;  %15016 = vmatmul.mubr.msk.f32.vlgmr.msra.gmra.mxu0 %vm2592_vm2, %v6463_v31  ;;  %15028 = vmatprep.subr.mxu1 %v18841_v26 }
 0xa37   : > { %v17605_v33 = vrot.slane %v14340_v47, %v16223_v30  ;;  %v6275_v1 = vcombine.high %v17313_v13, %v17451_v48  ;;  %v14332_v61 = vcombine.high %v17276_v18, %v17523_v59  ;;  %15024 = vmatpush3.xpose.msk.msra.mxu0 %vm2592_vm2, %v7116_v0  ;;  %15025 = vmatprep.mubr.msk.f32.mxu0 %vm15840_vm1, %v18841_v26 }
 0xa38   : > { %15021 = vmatmul.mubr.msk.f32.vlgmr.msra.gmra.mxu1 %vm2592_vm2, %v6488_v24  ;;  %15033 = vmatprep.subr.mxu0 %v18841_v26  ;;  %v6496_v49 = vcombine.high %v6488_v24, %v18841_v26  ;;  %v6495_v21 = vrot.slane %v6481_v11, %v16231_v46  ;;  %v6514_v51 = vcombine.low %v17580_v37, %v6513_v53 }
 0xa39   : > { %15029 = vmatpush3.xpose.msk.msra.mxu1 %vm2592_vm2, %v7115_v17  ;;  %v7117_v13 = vcombine.high %v7115_v17, %v18841_v26  ;;  %15030 = vmatprep.mubr.msk.f32.mxu1 %vm15840_vm1, %v18841_v26  ;;  %v7142_v18 = vrot.slane %v7134_v56, %v16231_v46  ;;  %v7135_v48 = vcombine.high %v17556_v39, %v7133_v52 }
 0xa3a   : > { %v7167_v27 = vrot.slane %v14341_v38, %v16223_v30  ;;  %v6343_v16 = vcombine.high %v17326_v28, %v17465_v44  ;;  %v14333_v34 = vcombine.high %v17323_v29, %v17539_v22  ;;  %15026 = vmatmul.mubr.msk.f32.vlgmr.msra.gmra.mxu0 %vm2592_vm2, %v6496_v49  ;;  %15038 = vmatprep.subr.mxu1 %v18841_v26 }
 0xa3b   : > { %v7186_v50 = vcombine.low %v17547_v14, %v17600_v35  ;;  %v17635_v9 = vrot.slane %v6275_v1, %v16231_v46  ;;  %v17638_v23 = vrot.slane %v14332_v61, %v16223_v30  ;;  %15034 = vmatpush3.xpose.msk.msra.mxu0 %vm2592_vm2, %v7117_v13  ;;  %15035 = vmatprep.mubr.msk.f32.mxu0 %vm15840_vm1, %v18841_v26 }
 0xa3c   : > { %15031 = vmatmul.mubr.msk.f32.vlgmr.msra.gmra.mxu1 %vm2592_vm2, %v6495_v21  ;;  %15043 = vmatprep.subr.mxu0 %v18841_v26  ;;  %v6497_v29 = vcombine.high %v6495_v21, %v18841_v26  ;;  %v6522_v28 = vrot.slane %v6514_v51, %v16231_v46  ;;  %v6515_v44 = vcombine.high %v17580_v37, %v6513_v53 }
 0xa3d   : > { %15039 = vmatpush3.xpose.msk.msra.mxu1 %vm2592_vm2, %v7142_v18  ;;  %v7150_v59 = vcombine.high %v7142_v18, %v18841_v26  ;;  %15040 = vmatprep.mubr.msk.f32.mxu1 %vm15840_vm1, %v18841_v26  ;;  %v7149_v55 = vrot.slane %v7135_v48, %v16231_v46  ;;  %v7168_v10 = vcombine.low %v17605_v33, %v7167_v27 }
 0xa3e   : > { %v17658_v43 = vrot.slane %v6207_v7, %v16231_v46  ;;  %v17661_v32 = vrot.slane %v6343_v16, %v16231_v46  ;;  %v6547_v5 = vrot.slane %v14333_v34, %v16223_v30  ;;  %15036 = vmatmul.mubr.msk.f32.vlgmr.msra.gmra.mxu0 %vm2592_vm2, %v6497_v29  ;;  %15048 = vmatprep.subr.mxu1 %v18841_v26 }
 0xa3f   : > { %v7194_v62 = vcombine.low %v17500_v25, %v17568_v58  ;;  %v17669_v54 = vrot.slane %v7186_v50, %v16223_v30  ;;  %v6566_v19 = vcombine.low %v17279_v8, %v17635_v9  ;;  %15044 = vmatpush3.xpose.msk.msra.mxu0 %vm2592_vm2, %v7150_v59  ;;  %15045 = vmatprep.mubr.msk.f32.mxu0 %vm15840_vm1, %v18841_v26 }
 0xa40   : > { %15041 = vmatmul.mubr.msk.f32.vlgmr.msra.gmra.mxu1 %vm2592_vm2, %v6522_v28  ;;  %15053 = vmatprep.subr.mxu0 %v18841_v26  ;;  %v6530_v63 = vcombine.high %v6522_v28, %v18841_v26  ;;  %v6529_v7 = vrot.slane %v6515_v44, %v16231_v46  ;;  %v6548_v40 = vcombine.low %v17638_v23, %v6547_v5 }
 0xa41   : > { %15049 = vmatpush3.xpose.msk.msra.mxu1 %vm2592_vm2, %v7149_v55  ;;  %v7151_v22 = vcombine.high %v7149_v55, %v18841_v26  ;;  %15050 = vmatprep.mubr.msk.f32.mxu1 %vm15840_vm1, %v18841_v26  ;;  %v7176_v4 = vrot.slane %v7168_v10, %v16231_v46  ;;  %v7169_v57 = vcombine.high %v17605_v33, %v7167_v27 }
 0xa42   : > { %v6574_v45 = vcombine.low %v17658_v43, %v17661_v32  ;;  %15046 = vmatmul.mubr.msk.f32.vlgmr.msra.gmra.mxu0 %vm2592_vm2, %v6530_v63  ;;  %15058 = vmatprep.subr.mxu1 %v18841_v26  ;;  %v7201_v20 = vrot.slane %v7194_v62, %v16223_v30  ;;  %v14342_v41 = vcombine.high %v17547_v14, %v17600_v35 }
 0xa43   : > { %v6573_v39 = vrot.slane %v6566_v19, %v16223_v30  ;;  %15054 = vmatpush3.xpose.msk.msra.mxu0 %vm2592_vm2, %v7151_v22  ;;  %15055 = vmatprep.mubr.msk.f32.mxu0 %vm15840_vm1, %v18841_v26  ;;  %v6531_v60 = vcombine.high %v6529_v7, %v18841_v26  ;;  %v6556_v12 = vrot.slane %v6548_v40, %v16231_v46 }
 0xa44   : > { %15051 = vmatmul.mubr.msk.f32.vlgmr.msra.gmra.mxu1 %vm2592_vm2, %v6529_v7  ;;  %15063 = vmatprep.subr.mxu0 %v18841_v26  ;;  %v6549_v6 = vcombine.high %v17638_v23, %v6547_v5  ;;  %v7184_v14 = vcombine.high %v7176_v4, %v18841_v26  ;;  %v7183_v2 = vrot.slane %v7169_v57, %v16231_v46 }
 0xa45   : > { %15059 = vmatpush3.xpose.msk.msra.mxu1 %vm2592_vm2, %v7176_v4  ;;  %15060 = vmatprep.mubr.msk.f32.mxu1 %vm15840_vm1, %v18841_v26  ;;  %v7202_v42 = vcombine.low %v17669_v54, %v7201_v20  ;;  %v6581_v36 = vrot.slane %v6574_v45, %v16223_v30  ;;  %v14343_v3 = vcombine.high %v17500_v25, %v17568_v58 }
 0xa46   : > { %15056 = vmatmul.mubr.msk.f32.vlgmr.msra.gmra.mxu0 %vm2592_vm2, %v6531_v60  ;;  %15068 = vmatprep.subr.mxu1 %v18841_v26  ;;  %v7227_v15 = vrot.slane %v14342_v41, %v16223_v30  ;;  %v14334_v52 = vcombine.high %v17279_v8, %v17635_v9  ;;  %v6564_v47 = vcombine.high %v6556_v12, %v18841_v26 }
 0xa47   : > { %15064 = vmatpush3.xpose.msk.msra.mxu0 %vm2592_vm2, %v7184_v14  ;;  %15065 = vmatprep.mubr.msk.f32.mxu0 %vm15840_vm1, %v18841_v26  ;;  %v6563_v37 = vrot.slane %v6549_v6, %v16231_v46  ;;  %v6582_v31 = vcombine.low %v6573_v39, %v6581_v36  ;;  %v7185_v25 = vcombine.high %v7183_v2, %v18841_v26  ;;  %v18842_v14 = vld [vmem:[#allocation25_spill] sm:$0xff] }
 0xa48   : > { %15061 = vmatmul.mubr.msk.f32.vlgmr.msra.gmra.mxu1 %vm2592_vm2, %v6556_v12  ;;  %15073 = vmatprep.subr.mxu0 %v18841_v26  ;;  %v7210_v8 = vrot.slane %v7202_v42, %v16231_v46  ;;  %v7203_v58 = vcombine.high %v17669_v54, %v7201_v20  ;;  %v14335_v24 = vcombine.high %v17658_v43, %v17661_v32 }
 0xa49   : > { %15069 = vmatpush3.xpose.msk.msra.mxu1 %vm2592_vm2, %v7183_v2  ;;  %15070 = vmatprep.mubr.msk.f32.mxu1 %vm15840_vm1, %v18841_v26  ;;  %v7235_v11 = vrot.slane %v14343_v3, %v16223_v30  ;;  %v6607_v0 = vrot.slane %v14334_v52, %v16223_v30  ;;  %v6565_v17 = vcombine.high %v6563_v37, %v18841_v26 }
 0xa4a   : > { %15066 = vmatmul.mubr.msk.f32.vlgmr.msra.gmra.mxu0 %vm2592_vm2, %v6564_v47  ;;  %15078 = vmatprep.subr.mxu1 %v18841_v26  ;;  %v6590_v56 = vrot.slane %v6582_v31, %v16231_v46  ;;  %v6583_v38 = vcombine.high %v6573_v39, %v6581_v36  ;;  %v7218_v53 = vcombine.high %v7210_v8, %v18841_v26 }
 0xa4b   : > { %15074 = vmatpush3.xpose.msk.msra.mxu0 %vm2592_vm2, %v7185_v25  ;;  %15075 = vmatprep.mubr.msk.f32.mxu0 %vm15840_vm1, %v18841_v26  ;;  %v7217_v35 = vrot.slane %v7203_v58, %v16231_v46  ;;  %v7236_v33 = vcombine.low %v7227_v15, %v7235_v11  ;;  %v6615_v1 = vrot.slane %v14335_v24, %v16223_v30 }
 0xa4c   : > { %15071 = vmatmul.mubr.msk.f32.vlgmr.msra.gmra.mxu1 %vm2592_vm2, %v6563_v37  ;;  %15083 = vmatprep.subr.mxu0 %v18841_v26  ;;  %v6598_v61 = vcombine.high %v6590_v56, %v18841_v26  ;;  %v6597_v49 = vrot.slane %v6583_v38, %v16231_v46  ;;  %v7237_v18 = vcombine.high %v7227_v15, %v7235_v11 }
 0xa4d   : > { %15079 = vmatpush3.xpose.msk.msra.mxu1 %vm2592_vm2, %v7210_v8  ;;  %15080 = vmatprep.mubr.msk.f32.mxu1 %vm15840_vm1, %v18841_v26  ;;  %v6616_v21 = vcombine.low %v6607_v0, %v6615_v1  ;;  %v7219_v51 = vcombine.high %v7217_v35, %v18841_v26  ;;  %v7244_v13 = vrot.slane %v7236_v33, %v16231_v46 }
 0xa4e   : > { %15076 = vmatmul.mubr.msk.f32.vlgmr.msra.gmra.mxu0 %vm2592_vm2, %v6565_v17  ;;  %15088 = vmatprep.subr.mxu1 %v18841_v26  ;;  %v6599_v48 = vcombine.high %v6597_v49, %v18841_v26  ;;  %v6617_v16 = vcombine.high %v6607_v0, %v6615_v1  ;;  %v7251_v50 = vrot.slane %v7237_v18, %v16231_v46 }
 0xa4f   : > { %15084 = vmatpush3.xpose.msk.msra.mxu0 %vm2592_vm2, %v7218_v53  ;;  %15085 = vmatprep.mubr.msk.f32.mxu0 %vm15840_vm1, %v18841_v26  ;;  %v6624_v27 = vrot.slane %v6616_v21, %v16231_v46  ;;  %v7252_v34 = vcombine.high %v7244_v13, %v18841_v26 }
 0xa50   : > { %15081 = vmatmul.mubr.msk.f32.vlgmr.msra.gmra.mxu1 %vm2592_vm2, %v6590_v56  ;;  %15093 = vmatprep.subr.mxu0 %v18841_v26  ;;  %v6631_v23 = vrot.slane %v6617_v16, %v16231_v46  ;;  %v7253_v29 = vcombine.high %v7251_v50, %v18841_v26 }
 0xa51   : > { %15089 = vmatpush3.xpose.msk.msra.mxu1 %vm2592_vm2, %v7217_v35  ;;  %15090 = vmatprep.mubr.msk.f32.mxu1 %vm15840_vm1, %v18841_v26  ;;  %v6632_v9 = vcombine.high %v6624_v27, %v18841_v26 }
 0xa52   : > { %15086 = vmatmul.mubr.msk.f32.vlgmr.msra.gmra.mxu0 %vm2592_vm2, %v6598_v61  ;;  %15098 = vmatprep.subr.mxu1 %v18841_v26  ;;  %v6633_v28 = vcombine.high %v6631_v23, %v18841_v26 }
 0xa53   : > { %15094 = vmatpush3.xpose.msk.msra.mxu0 %vm2592_vm2, %v7219_v51  ;;  %15095 = vmatprep.mubr.msk.f32.mxu0 %vm15840_vm1, %v18841_v26 }
 0xa54   : > { %15091 = vmatmul.mubr.msk.f32.vlgmr.msra.gmra.mxu1 %vm2592_vm2, %v6597_v49  ;;  %15103 = vmatprep.subr.mxu0 %v18841_v26 }
 0xa55   : > { %15099 = vmatpush3.xpose.msk.msra.mxu1 %vm2592_vm2, %v7244_v13  ;;  %15100 = vmatprep.mubr.msk.f32.mxu1 %vm15840_vm1, %v18841_v26 }
 0xa56   : > { %15096 = vmatmul.mubr.msk.f32.vlgmr.msra.gmra.mxu0 %vm2592_vm2, %v6599_v48  ;;  %15108 = vmatprep.subr.mxu1 %v18841_v26 }
 0xa57   : > { %15104 = vmatpush3.xpose.msk.msra.mxu0 %vm2592_vm2, %v7252_v34  ;;  %15105 = vmatprep.mubr.msk.f32.mxu0 %vm15840_vm1, %v18841_v26 }
 0xa58   : > { %15101 = vmatmul.mubr.msk.f32.vlgmr.msra.gmra.mxu1 %vm2592_vm2, %v6624_v27  ;;  %15113 = vmatprep.subr.mxu0 %v18841_v26 }
 0xa59   : > { %15109 = vmatpush3.xpose.msk.msra.mxu1 %vm2592_vm2, %v7251_v50  ;;  %15110 = vmatprep.mubr.msk.f32.mxu1 %vm15840_vm1, %v18841_v26 }
 0xa5a   : > { %15106 = vmatmul.mubr.msk.f32.vlgmr.msra.gmra.mxu0 %vm2592_vm2, %v6632_v9  ;;  %15118 = vmatprep.subr.mxu1 %v18841_v26 }
 0xa5b   : > { %15114 = vmatpush3.xpose.msk.msra.mxu0 %vm2592_vm2, %v7253_v29  ;;  %15115 = vmatprep.mubr.msk.f32.mxu0 %vm15840_vm1, %v18841_v26 }
 0xa5c   : > { %15111 = vmatmul.mubr.msk.f32.vlgmr.msra.gmra.mxu1 %vm2592_vm2, %v6631_v23  ;;  %15123 = vmatprep.subr.mxu0 %v18841_v26 }
 0xa5d   : > { %15120 = vmatprep.mubr.msk.f32.mxu1 %vm15840_vm1, %v18841_v26 }
 0xa5e   : > { %15116 = vmatmul.mubr.msk.f32.vlgmr.msra.gmra.mxu0 %vm2592_vm2, %v6633_v28 }
 0xa5f   : > { %15125 = vmatprep.mubr.msk.f32.mxu0 %vm15840_vm1, %v18841_v26 }
 0xadb   : > { %v17803_v44 = vpop.f32.mrf.mxu1 }
 0xadc   : > { %v10279_v59 = vsel %vm10278_vm5, %v17803_v44, -inf }
 0xadd   : > { %10280 = vmax.xlane.f32.xlu0 %v10279_v59  ;;  %v14962_v55 = vpop.f32.mrf.mxu1  ;;  %v17807_v10 = vpop.f32.mrf.mxu0 }
 0xade   : > { %v10282_v43 = vsel %vm10278_vm5, %v17807_v10, -inf }
 0xadf   : > { %v17811_v32 = vpop.f32.mrf.mxu1  ;;  %10283 = vmax.xlane.f32.xlu1 %v10282_v43  ;;  %v14967_v5 = vpop.f32.mrf.mxu0 }
 0xae0   : > { %v10285_v62 = vsel %vm10278_vm5, %v17811_v32, -inf }
 0xae1   : > { %10286 = vmax.xlane.f32.xlu0 %v10285_v62  ;;  %v14972_v54 = vpop.f32.mrf.mxu1  ;;  %v17815_v19 = vpop.f32.mrf.mxu0 }
 0xae2   : > { %v10288_v40 = vsel %vm10278_vm5, %v17815_v19, -inf }
 0xae3   : > { %v14977_v63 = vpop.f32.mrf.mxu0  ;;  %v17817_v7 = vpop.f32.mrf.mxu1 }
 0xae4   : > { %v10291_v45 = vsel %vm10278_vm5, %v17817_v7, -inf }
 0xae5   : > { %v14982_v22 = vpop.f32.mrf.mxu1  ;;  %10289 = vmax.xlane.f32.xlu0 %v10288_v40  ;;  %v17821_v4 = vpop.f32.mrf.mxu0 }
 0xae6   : > { %v10294_v63 = vsel %vm10278_vm5, %v17821_v4, -inf }
 0xae7   : > { %v14987_v57 = vpop.f32.mrf.mxu0 }
 0xae9   : > { %10292 = vmax.xlane.f32.xlu0 %v10291_v45 }
 0xaea   : > { %v17825_v20 = vpop.f32.mrf.mxu1 }
 0xaeb   : > { %v10297_v39 = vsel %vm10278_vm5, %v17825_v20, -inf }
 0xaec   : > { %v14992_v41 = vpop.f32.mrf.mxu1 }
 0xaed   : > { %v17829_v60 = vpop.f32.mrf.mxu0  ;;  %10298 = vmax.xlane.f32.xlu0 %v10297_v39 }
 0xaee   : > { %v10300_v39 = vsel %vm10278_vm5, %v17829_v60, -inf }
 0xaef   : > { %v14997_v12 = vpop.f32.mrf.mxu0 }
 0xaf0   : > { %v17831_v6 = vpop.f32.mrf.mxu1  ;;  %7284 = vrot.lane.b32.xlu1 %v18842_v14, %s15841_s21  ;;  %s15759_s21 = sshll.u32 %s15847_s0, 4  ;;  %s15760_s21 = int_to_ptr.vmem [resolvable:$false] %s15759_s21 }
 0xaf1   : > { %v10303_v2 = vsel %vm10278_vm5, %v17831_v6, -inf }
 0xaf2   : > { %v15002_v42 = vpop.f32.mrf.mxu1  ;;  %v17837_v36 = vpop.f32.mrf.mxu0  ;;  %10304 = vmax.xlane.f32.xlu0 %v10303_v2 }
 0xaf3   : > { %v10306_v52 = vsel %vm10278_vm5, %v17837_v36, -inf }
 0xaf4   : > { %v15007_v3 = vpop.f32.mrf.mxu0  ;;  %v17839_v15 = vpop.f32.mrf.mxu1 }
 0xaf5   : > { %v10309_v8 = vsel %vm10278_vm5, %v17839_v15, -inf }
 0xaf6   : > { %v15012_v47 = vpop.f32.mrf.mxu1  ;;  %v17843_v37 = vpop.f32.mrf.mxu0  ;;  %10307 = vmax.xlane.f32.xlu0 %v10306_v52 }
 0xaf7   : > { %v10312_v52 = vsel %vm10278_vm5, %v17843_v37, -inf }
 0xaf8   : > { %v15017_v31 = vpop.f32.mrf.mxu0  ;;  %v17845_v25 = vpop.f32.mrf.mxu1 }
 0xaf9   : > { %v10315_v17 = vsel %vm10278_vm5, %v17845_v25, -inf }
 0xafa   : > { %v15022_v58 = vpop.f32.mrf.mxu1  ;;  %v17849_v24 = vpop.f32.mrf.mxu0  ;;  %10310 = vmax.xlane.f32.xlu0 %v10309_v8 }
 0xafc   : > { %v15027_v11 = vpop.f32.mrf.mxu0  ;;  %v17851_v0 = vpop.f32.mrf.mxu1 }
 0xafd   : > { %v10321_v33 = vsel %vm10278_vm5, %v17851_v0, -inf }
 0xafe   : > { %v15032_v56 = vpop.f32.mrf.mxu1  ;;  %v17855_v38 = vpop.f32.mrf.mxu0  ;;  %10316 = vmax.xlane.f32.xlu0 %v10315_v17  ;;  %v10318_v17 = vsel %vm10278_vm5, %v17849_v24, -inf }
 0xb00   : > { %v15037_v53 = vpop.f32.mrf.mxu0  ;;  %v17857_v35 = vpop.f32.mrf.mxu1 }
 0xb01   : > { %v10327_v51 = vsel %vm10278_vm5, %v17857_v35, -inf }
 0xb02   : > { %v15042_v1 = vpop.f32.mrf.mxu1  ;;  %v17861_v61 = vpop.f32.mrf.mxu0  ;;  %10322 = vmax.xlane.f32.xlu0 %v10321_v33  ;;  %v10324_v33 = vsel %vm10278_vm5, %v17855_v38, -inf }
 0xb03   : > { %v10330_v1 = vsel %vm10278_vm5, %v17861_v61, -inf }
 0xb04   : > { %v15047_v49 = vpop.f32.mrf.mxu0  ;;  %v17863_v21 = vpop.f32.mrf.mxu1 }
 0xb05   : > { %v10333_v16 = vsel %vm10278_vm5, %v17863_v21, -inf }
 0xb06   : > { %v15052_v13 = vpop.f32.mrf.mxu1  ;;  %v17867_v18 = vpop.f32.mrf.mxu0  ;;  %10328 = vmax.xlane.f32.xlu0 %v10327_v51 }
 0xb07   : > { %v10336_v49 = vsel %vm10278_vm5, %v17867_v18, -inf }
 0xb08   : > { %v15057_v48 = vpop.f32.mrf.mxu0  ;;  %v17869_v27 = vpop.f32.mrf.mxu1 }
 0xb09   : > { %v10339_v29 = vsel %vm10278_vm5, %v17869_v27, -inf  ;;  %v17925_v48 = vpop.permute.xlu1 %7256 }
 0xb0a   : > { %v15062_v34 = vpop.f32.mrf.mxu1  ;;  %v17873_v50 = vpop.f32.mrf.mxu0  ;;  %10334 = vmax.xlane.f32.xlu0 %v10333_v16 }
 0xb0b   : > { %v10342_v51 = vsel %vm10278_vm5, %v17873_v50, -inf  ;;  %v7255_v34 = vpop.permute.xlu0 %7254 }
 0xb0c   : > { %v15067_v9 = vpop.f32.mrf.mxu0  ;;  %v17875_v23 = vpop.f32.mrf.mxu1 }
 0xb0d   : > { %v10345_v5 = vsel %vm10278_vm5, %v17875_v23, -inf }
 0xb0e   : > { %v15072_v28 = vpop.f32.mrf.mxu1  ;;  %v17879_v59 = vpop.f32.mrf.mxu0  ;;  %10340 = vmax.xlane.f32.xlu0 %v10339_v29 }
 0xb0f   : > { %v10348_v13 = vsel %vm10278_vm5, %v17879_v59, -inf  ;;  %v7259_v29 = vpop.permute.xlu1 %7258  ;;  %v7263_v28 = vpop.permute.xlu0 %7262 }
 0xb10   : > { %v15077_v55 = vpop.f32.mrf.mxu0  ;;  %v17881_v43 = vpop.f32.mrf.mxu1 }
 0xb11   : > { %v10351_v57 = vsel %vm10278_vm5, %v17881_v43, -inf }
 0xb12   : > { %v15082_v62 = vpop.f32.mrf.mxu1  ;;  %v17885_v54 = vpop.f32.mrf.mxu0  ;;  %10346 = vmax.xlane.f32.xlu0 %v10345_v5 }
 0xb13   : > { %v10354_v16 = vsel %vm10278_vm5, %v17885_v54, -inf  ;;  %v7261_v5 = vpop.permute.xlu1 %7260 }
 0xb14   : > { %v15087_v40 = vpop.f32.mrf.mxu0  ;;  %v17889_v22 = vpop.f32.mrf.mxu1  ;;  %10295 = vmax.xlane.f32.xlu1 %v10294_v63 }
 0xb15   : > { %v10357_v2 = vsel %vm10278_vm5, %v17889_v22, -inf  ;;  %v7271_v63 = vpop.permute.xlu0 %7270 }
 0xb16   : > { %v15092_v45 = vpop.f32.mrf.mxu1  ;;  %v17893_v41 = vpop.f32.mrf.mxu0  ;;  %10352 = vmax.xlane.f32.xlu0 %v10351_v57 }
 0xb17   : > { %18843 = vst [vmem:[#allocation25_spill] sm:$0xff] %v17893_v41  ;;  %v10360_v9 = vsel %vm10278_vm5, %v17893_v41, -inf  ;;  %v7265_v40 = vpop.permute.xlu1 %7264 }
 0xb18   : > { %v15097_v12 = vpop.f32.mrf.mxu0  ;;  %v17897_v14 = vpop.f32.mrf.mxu1  ;;  %10301 = vmax.xlane.f32.xlu1 %v10300_v39 }
 0xb19   : > { %v10363_v8 = vsel %vm10278_vm5, %v17897_v14, -inf  ;;  %v7279_v57 = vpop.permute.xlu0 %7278 }
 0xb1a   : > { %v15102_v42 = vpop.f32.mrf.mxu1  ;;  %v17901_v3 = vpop.f32.mrf.mxu0  ;;  %10358 = vmax.xlane.f32.xlu0 %v10357_v2 }
 0xb1b   : > { %18844 = vst [vmem:[#allocation26_spill] sm:$0xff] %v17901_v3  ;;  %v10366_v55 = vsel %vm10278_vm5, %v17901_v3, -inf  ;;  %v17935_v45 = vpop.permute.xlu1 %7268 }
 0xb1c   : > { %v15107_v47 = vpop.f32.mrf.mxu0  ;;  %v17905_v31 = vpop.f32.mrf.mxu1  ;;  %10313 = vmax.xlane.f32.xlu1 %v10312_v52  ;;  %v7318_v52 = vcombine.low %v7263_v28, %v7279_v57 }
 0xb1d   : > { %v10369_v53 = vsel %vm10278_vm5, %v17905_v31, -inf  ;;  %v7267_v39 = vpop.permute.xlu0 %7266  ;;  %v7319_v47 = vcombine.high %v7263_v28, %v7279_v57 }
 0xb1e   : > { %v15112_v58 = vpop.f32.mrf.mxu1  ;;  %v17909_v11 = vpop.f32.mrf.mxu0  ;;  %10364 = vmax.xlane.f32.xlu0 %v10363_v8 }
 0xb1f   : > { %18845 = vst [vmem:[#allocation27_spill] sm:$0xff] %v17909_v11  ;;  %v10372_v62 = vsel %vm10278_vm5, %v17909_v11, -inf  ;;  %v7273_v12 = vpop.permute.xlu1 %7272  ;;  %v7302_v58 = vcombine.low %v7255_v34, %v7271_v63 }
 0xb20   : > { %v15117_v56 = vpop.f32.mrf.mxu0  ;;  %10319 = vmax.xlane.f32.xlu1 %v10318_v17  ;;  %v7303_v17 = vcombine.high %v7255_v34, %v7271_v63  ;;  %v7370_v63 = vcombine.low %v17925_v48, %v7273_v12 }
 0xb21   : > { %v7275_v2 = vpop.permute.xlu0 %7274 }
 0xb22   : > { %10370 = vmax.xlane.f32.xlu0 %v10369_v53  ;;  %v17938_v53 = vrot.slane %v7318_v52, %v16223_v30 }
 0xb23   : > { %v7277_v42 = vpop.permute.xlu1 %7276 }
 0xb24   : > { %10325 = vmax.xlane.f32.xlu1 %v10324_v33  ;;  %v7333_v33 = vrot.slane %v7319_v47, %v16223_v30 }
 0xb25   : > { %v7283_v8 = vpop.permute.xlu0 %7282 }
 0xb26   : > { %v7454_v56 = vcombine.low %v7267_v39, %v7283_v8 }
 0xb28   : > { %10331 = vmax.xlane.f32.xlu1 %v10330_v1  ;;  %v7281_v1 = vpop.permute.xlu1 %7280  ;;  %v17946_v28 = vrot.slane %v7454_v56, %v16223_v30 }
 0xb2c   : > { %10337 = vmax.xlane.f32.xlu1 %v10336_v49  ;;  %v7438_v49 = vcombine.low %v7259_v29, %v7275_v2 }
 0xb2e   : > { %v17952_v57 = vrot.slane %v7438_v49, %v16223_v30 }
 0xb30   : > { %10343 = vmax.xlane.f32.xlu1 %v10342_v51  ;;  %v7455_v51 = vcombine.high %v7267_v39, %v7283_v8  ;;  %v7387_v39 = vcombine.high %v7265_v40, %v7281_v1  ;;  %v7470_v49 = vcombine.low %v17952_v57, %v17946_v28 }
 0xb32   : > { %v7469_v52 = vrot.slane %v7455_v51, %v16223_v30 }
 0xb34   : > { %10349 = vmax.xlane.f32.xlu1 %v10348_v13  ;;  %v17942_v13 = vrot.slane %v7302_v58, %v16223_v30 }
 0xb36   : > { %v7334_v34 = vcombine.low %v17942_v13, %v17938_v53 }
 0xb38   : > { %10355 = vmax.xlane.f32.xlu1 %v10354_v16  ;;  %v7317_v16 = vrot.slane %v7303_v17, %v16223_v30  ;;  %v7507_v17 = vcombine.high %v7261_v5, %v7277_v42 }
 0xb3a   : > { %v7351_v8 = vcombine.high %v7317_v16, %v7333_v33 }
 0xb3c   : > { %10361 = vmax.xlane.f32.xlu1 %v10360_v9  ;;  %v7439_v9 = vcombine.high %v7259_v29, %v7275_v2  ;;  %v7371_v29 = vcombine.high %v17925_v48, %v7273_v12  ;;  %v7506_v2 = vcombine.low %v7261_v5, %v7277_v42  ;;  %v17967_v12 = vrot.slane %v7370_v63, %v16223_v30 }
 0xb3d   : > { %v7478_v63 = vrot.slane %v7470_v49, %v16231_v46 }
 0xb3e   : > { %v7453_v56 = vrot.slane %v7439_v9, %v16223_v30  ;;  %v7385_v9 = vrot.slane %v7371_v29, %v16223_v30 }
 0xb40   : > { %10367 = vmax.xlane.f32.xlu1 %v10366_v55  ;;  %v7386_v55 = vcombine.low %v7265_v40, %v7281_v1  ;;  %v7342_v40 = vrot.slane %v7334_v34, %v16231_v46  ;;  %v7486_v5 = vcombine.low %v7453_v56, %v7469_v52  ;;  %v7487_v42 = vcombine.high %v7453_v56, %v7469_v52 }
 0xb42   : > { %v17959_v11 = vrot.slane %v7386_v55, %v16223_v30 }
 0xb44   : > { %10373 = vmax.xlane.f32.xlu1 %v10372_v62  ;;  %v7350_v62 = vcombine.low %v7317_v16, %v7333_v33  ;;  %v7365_v16 = vrot.slane %v7351_v8, %v16231_v46 }
 0xb46   : > { %v7358_v1 = vrot.slane %v7350_v62, %v16231_v46  ;;  %v17974_v62 = vrot.slane %v7506_v2, %v16223_v30  ;;  %v7501_v2 = vrot.slane %v7487_v42, %v16231_v46 }
 0xb66   : > { %v10281_v47 = vpop.xlane.xlu0 %10280 }
 0xb67   : > { %v10375_v58 = vsub.f32 %v17803_v44, %v10281_v47  ;;  %v7401_v44 = vrot.slane %v7387_v39, %v16223_v30 }
 0xb68   : > { %v10284_v3 = vpop.xlane.xlu1 %10283 }
 0xb69   : > { %v10407_v33 = vmul.f32 1.442695, %v10375_v58  ;;  %v10376_v48 = vsub.f32 %v17807_v10, %v10284_v3  ;;  %v7521_v10 = vrot.slane %v7507_v17, %v16223_v30  ;;  %v7402_v3 = vcombine.low %v17967_v12, %v17959_v11 }
 0xb6a   : > { %v10287_v51 = vpop.xlane.xlu0 %10286  ;;  %v7418_v29 = vcombine.low %v7385_v9, %v7401_v44 }
 0xb6b   : > { %v10409_v55 = vmul.f32 1.442695, %v10376_v48  ;;  %v10377_v34 = vsub.f32 %v17811_v32, %v10287_v51  ;;  %15503 = vpow2.f32 %v10407_v33  ;;  %v7494_v32 = vrot.slane %v7486_v5, %v16231_v46 }
 0xb6c   : > { %v7285_v39 = vpop.permute.xlu1 %7284  ;;  %v7419_v48 = vcombine.high %v7385_v9, %v7401_v44  ;;  %v7574_v51 = vcombine.low %v7342_v40, %v7478_v63  ;;  %v14344_v5 = vcombine.high %v7342_v40, %v7478_v63  ;;  %v7471_v9 = vcombine.high %v17952_v57, %v17946_v28 }
 0xb6d   : > { %v10411_v52 = vmul.f32 1.442695, %v10377_v34  ;;  %v7522_v47 = vcombine.low %v17935_v45, %v7285_v39  ;;  %v7523_v8 = vcombine.high %v17935_v45, %v7285_v39  ;;  %15505 = vpow2.f32 %v10409_v55 }
 0xb6e   : > { %v10290_v58 = vpop.xlane.xlu0 %10289  ;;  %v7410_v45 = vrot.slane %v7402_v3, %v16231_v46  ;;  %v7426_v39 = vrot.slane %v7418_v29, %v16231_v46  ;;  %v7433_v40 = vrot.slane %v7419_v48, %v16231_v46  ;;  %v18003_v3 = vrot.slane %v14344_v5, %v16223_v30 }
 0xb6f   : > { %15507 = vpow2.f32 %v10411_v52  ;;  %v17985_v17 = vrot.slane %v7522_v47, %v16223_v30  ;;  %v7537_v56 = vrot.slane %v7523_v8, %v16223_v30  ;;  %v10378_v49 = vsub.f32 %v17815_v19, %v10290_v58 }
 0xb70   : > { %v7710_v52 = vcombine.low %v7358_v1, %v7494_v32  ;;  %v14348_v47 = vcombine.high %v7358_v1, %v7494_v32  ;;  %v7778_v19 = vcombine.low %v7365_v16, %v7501_v2  ;;  %v14350_v1 = vcombine.high %v7365_v16, %v7501_v2 }
 0xb71   : > { %v7538_v42 = vcombine.low %v17974_v62, %v17985_v17  ;;  %v7554_v55 = vcombine.low %v7521_v10, %v7537_v56  ;;  %v7555_v34 = vcombine.high %v7521_v10, %v7537_v56  ;;  %v10413_v8 = vmul.f32 1.442695, %v10378_v49 }
 0xb72   : > { %v10293_v41 = vpop.xlane.xlu0 %10292  ;;  %v7581_v10 = vrot.slane %v7574_v51, %v16223_v30  ;;  %v18009_v48 = vrot.slane %v14348_v47, %v16223_v30  ;;  %v18012_v51 = vrot.slane %v7778_v19, %v16223_v30 }
 0xb73   : > { %v7546_v58 = vrot.slane %v7538_v42, %v16231_v46  ;;  %v7562_v33 = vrot.slane %v7554_v55, %v16231_v46  ;;  %v7569_v44 = vrot.slane %v7555_v34, %v16231_v46  ;;  %15509 = vpow2.f32 %v10413_v8 }
 0xb74   : > { %v18006_v34 = vrot.slane %v7710_v52, %v16223_v30  ;;  %v10379_v52 = vsub.f32 %v17817_v7, %v10293_v41  ;;  %v7539_v8 = vcombine.high %v17974_v62, %v17985_v17 }
 0xb75   : > { %v7582_v63 = vcombine.low %v7410_v45, %v7546_v58  ;;  %v14345_v29 = vcombine.high %v7410_v45, %v7546_v58  ;;  %v7718_v32 = vcombine.low %v7426_v39, %v7562_v33  ;;  %v14349_v56 = vcombine.high %v7426_v39, %v7562_v33 }
 0xb76   : > { %v7786_v49 = vcombine.low %v7433_v40, %v7569_v44  ;;  %v14351_v42 = vcombine.high %v7433_v40, %v7569_v44  ;;  %v10299_v55 = vpop.xlane.xlu0 %10298  ;;  %v18028_v39 = vrot.slane %v14350_v1, %v16223_v30 }
 0xb77   : > { %v7589_v5 = vrot.slane %v7582_v63, %v16223_v30  ;;  %v18016_v16 = vrot.slane %v7718_v32, %v16223_v30  ;;  %v18019_v2 = vrot.slane %v14349_v56, %v16223_v30  ;;  %v18034_v44 = vrot.slane %v14345_v29, %v16223_v30 }
 0xb78   : > { %v18022_v33 = vrot.slane %v7786_v49, %v16223_v30  ;;  %v18025_v45 = vrot.slane %v14351_v42, %v16223_v30  ;;  %v15504_v47 = vpop.eup %15503  ;;  %v10415_v49 = vmul.f32 1.442695, %v10379_v52  ;;  %v10381_v42 = vsub.f32 %v17825_v20, %v10299_v55 }
 0xb79   : > { %v7590_v19 = vcombine.low %v7581_v10, %v7589_v5  ;;  %v7591_v58 = vcombine.high %v7581_v10, %v7589_v5  ;;  %v7726_v63 = vcombine.low %v18006_v34, %v18016_v16  ;;  %v10471_v5 = vsel %vm10278_vm5, %v15504_v47, 0.0 }
 0xb7a   : > { %v15506_v40 = vpop.eup %15505  ;;  %v7624_v7 = vcombine.low %v18003_v3, %v18034_v44  ;;  %10472 = vadd.xlane.f32.xlu0 %v10471_v5  ;;  %15511 = vpow2.f32 %v10415_v49  ;;  %v10419_v1 = vmul.f32 1.442695, %v10381_v42  ;;  %v7553_v55 = vrot.slane %v7539_v8, %v16231_v46 }
 0xb7b   : > { %v10305_v32 = vpop.xlane.xlu0 %10304  ;;  %v10474_v17 = vsel %vm10278_vm5, %v15506_v40, 0.0  ;;  %v7598_v10 = vrot.slane %v7590_v19, %v16231_v46  ;;  %v7605_v20 = vrot.slane %v7591_v58, %v16231_v46 }
 0xb7c   : > { %v15508_v62 = vpop.eup %15507  ;;  %v10383_v41 = vsub.f32 %v17831_v6, %v10305_v32  ;;  %10475 = vadd.xlane.f32.xlu1 %v10474_v17  ;;  %v7335_v6 = vcombine.high %v17942_v13, %v17938_v53  ;;  %15513 = vpow2.f32 %v10419_v1  ;;  %v18078_v53 = vrot.slane %v7471_v9, %v16231_v46 }
 0xb7d   : > { %v10477_v29 = vsel %vm10278_vm5, %v15508_v62, 0.0  ;;  %15119 = vmatpush3.msk.msra.mxu1 %vm10571_vm6, %v7598_v10  ;;  %v7606_v32 = vcombine.high %v7598_v10, %v18841_v26  ;;  %v7607_v13 = vcombine.high %v7605_v20, %v18841_v26 }
 0xb7e   : > { %v10423_v56 = vmul.f32 1.442695, %v10383_v41  ;;  %15121 = vmatmul.mubr.msk.f32.vlgmr.msra.gmra.mxu1 %vm10567_vm7, %v15504_v47  ;;  %15128 = vmatprep.subr.mxu1 %v18841_v26  ;;  %v18846_v41 = vcombine.high %v17967_v12, %v17959_v11  ;;  %v7632_v47 = vrot.slane %v7624_v7, %v16231_v46  ;;  %v7349_v8 = vrot.slane %v7335_v6, %v16231_v46 }
 0xb7f   : > { %v18060_v52 = vpop.xlane.xlu0 %10307  ;;  %10478 = vadd.xlane.f32.xlu0 %v10477_v29  ;;  %15124 = vmatpush3.msk.msra.mxu0 %vm10571_vm6, %v7606_v32 }
 0xb80   : > { %v15510_v19 = vpop.eup %15509  ;;  %v7417_v58 = vrot.slane %v18846_v41, %v16231_v46  ;;  %15515 = vpow2.f32 %v10423_v56  ;;  %15129 = vmatpush3.msk.msra.mxu1 %vm10571_vm6, %v7605_v20  ;;  %15126 = vmatmul.mubr.msk.f32.vlgmr.msra.gmra.mxu0 %vm10567_vm7, %v15506_v40  ;;  %v7642_v9 = vcombine.low %v7349_v8, %v18078_v53  ;;  %v7640_v1 = vcombine.high %v7632_v47, %v18841_v26 }
 0xb81   : > { %v10480_v11 = vsel %vm10278_vm5, %v15510_v19, 0.0  ;;  %15133 = vmatprep.subr.mxu0 %v18841_v26  ;;  %15130 = vmatprep.mubr.msk.f32.mxu1 %vm15840_vm1, %v18841_v26  ;;  %v14346_v6 = vcombine.high %v7349_v8, %v18078_v53 }
 0xb82   : > { %v7650_v28 = vcombine.low %v7417_v58, %v7553_v55  ;;  %15134 = vmatpush3.msk.msra.mxu0 %vm10571_vm6, %v7607_v13  ;;  %15138 = vmatprep.subr.mxu1 %v18841_v26  ;;  %v7649_v10 = vrot.slane %v7642_v9, %v16223_v30 }
 0xb83   : > { %v10311_v12 = vpop.xlane.xlu0 %10310  ;;  %15131 = vmatmul.mubr.msk.f32.vlgmr.msra.gmra.mxu1 %vm10567_vm7, %v15508_v62  ;;  %10481 = vadd.xlane.f32.xlu1 %v10480_v11 }
 0xb84   : > { %v10385_v57 = vsub.f32 %v17839_v15, %v10311_v12  ;;  %15139 = vmatpush3.msk.msra.mxu1 %vm10571_vm6, %v7632_v47  ;;  %15135 = vmatprep.mubr.msk.f32.mxu0 %vm15840_vm1, %v18841_v26  ;;  %v7625_v15 = vcombine.high %v18003_v3, %v18034_v44  ;;  %v7657_v17 = vrot.slane %v7650_v28, %v16223_v30 }
 0xb85   : > { %15143 = vmatprep.subr.mxu0 %v18841_v26  ;;  %15136 = vmatmul.mubr.msk.f32.vlgmr.msra.gmra.mxu0 %vm10567_vm7, %v15510_v19  ;;  %v14347_v3 = vcombine.high %v7417_v58, %v7553_v55  ;;  %v7683_v47 = vrot.slane %v14346_v6, %v16223_v30 }
 0xb86   : > { %v10427_v40 = vmul.f32 1.442695, %v10385_v57  ;;  %15144 = vmatpush3.msk.msra.mxu0 %vm10571_vm6, %v7640_v1  ;;  %15140 = vmatprep.mubr.msk.f32.mxu1 %vm15840_vm1, %v18841_v26  ;;  %v7658_v49 = vcombine.low %v7649_v10, %v7657_v17  ;;  %v7659_v58 = vcombine.high %v7649_v10, %v7657_v17 }
 0xb87   : > { %v10317_v7 = vpop.xlane.xlu0 %10316  ;;  %15148 = vmatprep.subr.mxu1 %v18841_v26  ;;  %15145 = vmatprep.mubr.msk.f32.mxu0 %vm15840_vm1, %v18841_v26  ;;  %v15512_v56 = vpop.eup %15511  ;;  %v7691_v32 = vrot.slane %v14347_v3, %v16223_v30 }
 0xb88   : > { %15517 = vpow2.f32 %v10427_v40  ;;  %v10387_v62 = vsub.f32 %v17845_v25, %v10317_v7  ;;  %15153 = vmatprep.subr.mxu0 %v18841_v26  ;;  %v18114_v25 = vrot.slane %v7625_v15, %v16231_v46  ;;  %15141 = vmatmul.mubr.msk.f32.vlgmr.msra.gmra.mxu1 %vm10567_vm7, %v15512_v56  ;;  %v10483_v5 = vsel %vm10278_vm5, %v15512_v56, 0.0 }
 0xb89   : > { %v15514_v20 = vpop.eup %15513  ;;  %10484 = vadd.xlane.f32.xlu0 %v10483_v5  ;;  %15150 = vmatprep.mubr.msk.f32.mxu1 %vm15840_vm1, %v18841_v26  ;;  %v18128_v13 = vrot.slane %v7658_v49, %v16231_v46  ;;  %v7692_v28 = vcombine.low %v7683_v47, %v7691_v32  ;;  %v7693_v15 = vcombine.high %v7683_v47, %v7691_v32 }
 0xb8a   : > { %v10431_v29 = vmul.f32 1.442695, %v10387_v62  ;;  %15149 = vmatpush3.msk.msra.mxu1 %vm10571_vm6, %v18114_v25 }
 0xb8b   : > { %v10323_v44 = vpop.xlane.xlu0 %10322  ;;  %15158 = vmatprep.subr.mxu1 %v18841_v26 }
 0xb8c   : > { %15519 = vpow2.f32 %v10431_v29  ;;  %v10389_v42 = vsub.f32 %v17851_v0, %v10323_v44  ;;  %v10489_v0 = vsel %vm10278_vm5, %v15514_v20, 0.0  ;;  %15151 = vmatmul.mubr.msk.f32.vlgmr.msra.gmra.mxu1 %vm10567_vm7, %v15514_v20  ;;  %v18162_v44 = vrot.slane %v7693_v15, %v16231_v46 }
 0xb8d   : > { %v15516_v41 = vpop.eup %15515  ;;  %15159 = vmatpush3.msk.msra.mxu1 %vm10571_vm6, %v18128_v13  ;;  %10490 = vadd.xlane.f32.xlu0 %v10489_v0 }
 0xb8e   : > { %v10435_v55 = vmul.f32 1.442695, %v10389_v42  ;;  %15160 = vmatprep.mubr.msk.f32.mxu1 %vm15840_vm1, %v18841_v26  ;;  %15168 = vmatprep.subr.mxu1 %v18841_v26  ;;  %v10495_v12 = vsel %vm10278_vm5, %v15516_v41, 0.0 }
 0xb8f   : > { %v10329_v19 = vpop.xlane.xlu0 %10328 }
 0xb90   : > { %15521 = vpow2.f32 %v10435_v55  ;;  %v10391_v53 = vsub.f32 %v17857_v35, %v10329_v19  ;;  %v18140_v35 = vrot.slane %v7659_v58, %v16231_v46  ;;  %15161 = vmatmul.mubr.msk.f32.vlgmr.msra.gmra.mxu1 %vm10567_vm7, %v15516_v41  ;;  %v18177_v55 = vrot.slane %v7726_v63, %v16231_v46 }
 0xb91   : > { %10496 = vadd.xlane.f32.xlu0 %v10495_v12  ;;  %15170 = vmatprep.mubr.msk.f32.mxu1 %vm15840_vm1, %v18841_v26 }
 0xb92   : > { %v10439_v11 = vmul.f32 1.442695, %v10391_v53  ;;  %15169 = vmatpush3.msk.msra.mxu1 %vm10571_vm6, %v18140_v35  ;;  %v18847_v53 = vcombine.high %v18006_v34, %v18016_v16 }
 0xb93   : > { %v10335_v8 = vpop.xlane.xlu0 %10334  ;;  %15178 = vmatprep.subr.mxu1 %v18841_v26 }
 0xb94   : > { %15523 = vpow2.f32 %v10439_v11  ;;  %v10393_v57 = vsub.f32 %v17863_v21, %v10335_v8  ;;  %v18151_v21 = vrot.slane %v7692_v28, %v16231_v46  ;;  %v18192_v47 = vrot.slane %v18847_v53, %v16231_v46 }
 0xb95   : > { %v15518_v9 = vpop.eup %15517 }
 0xb96   : > { %v10443_v40 = vmul.f32 1.442695, %v10393_v57  ;;  %v10501_v1 = vsel %vm10278_vm5, %v15518_v9, 0.0  ;;  %15171 = vmatmul.mubr.msk.f32.vlgmr.msra.gmra.mxu1 %vm10567_vm7, %v15518_v9 }
 0xb97   : > { %v10341_v7 = vpop.xlane.xlu0 %10340  ;;  %15179 = vmatpush3.msk.msra.mxu1 %vm10571_vm6, %v18151_v21  ;;  %10502 = vadd.xlane.f32.xlu0 %v10501_v1 }
 0xb98   : > { %15525 = vpow2.f32 %v10443_v40  ;;  %v10395_v17 = vsub.f32 %v17869_v27, %v10341_v7  ;;  %15180 = vmatprep.mubr.msk.f32.mxu1 %vm15840_vm1, %v18841_v26  ;;  %15188 = vmatprep.subr.mxu1 %v18841_v26 }
 0xb99   : > { %v15520_v62 = vpop.eup %15519 }
 0xb9a   : > { %v10447_v10 = vmul.f32 1.442695, %v10395_v17  ;;  %v10507_v29 = vsel %vm10278_vm5, %v15520_v62, 0.0  ;;  %15181 = vmatmul.mubr.msk.f32.vlgmr.msra.gmra.mxu1 %vm10567_vm7, %v15520_v62 }
 0xb9b   : > { %v10347_v3 = vpop.xlane.xlu0 %10346  ;;  %15189 = vmatpush3.msk.msra.mxu1 %vm10571_vm6, %v18162_v44  ;;  %10508 = vadd.xlane.f32.xlu0 %v10507_v29 }
 0xb9c   : > { %15527 = vpow2.f32 %v10447_v10  ;;  %v10397_v27 = vsub.f32 %v17875_v23, %v10347_v3  ;;  %15190 = vmatprep.mubr.msk.f32.mxu1 %vm15840_vm1, %v18841_v26  ;;  %15198 = vmatprep.subr.mxu1 %v18841_v26 }
 0xb9d   : > { %v15522_v56 = vpop.eup %15521  ;;  %v10296_v49 = vpop.xlane.xlu1 %10295 }
 0xb9e   : > { %v10451_v42 = vmul.f32 1.442695, %v10397_v27  ;;  %v10380_v5 = vsub.f32 %v17821_v4, %v10296_v49  ;;  %v10513_v20 = vsel %vm10278_vm5, %v15522_v56, 0.0  ;;  %15191 = vmatmul.mubr.msk.f32.vlgmr.msra.gmra.mxu1 %vm10567_vm7, %v15522_v56 }
 0xb9f   : > { %v10353_v6 = vpop.xlane.xlu0 %10352  ;;  %15199 = vmatpush3.msk.msra.mxu1 %vm10571_vm6, %v18177_v55  ;;  %10514 = vadd.xlane.f32.xlu0 %v10513_v20 }
 0xba0   : > { %15529 = vpow2.f32 %v10451_v42  ;;  %v10417_v23 = vmul.f32 1.442695, %v10380_v5  ;;  %v10399_v32 = vsub.f32 %v17881_v43, %v10353_v6  ;;  %15200 = vmatprep.mubr.msk.f32.mxu1 %vm15840_vm1, %v18841_v26  ;;  %15208 = vmatprep.subr.mxu1 %v18841_v26 }
 0xba1   : > { %v15524_v0 = vpop.eup %15523  ;;  %v10302_v4 = vpop.xlane.xlu1 %10301 }
 0xba2   : > { %15531 = vpow2.f32 %v10417_v23  ;;  %v10455_v19 = vmul.f32 1.442695, %v10399_v32  ;;  %v10382_v41 = vsub.f32 %v17829_v60, %v10302_v4  ;;  %v10519_v63 = vsel %vm10278_vm5, %v15524_v0, 0.0  ;;  %15201 = vmatmul.mubr.msk.f32.vlgmr.msra.gmra.mxu1 %vm10567_vm7, %v15524_v0 }
 0xba3   : > { %v10359_v43 = vpop.xlane.xlu0 %10358  ;;  %v10384_v60 = vsub.f32 %v17837_v36, %v18060_v52  ;;  %15209 = vmatpush3.msk.msra.mxu1 %vm10571_vm6, %v18192_v47  ;;  %10520 = vadd.xlane.f32.xlu0 %v10519_v63  ;;  %v18848_v36 = vcombine.low %v18009_v48, %v18019_v2 }
 0xba4   : > { %15533 = vpow2.f32 %v10455_v19  ;;  %v10421_v58 = vmul.f32 1.442695, %v10382_v41  ;;  %v10401_v11 = vsub.f32 %v17889_v22, %v10359_v43  ;;  %15210 = vmatprep.mubr.msk.f32.mxu1 %vm15840_vm1, %v18841_v26  ;;  %15218 = vmatprep.subr.mxu1 %v18841_v26  ;;  %v18852_v43 = vcombine.low %v18028_v39, %v18025_v45 }
 0xba5   : > { %v15526_v12 = vpop.eup %15525  ;;  %v10314_v8 = vpop.xlane.xlu1 %10313  ;;  %v18208_v16 = vrot.slane %v18848_v36, %v16231_v46  ;;  %v10425_v9 = vmul.f32 1.442695, %v10384_v60 }
 0xba6   : > { %15535 = vpow2.f32 %v10421_v58  ;;  %v10459_v28 = vmul.f32 1.442695, %v10401_v11  ;;  %v10525_v22 = vsel %vm10278_vm5, %v15526_v12, 0.0  ;;  %v10386_v40 = vsub.f32 %v17843_v37, %v10314_v8  ;;  %15211 = vmatmul.mubr.msk.f32.vlgmr.msra.gmra.mxu1 %vm10567_vm7, %v15526_v12 }
 0xba7   : > { %v10365_v34 = vpop.xlane.xlu0 %10364  ;;  %15219 = vmatpush3.msk.msra.mxu1 %vm10571_vm6, %v18208_v16  ;;  %10526 = vadd.xlane.f32.xlu0 %v10525_v22  ;;  %v18849_v37 = vcombine.high %v18009_v48, %v18019_v2  ;;  %v7641_v48 = vcombine.high %v18114_v25, %v18841_v26  ;;  %v18279_v58 = vrot.slane %v18852_v43, %v16231_v46 }
 0xba8   : > { %15537 = vpow2.f32 %v10459_v28  ;;  %v10403_v52 = vsub.f32 %v17897_v14, %v10365_v34  ;;  %15220 = vmatprep.mubr.msk.f32.mxu1 %vm15840_vm1, %v18841_v26  ;;  %15228 = vmatprep.subr.mxu1 %v18841_v26  ;;  %v10429_v29 = vmul.f32 1.442695, %v10386_v40  ;;  %v7675_v8 = vcombine.high %v18140_v35, %v18841_v26 }
 0xba9   : > { %v15528_v57 = vpop.eup %15527  ;;  %v10320_v1 = vpop.xlane.xlu1 %10319  ;;  %v18223_v17 = vrot.slane %v18849_v37, %v16231_v46  ;;  %v7844_v43 = vcombine.high %v18279_v58, %v18841_v26 }
 0xbaa   : > { %v10463_v7 = vmul.f32 1.442695, %v10403_v52  ;;  %v10531_v15 = vsel %vm10278_vm5, %v15528_v57, 0.0  ;;  %v10388_v3 = vsub.f32 %v17849_v24, %v10320_v1  ;;  %15221 = vmatmul.mubr.msk.f32.vlgmr.msra.gmra.mxu1 %vm10567_vm7, %v15528_v57  ;;  %v18850_v24 = vcombine.low %v18012_v51, %v18022_v33 }
 0xbab   : > { %v10371_v14 = vpop.xlane.xlu0 %10370  ;;  %15229 = vmatpush3.msk.msra.mxu1 %vm10571_vm6, %v18223_v17  ;;  %10532 = vadd.xlane.f32.xlu0 %v10531_v15 }
 0xbac   : > { %15539 = vpow2.f32 %v10463_v7  ;;  %v10405_v62 = vsub.f32 %v17905_v31, %v10371_v14  ;;  %15230 = vmatprep.mubr.msk.f32.mxu1 %vm15840_vm1, %v18841_v26  ;;  %15238 = vmatprep.subr.mxu1 %v18841_v26  ;;  %v18240_v2 = vrot.slane %v18850_v24, %v16231_v46  ;;  %v10433_v5 = vmul.f32 1.442695, %v10388_v3 }
 0xbad   : > { %v15530_v10 = vpop.eup %15529  ;;  %15541 = vpow2.f32 %v10425_v9  ;;  %v10326_v27 = vpop.xlane.xlu1 %10325 }
 0xbae   : > { %v10467_v56 = vmul.f32 1.442695, %v10405_v62  ;;  %v10537_v31 = vsel %vm10278_vm5, %v15530_v10, 0.0  ;;  %v10390_v20 = vsub.f32 %v17855_v38, %v10326_v27  ;;  %15231 = vmatmul.mubr.msk.f32.vlgmr.msra.gmra.mxu1 %vm10567_vm7, %v15530_v10  ;;  %v18851_v38 = vcombine.high %v18012_v51, %v18022_v33 }
 0xbaf   : > { %v15532_v49 = vpop.eup %15531  ;;  %15239 = vmatpush3.msk.msra.mxu1 %vm10571_vm6, %v18240_v2  ;;  %10538 = vadd.xlane.f32.xlu0 %v10537_v31  ;;  %v7674_v51 = vcombine.high %v18128_v13, %v18841_v26 }
 0xbb0   : > { %15543 = vpow2.f32 %v10467_v56  ;;  %15146 = vmatmul.mubr.msk.f32.vlgmr.msra.gmra.mxu0 %vm10567_vm7, %v15532_v49  ;;  %v10486_v25 = vsel %vm10278_vm5, %v15532_v49, 0.0  ;;  %15240 = vmatprep.mubr.msk.f32.mxu1 %vm15840_vm1, %v18841_v26  ;;  %v18257_v0 = vrot.slane %v18851_v38, %v16231_v46  ;;  %v10437_v19 = vmul.f32 1.442695, %v10390_v20 }
 0xbb1   : > { %v15534_v42 = vpop.eup %15533  ;;  %15545 = vpow2.f32 %v10429_v29  ;;  %15154 = vmatpush3.msk.msra.mxu0 %vm10571_vm6, %v7641_v48  ;;  %v10332_v6 = vpop.xlane.xlu1 %10331  ;;  %15248 = vmatprep.subr.mxu1 %v18841_v26  ;;  %v18855_v48 = vld [vmem:[#allocation26_spill] sm:$0xff] }
 0xbb2   : > { %v10543_v32 = vsel %vm10278_vm5, %v15534_v42, 0.0  ;;  %10487 = vadd.xlane.f32.xlu1 %v10486_v25  ;;  %15155 = vmatprep.mubr.msk.f32.mxu0 %vm15840_vm1, %v18841_v26  ;;  %15547 = vpow2.f32 %v10433_v5  ;;  %v10392_v41 = vsub.f32 %v17861_v61, %v10332_v6  ;;  %v18856_v25 = vld [vmem:[#allocation27_spill] sm:$0xff] }
 0xbb3   : > { %v15536_v23 = vpop.eup %15535  ;;  %15241 = vmatmul.mubr.msk.f32.vlgmr.msra.gmra.mxu1 %vm10567_vm7, %v15534_v42  ;;  %15163 = vmatprep.subr.mxu0 %v18841_v26  ;;  %15549 = vpow2.f32 %v10437_v19 }
 0xbb4   : > { %15249 = vmatpush3.msk.msra.mxu1 %vm10571_vm6, %v18257_v0  ;;  %10544 = vadd.xlane.f32.xlu0 %v10543_v32  ;;  %v10492_v33 = vsel %vm10278_vm5, %v15536_v23, 0.0  ;;  %v10441_v53 = vmul.f32 1.442695, %v10392_v41 }
 0xbb5   : > { %v15538_v4 = vpop.eup %15537  ;;  %v10338_v63 = vpop.xlane.xlu1 %10337  ;;  %15156 = vmatmul.mubr.msk.f32.vlgmr.msra.gmra.mxu0 %vm10567_vm7, %v15536_v23  ;;  %15250 = vmatprep.mubr.msk.f32.mxu1 %vm15840_vm1, %v18841_v26 }
 0xbb6   : > { %v10549_v61 = vsel %vm10278_vm5, %v15538_v4, 0.0  ;;  %15164 = vmatpush3.msk.msra.mxu0 %vm10571_vm6, %v7674_v51  ;;  %15258 = vmatprep.subr.mxu1 %v18841_v26  ;;  %v10394_v11 = vsub.f32 %v17867_v18, %v10338_v63  ;;  %v18853_v18 = vcombine.high %v18028_v39, %v18025_v45  ;;  %15551 = vpow2.f32 %v10441_v53 }
 0xbb7   : > { %10493 = vadd.xlane.f32.xlu1 %v10492_v33  ;;  %15251 = vmatmul.mubr.msk.f32.vlgmr.msra.gmra.mxu1 %vm10567_vm7, %v15538_v4  ;;  %v7708_v45 = vcombine.high %v18151_v21, %v18841_v26  ;;  %v7709_v21 = vcombine.high %v18162_v44, %v18841_v26  ;;  %v7742_v44 = vcombine.high %v18177_v55, %v18841_v26 }
 0xbb8   : > { %15259 = vmatpush3.msk.msra.mxu1 %vm10571_vm6, %v18279_v58  ;;  %10550 = vadd.xlane.f32.xlu0 %v10549_v61  ;;  %v18297_v28 = vrot.slane %v18853_v18, %v16231_v46  ;;  %v10445_v36 = vmul.f32 1.442695, %v10394_v11  ;;  %v7743_v55 = vcombine.high %v18192_v47, %v18841_v26  ;;  %v7776_v47 = vcombine.high %v18208_v16, %v18841_v26 }
 0xbb9   : > { %v15540_v13 = vpop.eup %15539  ;;  %v10344_v12 = vpop.xlane.xlu1 %10343  ;;  %15165 = vmatprep.mubr.msk.f32.mxu0 %vm15840_vm1, %v18841_v26  ;;  %15173 = vmatprep.subr.mxu0 %v18841_v26  ;;  %v7777_v16 = vcombine.high %v18223_v17, %v18841_v26  ;;  %v7810_v63 = vcombine.high %v18240_v2, %v18841_v26  ;;  %v7811_v33 = vcombine.high %v18257_v0, %v18841_v26 }
 0xbba   : > { %v15542_v60 = vpop.eup %15541  ;;  %15260 = vmatprep.mubr.msk.f32.mxu1 %vm15840_vm1, %v18841_v26  ;;  %v10555_v22 = vsel %vm10278_vm5, %v15540_v13, 0.0  ;;  %15268 = vmatprep.subr.mxu1 %v18841_v26  ;;  %v10396_v35 = vsub.f32 %v17873_v50, %v10344_v12  ;;  %15553 = vpow2.f32 %v10445_v36  ;;  %v7845_v53 = vcombine.high %v18297_v28, %v18841_v26 }
 0xbbb   : > { %15166 = vmatmul.mubr.msk.f32.vlgmr.msra.gmra.mxu0 %vm10567_vm7, %v15542_v60  ;;  %v10498_v52 = vsel %vm10278_vm5, %v15542_v60, 0.0  ;;  %15261 = vmatmul.mubr.msk.f32.vlgmr.msra.gmra.mxu1 %vm10567_vm7, %v15540_v13 }
 0xbbc   : > { %15174 = vmatpush3.msk.msra.mxu0 %vm10571_vm6, %v7675_v8  ;;  %10499 = vadd.xlane.f32.xlu1 %v10498_v52  ;;  %v10449_v39 = vmul.f32 1.442695, %v10396_v35 }
 0xbbd   : > { %v15544_v34 = vpop.eup %15543  ;;  %v10350_v57 = vpop.xlane.xlu1 %10349  ;;  %15269 = vmatpush3.msk.msra.mxu1 %vm10571_vm6, %v18297_v28  ;;  %10556 = vadd.xlane.f32.xlu0 %v10555_v22 }
 0xbbe   : > { %v15546_v9 = vpop.eup %15545  ;;  %15175 = vmatprep.mubr.msk.f32.mxu0 %vm15840_vm1, %v18841_v26  ;;  %15183 = vmatprep.subr.mxu0 %v18841_v26  ;;  %v10561_v50 = vsel %vm10278_vm5, %v15544_v34, 0.0  ;;  %v10398_v40 = vsub.f32 %v17879_v59, %v10350_v57  ;;  %15555 = vpow2.f32 %v10449_v39 }
 0xbbf   : > { %15176 = vmatmul.mubr.msk.f32.vlgmr.msra.gmra.mxu0 %vm10567_vm7, %v15546_v9  ;;  %15270 = vmatprep.mubr.msk.f32.mxu1 %vm15840_vm1, %v18841_v26  ;;  %v10504_v1 = vsel %vm10278_vm5, %v15546_v9, 0.0  ;;  %v15548_v15 = vpop.eup %15547 }
 0xbc0   : > { %15184 = vmatpush3.msk.msra.mxu0 %vm10571_vm6, %v7708_v45  ;;  %10505 = vadd.xlane.f32.xlu1 %v10504_v1  ;;  %v10453_v59 = vmul.f32 1.442695, %v10398_v40  ;;  %v10510_v37 = vsel %vm10278_vm5, %v15548_v15, 0.0  ;;  %v15550_v10 = vpop.eup %15549 }
 0xbc1   : > { %v10356_v7 = vpop.xlane.xlu1 %10355  ;;  %15271 = vmatmul.mubr.msk.f32.vlgmr.msra.gmra.mxu1 %vm10567_vm7, %v15544_v34  ;;  %10562 = vadd.xlane.f32.xlu0 %v10561_v50  ;;  %v10516_v27 = vsel %vm10278_vm5, %v15550_v10, 0.0 }
 0xbc2   : > { %15185 = vmatprep.mubr.msk.f32.mxu0 %vm15840_vm1, %v18841_v26  ;;  %15193 = vmatprep.subr.mxu0 %v18841_v26  ;;  %v10400_v14 = vsub.f32 %v17885_v54, %v10356_v7  ;;  %15557 = vpow2.f32 %v10453_v59  ;;  %v18854_v54 = vld [vmem:[#allocation25_spill] sm:$0xff] }
 0xbc3   : > { %15186 = vmatmul.mubr.msk.f32.vlgmr.msra.gmra.mxu0 %vm10567_vm7, %v15548_v15  ;;  %v15552_v49 = vpop.eup %15551 }
 0xbc4   : > { %15194 = vmatpush3.msk.msra.mxu0 %vm10571_vm6, %v7709_v21  ;;  %10511 = vadd.xlane.f32.xlu1 %v10510_v37  ;;  %v10457_v29 = vmul.f32 1.442695, %v10400_v14  ;;  %v10522_v42 = vsel %vm10278_vm5, %v15552_v49, 0.0 }
 0xbc5   : > { %v10362_v62 = vpop.xlane.xlu1 %10361  ;;  %15195 = vmatprep.mubr.msk.f32.mxu0 %vm15840_vm1, %v18841_v26  ;;  %15203 = vmatprep.subr.mxu0 %v18841_v26 }
 0xbc6   : > { %v10402_v3 = vsub.f32 %v18854_v54, %v10362_v62  ;;  %15559 = vpow2.f32 %v10457_v29 }
 0xbc7   : > { %15196 = vmatmul.mubr.msk.f32.vlgmr.msra.gmra.mxu0 %vm10567_vm7, %v15550_v10  ;;  %v15554_v5 = vpop.eup %15553 }
 0xbc8   : > { %15204 = vmatpush3.msk.msra.mxu0 %vm10571_vm6, %v7742_v44  ;;  %10517 = vadd.xlane.f32.xlu1 %v10516_v27  ;;  %v10461_v31 = vmul.f32 1.442695, %v10402_v3  ;;  %v10528_v32 = vsel %vm10278_vm5, %v15554_v5, 0.0 }
 0xbc9   : > { %v10368_v56 = vpop.xlane.xlu1 %10367  ;;  %15205 = vmatprep.mubr.msk.f32.mxu0 %vm15840_vm1, %v18841_v26  ;;  %15213 = vmatprep.subr.mxu0 %v18841_v26 }
 0xbca   : > { %v10404_v24 = vsub.f32 %v18855_v48, %v10368_v56  ;;  %15561 = vpow2.f32 %v10461_v31 }
 0xbcb   : > { %15206 = vmatmul.mubr.msk.f32.vlgmr.msra.gmra.mxu0 %vm10567_vm7, %v15552_v49  ;;  %v15556_v38 = vpop.eup %15555 }
 0xbcc   : > { %15214 = vmatpush3.msk.msra.mxu0 %vm10571_vm6, %v7743_v55  ;;  %10523 = vadd.xlane.f32.xlu1 %v10522_v42  ;;  %v10465_v6 = vmul.f32 1.442695, %v10404_v24  ;;  %v10534_v19 = vsel %vm10278_vm5, %v15556_v38, 0.0 }
 0xbcd   : > { %v10374_v20 = vpop.xlane.xlu1 %10373  ;;  %15215 = vmatprep.mubr.msk.f32.mxu0 %vm15840_vm1, %v18841_v26  ;;  %15223 = vmatprep.subr.mxu0 %v18841_v26 }
 0xbce   : > { %v10406_v23 = vsub.f32 %v18856_v25, %v10374_v20  ;;  %15563 = vpow2.f32 %v10465_v6 }
 0xbcf   : > { %15216 = vmatmul.mubr.msk.f32.vlgmr.msra.gmra.mxu0 %vm10567_vm7, %v15554_v5  ;;  %v15558_v41 = vpop.eup %15557 }
 0xbd0   : > { %15224 = vmatpush3.msk.msra.mxu0 %vm10571_vm6, %v7776_v47  ;;  %10529 = vadd.xlane.f32.xlu1 %v10528_v32  ;;  %v10469_v4 = vmul.f32 1.442695, %v10406_v23  ;;  %v10540_v17 = vsel %vm10278_vm5, %v15558_v41, 0.0 }
 0xbd1   : > { %15225 = vmatprep.mubr.msk.f32.mxu0 %vm15840_vm1, %v18841_v26  ;;  %15233 = vmatprep.subr.mxu0 %v18841_v26 }
 0xbd2   : > { %15565 = vpow2.f32 %v10469_v4 }
 0xbd3   : > { %15226 = vmatmul.mubr.msk.f32.vlgmr.msra.gmra.mxu0 %vm10567_vm7, %v15556_v38  ;;  %v15560_v51 = vpop.eup %15559 }
 0xbd4   : > { %15234 = vmatpush3.msk.msra.mxu0 %vm10571_vm6, %v7777_v16  ;;  %10535 = vadd.xlane.f32.xlu1 %v10534_v19  ;;  %v10546_v2 = vsel %vm10278_vm5, %v15560_v51, 0.0 }
 0xbd5   : > { %15235 = vmatprep.mubr.msk.f32.mxu0 %vm15840_vm1, %v18841_v26  ;;  %15243 = vmatprep.subr.mxu0 %v18841_v26 }
 0xbd7   : > { %15236 = vmatmul.mubr.msk.f32.vlgmr.msra.gmra.mxu0 %vm10567_vm7, %v15558_v41  ;;  %v15562_v61 = vpop.eup %15561 }
 0xbd8   : > { %15244 = vmatpush3.msk.msra.mxu0 %vm10571_vm6, %v7810_v63  ;;  %10541 = vadd.xlane.f32.xlu1 %v10540_v17  ;;  %v10552_v0 = vsel %vm10278_vm5, %v15562_v61, 0.0 }
 0xbd9   : > { %15245 = vmatprep.mubr.msk.f32.mxu0 %vm15840_vm1, %v18841_v26  ;;  %15253 = vmatprep.subr.mxu0 %v18841_v26 }
 0xbdb   : > { %15246 = vmatmul.mubr.msk.f32.vlgmr.msra.gmra.mxu0 %vm10567_vm7, %v15560_v51  ;;  %v15564_v13 = vpop.eup %15563 }
 0xbdc   : > { %15254 = vmatpush3.msk.msra.mxu0 %vm10571_vm6, %v7811_v33  ;;  %10547 = vadd.xlane.f32.xlu1 %v10546_v2  ;;  %v10558_v58 = vsel %vm10278_vm5, %v15564_v13, 0.0 }
 0xbdd   : > { %15255 = vmatprep.mubr.msk.f32.mxu0 %vm15840_vm1, %v18841_v26  ;;  %15263 = vmatprep.subr.mxu0 %v18841_v26 }
 0xbdf   : > { %15256 = vmatmul.mubr.msk.f32.vlgmr.msra.gmra.mxu0 %vm10567_vm7, %v15562_v61  ;;  %v15566_v11 = vpop.eup %15565 }
 0xbe0   : > { %15264 = vmatpush3.msk.msra.mxu0 %vm10571_vm6, %v7844_v43  ;;  %10553 = vadd.xlane.f32.xlu1 %v10552_v0  ;;  %v10564_v12 = vsel %vm10278_vm5, %v15566_v11, 0.0 }
 0xbe1   : > { %15265 = vmatprep.mubr.msk.f32.mxu0 %vm15840_vm1, %v18841_v26  ;;  %15273 = vmatprep.subr.mxu0 %v18841_v26 }
 0xbe3   : > { %15266 = vmatmul.mubr.msk.f32.vlgmr.msra.gmra.mxu0 %vm10567_vm7, %v15564_v13 }
 0xbe4   : > { %15274 = vmatpush3.msk.msra.mxu0 %vm10571_vm6, %v7845_v53  ;;  %10559 = vadd.xlane.f32.xlu1 %v10558_v58 }
 0xbe5   : > { %15275 = vmatprep.mubr.msk.f32.mxu0 %vm15840_vm1, %v18841_v26 }
 0xbe7   : > { %15276 = vmatmul.mubr.msk.f32.vlgmr.msra.gmra.mxu0 %vm10567_vm7, %v15566_v11 }
 0xbe8   : > { %10565 = vadd.xlane.f32.xlu1 %v10564_v12 }
 0xc03   : > { %v10473_v60 = vpop.xlane.xlu0 %10472 }
 0xc04   : > { %15567 = vrcp.f32 %v10473_v60 }
 0xc05   : > { %v10476_v28 = vpop.xlane.xlu1 %10475 }
 0xc08   : > { %v10479_v8 = vpop.xlane.xlu0 %10478 }
 0xc09   : > { %15569 = vrcp.f32 %v10479_v8 }
 0xc0a   : > { %15571 = vrcp.f32 %v10476_v28 }
 0xc0c   : > { %v10482_v34 = vpop.xlane.xlu1 %10481 }
 0xc0d   : > { %15573 = vrcp.f32 %v10482_v34 }
 0xc11   : > { %v15568_v9 = vpop.eup %15567 }
 0xc12   : > { %v10485_v18 = vpop.xlane.xlu0 %10484 }
 0xc13   : > { %15575 = vrcp.f32 %v10485_v18 }
 0xc16   : > { %v10491_v22 = vpop.xlane.xlu0 %10490  ;;  %v15570_v45 = vpop.eup %15569 }
 0xc17   : > { %15577 = vrcp.f32 %v10491_v22  ;;  %v15572_v15 = vpop.eup %15571 }
 0xc1a   : > { %v10497_v36 = vpop.xlane.xlu0 %10496  ;;  %v15574_v59 = vpop.eup %15573 }
 0xc1b   : > { %15579 = vrcp.f32 %v10497_v36 }
 0xc20   : > { %v10503_v35 = vpop.xlane.xlu0 %10502  ;;  %v15576_v31 = vpop.eup %15575 }
 0xc21   : > { %15581 = vrcp.f32 %v10503_v35 }
 0xc24   : > { %v10509_v40 = vpop.xlane.xlu0 %10508  ;;  %v15578_v42 = vpop.eup %15577 }
 0xc25   : > { %15583 = vrcp.f32 %v10509_v40 }
 0xc28   : > { %v10515_v3 = vpop.xlane.xlu0 %10514  ;;  %v15580_v19 = vpop.eup %15579 }
 0xc29   : > { %15585 = vrcp.f32 %v10515_v3 }
 0xc2c   : > { %v10521_v25 = vpop.xlane.xlu0 %10520 }
 0xc2d   : > { %15587 = vrcp.f32 %v10521_v25 }
 0xc2e   : > { %v15582_v41 = vpop.eup %15581 }
 0xc30   : > { %v10527_v63 = vpop.xlane.xlu0 %10526 }
 0xc31   : > { %15589 = vrcp.f32 %v10527_v63 }
 0xc32   : > { %v15584_v53 = vpop.eup %15583 }
 0xc36   : > { %v15586_v58 = vpop.eup %15585 }
 0xc3a   : > { %v15588_v36 = vpop.eup %15587 }
 0xc3b   : > { %v18400_v44 = vpop.xlane.xlu1 %10487 }
 0xc3e   : > { %v10641_v52 = vpop.f32.mrf.mxu1  ;;  %v15590_v35 = vpop.eup %15589 }
 0xc3f   : > { %v13002_v1 = vmul.f32 %v15568_v9, %v10641_v52 }
 0xc40   : > { %v15122_v26 = vpop.f32.mrf.mxu1  ;;  %v10717_v57 = vpop.f32.mrf.mxu0 }
 0xc41   : > { %v13004_v62 = vmul.f32 %v15572_v15, %v10717_v57  ;;  %v10494_v5 = vpop.xlane.xlu1 %10493 }
 0xc42   : > { %v15127_v50 = vpop.f32.mrf.mxu0 }
 0xc43   : > { %v10793_v39 = vpop.f32.mrf.mxu1 }
 0xc44   : > { %v13006_v7 = vmul.f32 %v15570_v45, %v10793_v39 }
 0xc45   : > { %v15132_v21 = vpop.f32.mrf.mxu1  ;;  %v10869_v37 = vpop.f32.mrf.mxu0 }
 0xc46   : > { %v13065_v14 = vcombine.low %v13002_v1, %v13006_v7  ;;  %v13008_v10 = vmul.f32 %v15574_v59, %v10869_v37  ;;  %v10500_v16 = vpop.xlane.xlu1 %10499 }
 0xc47   : > { %v15137_v29 = vpop.f32.mrf.mxu0  ;;  %15591 = vrcp.f32 %v10500_v16 }
 0xc48   : > { %v13073_v54 = vcombine.low %v13004_v62, %v13008_v10  ;;  %v10945_v27 = vpop.f32.mrf.mxu1  ;;  %v18403_v56 = vrot.slane %v13065_v14, %v16223_v30  ;;  %v10533_v62 = vpop.xlane.xlu0 %10532 }
 0xc49   : > { %v18412_v47 = vmul.f32 %v15576_v31, %v10945_v27 }
 0xc4a   : > { %v18406_v49 = vrot.slane %v13073_v54, %v16223_v30  ;;  %v15142_v55 = vpop.f32.mrf.mxu1  ;;  %v10506_v43 = vpop.xlane.xlu1 %10505 }
 0xc4b   : > { %15593 = vrcp.f32 %v10506_v43 }
 0xc4c   : > { %v13081_v48 = vcombine.low %v18403_v56, %v18406_v49  ;;  %v13082_v24 = vcombine.high %v18403_v56, %v18406_v49  ;;  %v11097_v20 = vpop.f32.mrf.mxu1  ;;  %15595 = vrcp.f32 %v10494_v5  ;;  %v10539_v31 = vpop.xlane.xlu0 %10538 }
 0xc4d   : > { %v18414_v6 = vmul.f32 %v15578_v42, %v11097_v20  ;;  %15597 = vrcp.f32 %v18400_v44 }
 0xc4e   : > { %v15152_v23 = vpop.f32.mrf.mxu1  ;;  %v10512_v8 = vpop.xlane.xlu1 %10511 }
 0xc4f   : > { %v13099_v32 = vcombine.low %v18412_v47, %v18414_v6 }
 0xc50   : > { %v11249_v38 = vpop.f32.mrf.mxu1 }
 0xc51   : > { %v18418_v51 = vmul.f32 %v15580_v19, %v11249_v38  ;;  %v10545_v19 = vpop.xlane.xlu0 %10544  ;;  %v13106_v56 = vrot.slane %v13099_v32, %v16223_v30 }
 0xc52   : > { %v15162_v4 = vpop.f32.mrf.mxu1  ;;  %v10518_v52 = vpop.xlane.xlu1 %10517 }
 0xc53   : > { %15599 = vrcp.f32 %v10518_v52 }
 0xc54   : > { %15601 = vrcp.f32 %v10512_v8  ;;  %v15592_v25 = vpop.eup %15591 }
 0xc55   : > { %15603 = vrcp.f32 %v10533_v62 }
 0xc56   : > { %v11401_v17 = vpop.f32.mrf.mxu1  ;;  %v18438_v40 = vpop.xlane.xlu1 %10523  ;;  %15605 = vrcp.f32 %v10539_v31 }
 0xc57   : > { %v18420_v33 = vmul.f32 %v15582_v41, %v11401_v17  ;;  %15607 = vrcp.f32 %v10545_v19 }
 0xc58   : > { %v15172_v2 = vpop.f32.mrf.mxu1  ;;  %v15594_v38 = vpop.eup %15593 }
 0xc59   : > { %v13133_v61 = vcombine.low %v18418_v51, %v18420_v33  ;;  %v15596_v4 = vpop.eup %15595  ;;  %v18468_v51 = vrot.slane %v13082_v24, %v16231_v46 }
 0xc5a   : > { %v11553_v0 = vpop.f32.mrf.mxu1  ;;  %v18442_v14 = vpop.xlane.xlu1 %10529 }
 0xc5b   : > { %v18424_v12 = vmul.f32 %v15584_v53, %v11553_v0  ;;  %v15598_v0 = vpop.eup %15597  ;;  %v13140_v8 = vrot.slane %v13133_v61, %v16223_v30 }
 0xc5c   : > { %v15182_v13 = vpop.f32.mrf.mxu1 }
 0xc5e   : > { %v11705_v11 = vpop.f32.mrf.mxu1  ;;  %v18449_v27 = vpop.xlane.xlu1 %10535 }
 0xc5f   : > { %v18426_v60 = vmul.f32 %v15586_v58, %v11705_v11 }
 0xc60   : > { %v15192_v18 = vpop.f32.mrf.mxu1 }
 0xc61   : > { %v13167_v28 = vcombine.low %v18424_v12, %v18426_v60 }
 0xc62   : > { %v11857_v22 = vpop.f32.mrf.mxu1  ;;  %v10542_v16 = vpop.xlane.xlu1 %10541 }
 0xc63   : > { %v18430_v57 = vmul.f32 %v15588_v36, %v11857_v22 }
 0xc64   : > { %v15202_v34 = vpop.f32.mrf.mxu1 }
 0xc66   : > { %v12009_v26 = vpop.f32.mrf.mxu1  ;;  %v10548_v22 = vpop.xlane.xlu1 %10547 }
 0xc67   : > { %v18432_v9 = vmul.f32 %v15590_v35, %v12009_v26  ;;  %v15600_v26 = vpop.eup %15599 }
 0xc68   : > { %v15212_v45 = vpop.f32.mrf.mxu1 }
 0xc69   : > { %v13201_v50 = vcombine.low %v18430_v57, %v18432_v9  ;;  %v10551_v45 = vpop.xlane.xlu0 %10550 }
 0xc6a   : > { %v18436_v39 = vpop.f32.mrf.mxu1  ;;  %15609 = vrcp.f32 %v10551_v45  ;;  %v10554_v49 = vpop.xlane.xlu1 %10553 }
 0xc6b   : > { %15611 = vrcp.f32 %v18438_v40 }
 0xc6c   : > { %v15222_v1 = vpop.f32.mrf.mxu1  ;;  %15613 = vrcp.f32 %v18442_v14 }
 0xc6d   : > { %v13089_v1 = vrot.slane %v13081_v48, %v16231_v46  ;;  %15615 = vrcp.f32 %v10542_v16 }
 0xc6e   : > { %v18440_v15 = vpop.f32.mrf.mxu1  ;;  %15617 = vrcp.f32 %v10548_v22  ;;  %v10560_v19 = vpop.xlane.xlu1 %10559 }
 0xc6f   : > { %15619 = vrcp.f32 %v10554_v49 }
 0xc70   : > { %v11021_v7 = vpop.f32.mrf.mxu0  ;;  %v15232_v59 = vpop.f32.mrf.mxu1  ;;  %15621 = vrcp.f32 %v18449_v27 }
 0xc71   : > { %v13012_v53 = vmul.f32 %v15598_v0, %v11021_v7 }
 0xc72   : > { %v15147_v21 = vpop.f32.mrf.mxu0 }
 0xc73   : > { %v18444_v37 = vpop.f32.mrf.mxu1  ;;  %v15602_v21 = vpop.eup %15601 }
 0xc75   : > { %v15242_v10 = vpop.f32.mrf.mxu1  ;;  %v11173_v29 = vpop.f32.mrf.mxu0 }
 0xc76   : > { %v13016_v17 = vmul.f32 %v15596_v4, %v11173_v29 }
 0xc77   : > { %v18447_v54 = vpop.f32.mrf.mxu1  ;;  %v15157_v3 = vpop.f32.mrf.mxu0 }
 0xc78   : > { %v13107_v34 = vcombine.low %v13012_v53, %v13016_v17 }
 0xc79   : > { %v15252_v55 = vpop.f32.mrf.mxu1 }
 0xc7a   : > { %v13114_v62 = vrot.slane %v13107_v34, %v16223_v30 }
 0xc7b   : > { %v11325_v42 = vpop.f32.mrf.mxu0  ;;  %v18451_v5 = vpop.f32.mrf.mxu1 }
 0xc7c   : > { %v13020_v41 = vmul.f32 %v15592_v25, %v11325_v42  ;;  %v13174_v25 = vrot.slane %v13167_v28, %v16223_v30 }
 0xc7d   : > { %v15167_v20 = vpop.f32.mrf.mxu0  ;;  %v15262_v23 = vpop.f32.mrf.mxu1 }
 0xc7e   : > { %v10557_v20 = vpop.xlane.xlu0 %10556  ;;  %v13115_v23 = vcombine.low %v13106_v56, %v13114_v62 }
 0xc7f   : > { %v11477_v44 = vpop.f32.mrf.mxu0 }
 0xc80   : > { %v13024_v63 = vmul.f32 %v15594_v38, %v11477_v44  ;;  %v13116_v38 = vcombine.high %v13106_v56, %v13114_v62  ;;  %v13123_v40 = vrot.slane %v13115_v23, %v16231_v46 }
 0xc81   : > { %v18453_v2 = vpop.f32.mrf.mxu1  ;;  %v15177_v43 = vpop.f32.mrf.mxu0 }
 0xc82   : > { %v13141_v13 = vcombine.low %v13020_v41, %v13024_v63  ;;  %v13130_v41 = vrot.slane %v13116_v38, %v16231_v46  ;;  %v15604_v63 = vpop.eup %15603  ;;  %v10563_v17 = vpop.xlane.xlu0 %10562 }
 0xc83   : > { %v15272_v58 = vpop.f32.mrf.mxu1  ;;  %v11629_v11 = vpop.f32.mrf.mxu0  ;;  %15623 = vrcp.f32 %v10563_v17 }
 0xc84   : > { %v13148_v18 = vrot.slane %v13141_v13, %v16223_v30  ;;  %v13028_v10 = vmul.f32 %v15602_v21, %v11629_v11  ;;  %v15606_v53 = vpop.eup %15605  ;;  %15625 = vrcp.f32 %v10557_v20 }
 0xc85   : > { %v15187_v36 = vpop.f32.mrf.mxu0  ;;  %v13046_v17 = vmul.f32 %v15606_v53, %v18440_v15 }
 0xc86   : > { %v13149_v35 = vcombine.low %v13140_v8, %v13148_v18  ;;  %v13150_v52 = vcombine.high %v13140_v8, %v13148_v18  ;;  %v15608_v36 = vpop.eup %15607 }
 0xc87   : > { %v11781_v7 = vpop.f32.mrf.mxu0  ;;  %v13050_v38 = vmul.f32 %v15608_v36, %v18444_v37 }
 0xc88   : > { %v13157_v33 = vrot.slane %v13149_v35, %v16231_v46  ;;  %v13164_v61 = vrot.slane %v13150_v52, %v16231_v46  ;;  %v13032_v59 = vmul.f32 %v15600_v26, %v11781_v7  ;;  %v10566_v52 = vpop.xlane.xlu1 %10565 }
 0xc89   : > { %v15197_v29 = vpop.f32.mrf.mxu0  ;;  %15627 = vrcp.f32 %v10566_v52 }
 0xc8a   : > { %v13337_v3 = vcombine.low %v13089_v1, %v13157_v33  ;;  %v14480_v48 = vcombine.high %v13089_v1, %v13157_v33  ;;  %v13473_v55 = vcombine.low %v18468_v51, %v13164_v61  ;;  %v14484_v31 = vcombine.high %v18468_v51, %v13164_v61  ;;  %v15610_v51 = vpop.eup %15609 }
 0xc8b   : > { %v13175_v24 = vcombine.low %v13028_v10, %v13032_v59  ;;  %v18479_v42 = vpop.f32.mrf.mxu0  ;;  %v15612_v59 = vpop.eup %15611  ;;  %15629 = vrcp.f32 %v10560_v19 }
 0xc8c   : > { %v18494_v58 = vrot.slane %v13337_v3, %v16223_v30  ;;  %v18497_v11 = vrot.slane %v14480_v48, %v16223_v30  ;;  %v18509_v27 = vrot.slane %v13473_v55, %v16223_v30  ;;  %v18523_v33 = vrot.slane %v14484_v31, %v16223_v30  ;;  %v15614_v3 = vpop.eup %15613 }
 0xc8d   : > { %v13182_v44 = vrot.slane %v13175_v24, %v16223_v30  ;;  %v15207_v4 = vpop.f32.mrf.mxu0  ;;  %v15616_v31 = vpop.eup %15615  ;;  %v13054_v24 = vmul.f32 %v15610_v51, %v18447_v54 }
 0xc8e   : > { %v15618_v56 = vpop.eup %15617 }
 0xc8f   : > { %v13183_v47 = vcombine.low %v13174_v25, %v13182_v44  ;;  %v13184_v6 = vcombine.high %v13174_v25, %v13182_v44  ;;  %v12085_v32 = vpop.f32.mrf.mxu0  ;;  %v15620_v25 = vpop.eup %15619  ;;  %v13036_v44 = vmul.f32 %v15612_v59, %v18479_v42 }
 0xc90   : > { %v13040_v20 = vmul.f32 %v15614_v3, %v12085_v32 }
 0xc91   : > { %v13191_v12 = vrot.slane %v13183_v47, %v16231_v46  ;;  %v13198_v60 = vrot.slane %v13184_v6, %v16231_v46  ;;  %v15217_v28 = vpop.f32.mrf.mxu0  ;;  %v15622_v6 = vpop.eup %15621 }
 0xc92   : > { %v15624_v28 = vpop.eup %15623 }
 0xc93   : > { %v13345_v43 = vcombine.low %v13123_v40, %v13191_v12  ;;  %v14481_v14 = vcombine.high %v13123_v40, %v13191_v12  ;;  %v13481_v16 = vcombine.low %v13130_v41, %v13198_v60  ;;  %v14485_v0 = vcombine.high %v13130_v41, %v13198_v60  ;;  %v12237_v13 = vpop.f32.mrf.mxu0 }
 0xc94   : > { %v13269_v41 = vcombine.low %v13050_v38, %v13054_v24  ;;  %v13209_v12 = vcombine.low %v13036_v44, %v13040_v20  ;;  %v13062_v37 = vmul.f32 %v15624_v28, %v18453_v2 }
 0xc95   : > { %v18500_v8 = vrot.slane %v13345_v43, %v16223_v30  ;;  %v18503_v18 = vrot.slane %v14481_v14, %v16223_v30  ;;  %v18506_v22 = vrot.slane %v13481_v16, %v16223_v30  ;;  %v15227_v34 = vpop.f32.mrf.mxu0  ;;  %v18512_v35 = vrot.slane %v14485_v0, %v16223_v30  ;;  %v15626_v0 = vpop.eup %15625 }
 0xc96   : > { %v13044_v43 = vmul.f32 %v15622_v6, %v12237_v13  ;;  %v13042_v14 = vmul.f32 %v15604_v63, %v18436_v39  ;;  %v13276_v34 = vrot.slane %v13269_v41, %v16223_v30  ;;  %v13216_v36 = vrot.slane %v13209_v12, %v16223_v30  ;;  %v15628_v52 = vpop.eup %15627 }
 0xc97   : > { %v12389_v26 = vpop.f32.mrf.mxu0  ;;  %v13437_v45 = vcombine.low %v18497_v11, %v18503_v18  ;;  %v13369_v1 = vcombine.low %v18494_v58, %v18500_v8  ;;  %v13370_v7 = vcombine.high %v18494_v58, %v18500_v8  ;;  %v13438_v21 = vcombine.high %v18497_v11, %v18503_v18 }
 0xc98   : > { %v13505_v61 = vcombine.low %v18509_v27, %v18506_v22  ;;  %v13506_v10 = vcombine.high %v18509_v27, %v18506_v22  ;;  %v13573_v29 = vcombine.low %v18523_v33, %v18512_v35  ;;  %v13574_v55 = vcombine.high %v18523_v33, %v18512_v35  ;;  %v15630_v13 = vpop.eup %15629  ;;  %v5874_v27 = vld [vmem:[#allocation7 + $0x10] sm:$0xff] }
 0xc99   : > { %v15237_v62 = vpop.f32.mrf.mxu0  ;;  %v13048_v19 = vmul.f32 %v15616_v31, %v12389_v26  ;;  %v13235_v26 = vcombine.low %v13042_v14, %v13046_v17  ;;  %v13058_v51 = vmul.f32 %v15626_v0, %v18451_v5  ;;  %v13208_v39 = vrot.slane %v13201_v50, %v16223_v30  ;;  %v5875_v0 = vld [vmem:[#allocation7 + $0x18] sm:$0xff] }
 0xc9a   : > { %v18589_v58 = vrot.slane %v13505_v61, %v16231_v46  ;;  %v13520_v11 = vrot.slane %v13506_v10, %v16231_v46  ;;  %v18605_v61 = vrot.slane %v13573_v29, %v16231_v46  ;;  %v13588_v22 = vrot.slane %v13574_v55, %v16231_v46  ;;  %15278 = vmatprep.subr.mxu1 %v5875_v0  ;;  %v5872_v55 = vld [vmem:[#allocation7] sm:$0xff] }
 0xc9b   : > { %v12541_v48 = vpop.f32.mrf.mxu0  ;;  %v13243_v42 = vcombine.low %v13044_v43, %v13048_v19  ;;  %v13303_v53 = vcombine.low %v13058_v51, %v13062_v37  ;;  %v18559_v19 = vrot.slane %v13437_v45, %v16231_v46  ;;  %v18575_v45 = vrot.slane %v13370_v7, %v16231_v46  ;;  %15279 = vmatpush3.msra.mxu1 %v5875_v0  ;;  %v14488_v0 = vld [vmem:[%s18798_s10] ss:$0 sm:$0xff] }
 0xc9c   : > { %v13052_v4 = vmul.f32 %v15618_v56, %v12541_v48  ;;  %v13217_v48 = vcombine.low %v13208_v39, %v13216_v36  ;;  %v13242_v56 = vrot.slane %v13235_v26, %v16223_v30  ;;  %15280 = vmatprep.subr.mxu1 %v5874_v27 }
 0xc9d   : > { %v15247_v49 = vpop.f32.mrf.mxu0  ;;  %v13250_v59 = vrot.slane %v13243_v42, %v16223_v30  ;;  %v13310_v20 = vrot.slane %v13303_v53, %v16223_v30  ;;  %15281 = vmatpush3.msra.mxu1 %v5874_v27 }
 0xc9e   : > { %v13218_v49 = vcombine.high %v13208_v39, %v13216_v36  ;;  %v13225_v50 = vrot.slane %v13217_v48, %v16231_v46 }
 0xc9f   : > { %v12693_v23 = vpop.f32.mrf.mxu0  ;;  %v13252_v57 = vcombine.high %v13242_v56, %v13250_v59 }
 0xca0   : > { %v13056_v47 = vmul.f32 %v15620_v25, %v12693_v23  ;;  %v13251_v25 = vcombine.low %v13242_v56, %v13250_v59  ;;  %v13232_v38 = vrot.slane %v13218_v49, %v16231_v46 }
 0xca1   : > { %v15257_v40 = vpop.f32.mrf.mxu0  ;;  %v13266_v12 = vrot.slane %v13252_v57, %v16231_v46 }
 0xca2   : > { %v13277_v60 = vcombine.low %v13052_v4, %v13056_v47  ;;  %v18565_v40 = vrot.slane %v13369_v1, %v16231_v46  ;;  %v13259_v41 = vrot.slane %v13251_v25, %v16231_v46  ;;  %v18581_v1 = vrot.slane %v13438_v21, %v16231_v46 }
 0xca3   : > { %v12845_v54 = vpop.f32.mrf.mxu0 }
 0xca4   : > { %v13284_v32 = vrot.slane %v13277_v60, %v16223_v30  ;;  %v13060_v62 = vmul.f32 %v15630_v13, %v12845_v54 }
 0xca5   : > { %v15267_v16 = vpop.f32.mrf.mxu0 }
 0xca6   : > { %v13285_v63 = vcombine.low %v13276_v34, %v13284_v32  ;;  %v13286_v31 = vcombine.high %v13276_v34, %v13284_v32 }
 0xca7   : > { %v12997_v15 = vpop.f32.mrf.mxu0 }
 0xca8   : > { %v13064_v2 = vmul.f32 %v15628_v52, %v12997_v15  ;;  %v13293_v24 = vrot.slane %v13285_v63, %v16231_v46  ;;  %v13300_v23 = vrot.slane %v13286_v31, %v16231_v46  ;;  %v5873_v63 = vld [vmem:[#allocation7 + $0x8] sm:$0xff] }
 0xca9   : > { %v15277_v3 = vpop.f32.mrf.mxu0  ;;  %15282 = vmatprep.subr.mxu1 %v5873_v63 }
 0xcaa   : > { %v13311_v5 = vcombine.low %v13060_v62, %v13064_v2  ;;  %v13353_v47 = vcombine.low %v13225_v50, %v13293_v24  ;;  %v14482_v6 = vcombine.high %v13225_v50, %v13293_v24  ;;  %v13489_v17 = vcombine.low %v13232_v38, %v13300_v23  ;;  %15283 = vmatpush3.msra.mxu1 %v5873_v63 }
 0xcab   : > { %v14486_v43 = vcombine.high %v13232_v38, %v13300_v23  ;;  %15284 = vmatprep.subr.mxu1 %v5872_v55 }
 0xcac   : > { %v13318_v9 = vrot.slane %v13311_v5, %v16223_v30  ;;  %v13360_v42 = vrot.slane %v13353_v47, %v16223_v30  ;;  %v13428_v16 = vrot.slane %v14482_v6, %v16223_v30  ;;  %v13496_v34 = vrot.slane %v13489_v17, %v16223_v30  ;;  %15285 = vmatpush3.msra.mxu1 %v5872_v55 }
 0xcad   : > { %v13564_v36 = vrot.slane %v14486_v43, %v16223_v30 }
 0xcae   : > { %v13319_v44 = vcombine.low %v13310_v20, %v13318_v9  ;;  %v13320_v4 = vcombine.high %v13310_v20, %v13318_v9 }
 0xcb0   : > { %v13327_v60 = vrot.slane %v13319_v44, %v16231_v46  ;;  %v13334_v28 = vrot.slane %v13320_v4, %v16231_v46 }
 0xcb2   : > { %v13361_v54 = vcombine.low %v13259_v41, %v13327_v60  ;;  %v14483_v32 = vcombine.high %v13259_v41, %v13327_v60  ;;  %v13497_v14 = vcombine.low %v13266_v12, %v13334_v28  ;;  %v14487_v37 = vcombine.high %v13266_v12, %v13334_v28 }
 0xcb4   : > { %v13368_v8 = vrot.slane %v13361_v54, %v16223_v30  ;;  %v13436_v18 = vrot.slane %v14483_v32, %v16223_v30  ;;  %v13504_v7 = vrot.slane %v13497_v14, %v16223_v30  ;;  %v13572_v21 = vrot.slane %v14487_v37, %v16223_v30 }
 0xcb6   : > { %v13453_v10 = vcombine.low %v13428_v16, %v13436_v18  ;;  %v13385_v52 = vcombine.low %v13360_v42, %v13368_v8  ;;  %v13386_v26 = vcombine.high %v13360_v42, %v13368_v8  ;;  %v13454_v51 = vcombine.high %v13428_v16, %v13436_v18 }
 0xcb7   : > { %v13521_v15 = vcombine.low %v13496_v34, %v13504_v7  ;;  %v13522_v30 = vcombine.high %v13496_v34, %v13504_v7  ;;  %v13589_v13 = vcombine.low %v13564_v36, %v13572_v21  ;;  %v13590_v39 = vcombine.high %v13564_v36, %v13572_v21 }
 0xcb8   : > { %v13461_v29 = vrot.slane %v13453_v10, %v16231_v46  ;;  %v13393_v2 = vrot.slane %v13385_v52, %v16231_v46  ;;  %v13400_v35 = vrot.slane %v13386_v26, %v16231_v46  ;;  %v13468_v33 = vrot.slane %v13454_v51, %v16231_v46  ;;  %v18858_v52 = vld [vmem:[#allocation22_spill] sm:$0xff] }
 0xcb9   : > { %v13529_v53 = vrot.slane %v13521_v15, %v16231_v46  ;;  %v13536_v59 = vrot.slane %v13522_v30, %v16231_v46  ;;  %v13597_v62 = vrot.slane %v13589_v13, %v16231_v46  ;;  %v13604_v3 = vrot.slane %v13590_v39, %v16231_v46 }
 0xcba   : > { %v13470_v48 = vcombine.high %v18559_v19, %v13461_v29  ;;  %v13402_v31 = vcombine.high %v18565_v40, %v13393_v2  ;;  %v13403_v56 = vcombine.low %v18575_v45, %v13400_v35  ;;  %v13404_v49 = vcombine.high %v18575_v45, %v13400_v35  ;;  %v18860_v35 = vld [vmem:[#allocation24_spill] sm:$0xff] }
 0xcbb   : > { %v13471_v5 = vcombine.low %v18581_v1, %v13468_v33  ;;  %v13538_v24 = vcombine.high %v18589_v58, %v13529_v53  ;;  %v13472_v20 = vcombine.high %v18581_v1, %v13468_v33  ;;  %v13539_v25 = vcombine.low %v13520_v11, %v13536_v59 }
 0xcbc   : > { %13615 = vrot.lane.b32.xlu1 %v13470_v48, %s15845_s22  ;;  %13613 = vrot.lane.b32.xlu0 %v13402_v31, %s15845_s22  ;;  %v13606_v46 = vcombine.high %v18605_v61, %v13597_v62  ;;  %v13540_v57 = vcombine.high %v13520_v11, %v13536_v59  ;;  %v13607_v9 = vcombine.low %v13588_v22, %v13604_v3 }
 0xcbd   : > { %v13608_v50 = vcombine.high %v13588_v22, %v13604_v3  ;;  %v13469_v23 = vcombine.low %v18559_v19, %v13461_v29  ;;  %v13401_v38 = vcombine.low %v18565_v40, %v13393_v2  ;;  %v13537_v44 = vcombine.low %v18589_v58, %v13529_v53  ;;  %v18857_v22 = vld [vmem:[#allocation21_spill] sm:$0xff]  ;;  %v18859_v29 = vld [vmem:[#allocation23_spill] sm:$0xff] }
 0xcbe   : > { %v13605_v4 = vcombine.low %v18605_v61, %v13597_v62 }
 0xcc0   : > { %13629 = vrot.lane.b32.xlu1 %v13403_v56, %s15844_s29  ;;  %13645 = vrot.lane.b32.xlu0 %v13404_v49, %s15846_s30 }
 0xcc4   : > { %13631 = vrot.lane.b32.xlu1 %v13471_v5, %s15844_s29  ;;  %13617 = vrot.lane.b32.xlu0 %v13538_v24, %s15845_s22 }
 0xcc8   : > { %13647 = vrot.lane.b32.xlu1 %v13472_v20, %s15846_s30  ;;  %13633 = vrot.lane.b32.xlu0 %v13539_v25, %s15844_s29 }
 0xccc   : > { %13619 = vrot.lane.b32.xlu1 %v13606_v46, %s15845_s22  ;;  %13649 = vrot.lane.b32.xlu0 %v13540_v57, %s15846_s30 }
 0xcd0   : > { %13635 = vrot.lane.b32.xlu1 %v13607_v9, %s15844_s29  ;;  %s14228_s29 = sshll.u32 %s598_s26, 5 }
 0xcd4   : > { %13651 = vrot.lane.b32.xlu1 %v13608_v50, %s15846_s30  ;;  %s600_s30 = scalar_lea.vmem [#allocation10], %s14228_s29  ;;  %s15761_s29 = scalar_lea.vmem %s15760_s21, 1024 }
 0xcd5   : > { %s14113_s24 = sshll.u32 %s600_s30, 4  ;;  %s18737_s24 = int_to_ptr.vmem [resolvable:$true] %s14113_s24 }
 0xcd6   : > { %s15755_s19 = scalar_lea.vmem %s18737_s24, 512  ;;  %p15762_p4 = scmp.lt.s32.totalorder %s18737_s24, %s15760_s21 }
 0xcd7   : > { %p15756_p9 = scmp.ne.s32.totalorder %s18737_s24, %s15755_s19  ;;  %p15763_p7 = scmp.lt.s32.totalorder %s15761_s29, %s15755_s19 }
 0xcd9   : > { %p15757_p12 = pnand %p15756_p9, %p15977_p5  ;;  %p15764_p8 = por %p15763_p7, %p15762_p4 }
 0xcdb   : > { %p15758_p13 = pneg %p15757_p12 }
 0xcdd   : > { %p15765_p11 = pnand %p15764_p8, %p15758_p13 }
 0xd2e   : > { %v13616_v47 = vpop.permute.xlu1 %13615  ;;  %v13614_v6 = vpop.permute.xlu0 %13613 }
 0xd2f   : > { %v13657_v19 = vsel %vm2592_vm2, %v13401_v38, %v13614_v6  ;;  %v13658_v43 = vsel %vm2592_vm2, %v13469_v23, %v13616_v47  ;;  %v13781_v6 = vld [vmem:[#allocation8 + $0x18] sm:$0xff] }
 0xd30   : > { %15292 = vmatprep.subr.mxu0 %v13781_v6 }
 0xd31   : > { %15293 = vmatpush3.msra.mxu0 %v13781_v6 }
 0xd32   : > { %v13630_v40 = vpop.permute.xlu1 %13629  ;;  %v13646_v41 = vpop.permute.xlu0 %13645 }
 0xd33   : > { %v13661_v12 = vsel %vm5749_vm3, %v13657_v19, %v13630_v40  ;;  %v13780_v19 = vld [vmem:[#allocation8 + $0x10] sm:$0xff]  ;;  %v13779_v40 = vld [vmem:[#allocation8 + $0x8] sm:$0xff] }
 0xd34   : > { %v13665_v60 = vsel %vm5754_vm4, %v13661_v12, %v13646_v41  ;;  %15294 = vmatprep.subr.mxu0 %v13780_v19  ;;  %v13778_v41 = vld [vmem:[#allocation8] sm:$0xff] }
 0xd35   : > { %15286 = vmatprep.mubr.msk.f32.mxu1 %vm621_vm0, %v13665_v60  ;;  %15295 = vmatpush3.msra.mxu0 %v13780_v19 }
 0xd36   : > { %v13632_v28 = vpop.permute.xlu1 %13631  ;;  %v13618_v17 = vpop.permute.xlu0 %13617  ;;  %15296 = vmatprep.subr.mxu0 %v13779_v40 }
 0xd37   : > { %v13662_v45 = vsel %vm5749_vm3, %v13658_v43, %v13632_v28  ;;  %v13659_v14 = vsel %vm2592_vm2, %v13537_v44, %v13618_v17  ;;  %15297 = vmatpush3.msra.mxu0 %v13779_v40 }
 0xd38   : > { %15298 = vmatprep.subr.mxu0 %v13778_v41 }
 0xd39   : > { %15299 = vmatpush3.msra.mxu0 %v13778_v41 }
 0xd3a   : > { %v13648_v1 = vpop.permute.xlu1 %13647  ;;  %v13634_v54 = vpop.permute.xlu0 %13633 }
 0xd3b   : > { %v13666_v32 = vsel %vm5754_vm4, %v13662_v45, %v13648_v1  ;;  %v13663_v37 = vsel %vm5749_vm3, %v13659_v14, %v13634_v54 }
 0xd3c   : > { %15287 = vmatmul.mubr.msk.f32.vlgmr.msra.gmra.mxu1 %vm621_vm0, %v13666_v32 }
 0xd3e   : > { %v13620_v42 = vpop.permute.xlu1 %13619  ;;  %v13650_v16 = vpop.permute.xlu0 %13649 }
 0xd3f   : > { %v13667_v58 = vsel %vm5754_vm4, %v13663_v37, %v13650_v16  ;;  %v13660_v8 = vsel %vm2592_vm2, %v13605_v4, %v13620_v42 }
 0xd40   : > { %15289 = vmatprep.mubr.msk.f32.mxu1 %vm621_vm0, %v13667_v58  ;;  %v14493_v58 = vld [vmem:[%s18799_s11] ss:$0 sm:$0xff] }
 0xd42   : > { %v13636_v11 = vpop.permute.xlu1 %13635 }
 0xd43   : > { %v13664_v18 = vsel %vm5749_vm3, %v13660_v8, %v13636_v11 }
 0xd46   : > { %v13652_v7 = vpop.permute.xlu1 %13651 }
 0xd47   : > { %v13668_v21 = vsel %vm5754_vm4, %v13664_v18, %v13652_v7 }
 0xd48   : > { %15290 = vmatmul.mubr.msk.f32.gmra.mxu1 %vm621_vm0, %v13668_v21  ;;  %v14494_v21 = vld [vmem:[%s18800_s12] ss:$0 sm:$0xff] }
 0xdfc   : > { %v15288_v34 = vpop.f32.mrf.mxu1 }
 0xdfd   : > { %v13759_v36 = vadd.f32 %v15288_v34, %v14488_v0 }
 0xdfe   : > { %v13753_v61 = vpop.f32.mrf.mxu1 }
 0xdff   : > { %v18663_v27 = vadd.f32 %v13759_v36, %v18857_v22  ;;  %v13754_v10 = vadd.f32 %v14488_v0, %v13753_v61 }
 0xe01   : > { %v18666_v26 = vadd.f32 %v13754_v10, %v18858_v52  ;;  %v13795_v51 = vsel %vm621_vm0, %v18663_v27, 0.0 }
 0xe02   : > { %13796 = vadd.xlane.f32.xlu1 %v13795_v51 }
 0xe03   : > { %v13792_v15 = vsel %vm621_vm0, %v18666_v26, 0.0 }
 0xe04   : > { %13793 = vadd.xlane.f32.xlu0 %v13792_v15 }
 0xe08   : > { %v15291_v30 = vpop.f32.mrf.mxu1 }
 0xe09   : > { %v13769_v39 = vadd.f32 %v15291_v30, %v14488_v0 }
 0xe0a   : > { %v13763_v13 = vpop.f32.mrf.mxu1 }
 0xe0b   : > { %v13764_v63 = vadd.f32 %v14488_v0, %v13763_v13  ;;  %v18676_v33 = vadd.f32 %v13769_v39, %v18860_v35  ;;  %v13790_v39 = vld [vmem:[%s18803_s15 + $0x38] sm:$0xff]  ;;  %v13787_v35 = vld [vmem:[%s18803_s15 + $0x20] sm:$0xff] }
 0xe0c   : > { %15306 = vmatprep.subr.mxu1 %v13790_v39 }
 0xe0d   : > { %v18673_v2 = vadd.f32 %v13764_v63, %v18859_v29  ;;  %v13801_v53 = vsel %vm621_vm0, %v18676_v33, 0.0  ;;  %v13789_v63 = vld [vmem:[%s18803_s15 + $0x30] sm:$0xff]  ;;  %15307 = vmatpush3.msra.mxu1 %v13790_v39  ;;  %v13788_v29 = vld [vmem:[%s18803_s15 + $0x28] sm:$0xff] }
 0xe0e   : > { %15308 = vmatprep.subr.mxu1 %v13789_v63 }
 0xe0f   : > { %v13798_v55 = vsel %vm621_vm0, %v18673_v2, 0.0  ;;  %15309 = vmatpush3.msra.mxu1 %v13789_v63 }
 0xe10   : > { %13799 = vadd.xlane.f32.xlu0 %v13798_v55  ;;  %15310 = vmatprep.subr.mxu1 %v13788_v29  ;;  %v13786_v55 = vld [vmem:[%s18803_s15 + $0x18] sm:$0xff] }
 0xe11   : > { %15311 = vmatpush3.msra.mxu1 %v13788_v29 }
 0xe12   : > { %15312 = vmatprep.subr.mxu1 %v13787_v35 }
 0xe13   : > { %15313 = vmatpush3.msra.mxu1 %v13787_v35 }
 0xe14   : > { %13802 = vadd.xlane.f32.xlu0 %v13801_v53  ;;  %v13785_v53 = vld [vmem:[%s18803_s15 + $0x10] sm:$0xff]  ;;  %15314 = vmatprep.subr.mxu1 %v13786_v55 }
 0xe15   : > { %15315 = vmatpush3.msra.mxu1 %v13786_v55 }
 0xe16   : > { %15316 = vmatprep.subr.mxu1 %v13785_v53 }
 0xe17   : > { %15317 = vmatpush3.msra.mxu1 %v13785_v53 }
 0xe8b   : > { %v13797_v59 = vpop.xlane.xlu1 %13796 }
 0xe8c   : > { %v13805_v62 = vmul.f32 0.03125, %v13797_v59  ;;  %v13784_v59 = vld [vmem:[%s18803_s15 + $0x8] sm:$0xff] }
 0xe8d   : > { %v13794_v3 = vpop.xlane.xlu0 %13793  ;;  %15318 = vmatprep.subr.mxu1 %v13784_v59 }
 0xe8e   : > { %v13809_v48 = vsub.f32 %v18663_v27, %v13805_v62  ;;  %v13804_v31 = vmul.f32 0.03125, %v13794_v3  ;;  %v13783_v62 = vld [vmem:[%s18803_s15] sm:$0xff]  ;;  %15319 = vmatpush3.msra.mxu1 %v13784_v59 }
 0xe8f   : > { %15320 = vmatprep.subr.mxu1 %v13783_v62  ;;  %v14495_v3 = vld [vmem:[%s18802_s14] ss:$0 sm:$0xff] }
 0xe90   : > { %v13808_v56 = vsub.f32 %v18666_v26, %v13804_v31  ;;  %v13813_v49 = vmul.f32 %v13809_v48, %v13809_v48  ;;  %15321 = vmatpush3.msra.mxu1 %v13783_v62 }
 0xe92   : > { %v13819_v5 = vsel %vm621_vm0, %v13813_v49, 0.0  ;;  %v13812_v24 = vmul.f32 %v13808_v56, %v13808_v56 }
 0xe93   : > { %13820 = vadd.xlane.f32.xlu1 %v13819_v5 }
 0xe94   : > { %v13816_v20 = vsel %vm621_vm0, %v13812_v24, 0.0 }
 0xe95   : > { %13817 = vadd.xlane.f32.xlu0 %v13816_v20 }
 0xe99   : > { %v13800_v25 = vpop.xlane.xlu0 %13799 }
 0xe9a   : > { %v13806_v46 = vmul.f32 0.03125, %v13800_v25 }
 0xe9c   : > { %v13810_v57 = vsub.f32 %v18673_v2, %v13806_v46 }
 0xe9d   : > { %v13803_v9 = vpop.xlane.xlu0 %13802 }
 0xe9e   : > { %v13807_v50 = vmul.f32 0.03125, %v13803_v9  ;;  %v13814_v23 = vmul.f32 %v13810_v57, %v13810_v57 }
 0xea0   : > { %v13811_v38 = vsub.f32 %v18676_v33, %v13807_v50  ;;  %v13822_v44 = vsel %vm621_vm0, %v13814_v23, 0.0 }
 0xea1   : > { %13823 = vadd.xlane.f32.xlu0 %v13822_v44 }
 0xea2   : > { %v13815_v4 = vmul.f32 %v13811_v38, %v13811_v38 }
 0xea4   : > { %v13825_v47 = vsel %vm621_vm0, %v13815_v4, 0.0 }
 0xea5   : > { %13826 = vadd.xlane.f32.xlu1 %v13825_v47 }
 0xf1c   : > { %v13821_v12 = vpop.xlane.xlu1 %13820 }
 0xf1d   : > { %v13829_v60 = vmul.f32 0.03125, %v13821_v12 }
 0xf1e   : > { %v13818_v28 = vpop.xlane.xlu0 %13817 }
 0xf1f   : > { %v13833_v17 = vadd.f32 1e-05, %v13829_v60  ;;  %v13828_v43 = vmul.f32 0.03125, %v13818_v28 }
 0xf21   : > { %15631 = vrsqrt.f32 %v13833_v17  ;;  %v13832_v45 = vadd.f32 1e-05, %v13828_v43 }
 0xf23   : > { %15633 = vrsqrt.f32 %v13832_v45 }
 0xf2a   : > { %v13824_v1 = vpop.xlane.xlu0 %13823 }
 0xf2b   : > { %v13830_v54 = vmul.f32 0.03125, %v13824_v1 }
 0xf2d   : > { %v13834_v32 = vadd.f32 1e-05, %v13830_v54  ;;  %v14500_v54 = vld [vmem:[%s18804_s16] ss:$0 sm:$0xff] }
 0xf2e   : > { %v15632_v14 = vpop.eup %15631  ;;  %v13827_v37 = vpop.xlane.xlu1 %13826 }
 0xf2f   : > { %v13841_v42 = vmul.f32 %v15632_v14, %v13809_v48  ;;  %15635 = vrsqrt.f32 %v13834_v32  ;;  %v13831_v16 = vmul.f32 0.03125, %v13827_v37 }
 0xf30   : > { %v15634_v11 = vpop.eup %15633 }
 0xf31   : > { %v13835_v8 = vadd.f32 1e-05, %v13831_v16  ;;  %v13840_v18 = vmul.f32 %v15634_v11, %v13808_v56  ;;  %v13851_v7 = vmul.f32 %v14493_v58, %v13841_v42 }
 0xf33   : > { %15637 = vrsqrt.f32 %v13835_v8  ;;  %v13850_v0 = vmul.f32 %v14493_v58, %v13840_v18  ;;  %v13861_v36 = vadd.f32 %v14494_v21, %v13851_v7 }
 0xf35   : > { %v13860_v34 = vadd.f32 %v14494_v21, %v13850_v0 }
 0xf37   : > { %15300 = vmatprep.mubr.msk.f32.mxu0 %vm621_vm0, %v13860_v34 }
 0xf38   : > { %15301 = vmatmul.mubr.msk.f32.vlgmr.msra.gmra.mxu0 %vm621_vm0, %v13861_v36 }
 0xf3c   : > { %v15636_v61 = vpop.eup %15635 }
 0xf3d   : > { %v13842_v22 = vmul.f32 %v15636_v61, %v13810_v57 }
 0xf3f   : > { %v13852_v10 = vmul.f32 %v14493_v58, %v13842_v22 }
 0xf40   : > { %v15638_v52 = vpop.eup %15637 }
 0xf41   : > { %v13862_v51 = vadd.f32 %v14494_v21, %v13852_v10  ;;  %v13843_v15 = vmul.f32 %v15638_v52, %v13811_v38 }
 0xf43   : > { %15303 = vmatprep.mubr.msk.f32.mxu0 %vm621_vm0, %v13862_v51  ;;  %v13853_v30 = vmul.f32 %v14493_v58, %v13843_v15 }
 0xf45   : > { %v13863_v13 = vadd.f32 %v14494_v21, %v13853_v30 }
 0xf47   : > { %15304 = vmatmul.mubr.msk.f32.gmra.mxu0 %vm621_vm0, %v13863_v13 }
 0xff8   : > { %v15302_v48 = vpop.f32.mrf.mxu0 }
 0xff9   : > { %v13954_v31 = vadd.f32 %v15302_v48, %v14495_v3 }
 0xffa   : > { %v13948_v56 = vpop.f32.mrf.mxu0 }
 0xffb   : > { %v13972_v49 = vmul.f32 0.70710677, %v13954_v31  ;;  %v13949_v5 = vadd.f32 %v14495_v3, %v13948_v56  ;;  %v13968_v6 = vmul.f32 0.5, %v13954_v31 }
 0xffd   : > { %15639 = verf.f32 %v13972_v49  ;;  %v13971_v24 = vmul.f32 0.70710677, %v13949_v5  ;;  %v13967_v4 = vmul.f32 0.5, %v13949_v5 }
 0xfff   : > { %15641 = verf.f32 %v13971_v24 }
0x1007   : > { %v15305_v20 = vpop.f32.mrf.mxu0 }
0x1008   : > { %v13964_v25 = vadd.f32 %v15305_v20, %v14495_v3 }
0x1009   : > { %v13958_v46 = vpop.f32.mrf.mxu0 }
0x100a   : > { %v15640_v57 = vpop.eup %15639  ;;  %v13974_v9 = vmul.f32 0.70710677, %v13964_v25  ;;  %v13959_v50 = vadd.f32 %v14495_v3, %v13958_v46  ;;  %v13970_v43 = vmul.f32 0.5, %v13964_v25 }
0x100b   : > { %v13980_v38 = vadd.f32 1.0, %v15640_v57 }
0x100c   : > { %v15642_v23 = vpop.eup %15641  ;;  %15643 = verf.f32 %v13974_v9  ;;  %v13973_v44 = vmul.f32 0.70710677, %v13959_v50  ;;  %v13969_v28 = vmul.f32 0.5, %v13959_v50 }
0x100d   : > { %v13979_v47 = vadd.f32 1.0, %v15642_v23  ;;  %v13984_v40 = vmul.f32 %v13980_v38, %v13968_v6 }
0x100e   : > { %15645 = verf.f32 %v13973_v44 }
0x100f   : > { %v13983_v19 = vmul.f32 %v13979_v47, %v13967_v4 }
0x1011   : > { %15322 = vmatprep.mubr.msk.f32.mxu1 %vm13993_vm8, %v13983_v19 }
0x1012   : > { %15323 = vmatmul.mubr.msk.f32.vlgmr.msra.gmra.mxu1 %vm13993_vm8, %v13984_v40 }
0x1019   : > { %v15644_v41 = vpop.eup %15643 }
0x101a   : > { %v13982_v60 = vadd.f32 1.0, %v15644_v41 }
0x101b   : > { %v15646_v12 = vpop.eup %15645 }
0x101c   : > { %v13981_v17 = vadd.f32 1.0, %v15646_v12  ;;  %v13986_v1 = vmul.f32 %v13982_v60, %v13970_v43 }
0x101e   : > { %v13985_v45 = vmul.f32 %v13981_v17, %v13969_v28 }
0x1020   : > { %15325 = vmatprep.mubr.msk.f32.mxu1 %vm13993_vm8, %v13985_v45 }
0x1021   : > { %15326 = vmatmul.mubr.msk.f32.gmra.mxu1 %vm13993_vm8, %v13986_v1 }
0x10d2   : > { %v15324_v32 = vpop.f32.mrf.mxu1 }
0x10d3   : > { %v14078_v14 = vadd.f32 %v15324_v32, %v14500_v54 }
0x10d4   : > { %v14072_v37 = vpop.f32.mrf.mxu1 }
0x10d5   : > { %v14092_v42 = vadd.f32 %v14078_v14, %v18663_v27  ;;  %v14073_v16 = vadd.f32 %v14500_v54, %v14072_v37 }
0x10d7   : > { %14096 = vst.msk [vmem:[%s600_s30 + $0x8] sm:$0xff] %vm621_vm0, %v14092_v42  ;;  %v14091_v58 = vadd.f32 %v14073_v16, %v18666_v26 }
0x10d9   : > { %14095 = vst.msk [vmem:[%s600_s30] sm:$0xff] %vm621_vm0, %v14091_v58 }
0x10e1   : > { %v15327_v11 = vpop.f32.mrf.mxu1 }
0x10e2   : > { %v14088_v8 = vadd.f32 %v15327_v11, %v14500_v54 }
0x10e3   : > { %v14082_v18 = vpop.f32.mrf.mxu1 }
0x10e4   : > { %v14094_v7 = vadd.f32 %v14088_v8, %v18676_v33  ;;  %v14083_v21 = vadd.f32 %v14500_v54, %v14082_v18 }
0x10e6   : > { %14098 = vst.msk [vmem:[%s600_s30 + $0x18] sm:$0xff] %vm621_vm0, %v14094_v7  ;;  %v14093_v27 = vadd.f32 %v14083_v21, %v18673_v2 }
0x10e8   : > { %14097 = vst.msk [vmem:[%s600_s30 + $0x10] sm:$0xff] %vm621_vm0, %v14093_v27 }
0x10e9   : > { %15768 = shalt.err (!%p15765_p11)
}
0x10ea   : > { %s15769_s26 = scalar_lea.hbm %s18744_s18, 512  ;;  %s15773_s20 = scalar_lea.hbm %s18805_s17, 1024 }
0x10eb   : > { %p15770_p0 = scmp.ne.s32.totalorder %s18744_s18, %s15769_s26  ;;  %p15774_p3 = scmp.lt.s32.totalorder %s18744_s18, %s18805_s17 }
0x10ec   : > { %p15775_p10 = scmp.lt.s32.totalorder %s15773_s20, %s15769_s26 }
0x10ed   : > { %p15771_p2 = pnand %p15770_p0, %p15977_p5 }
0x10ee   : > { %p15776_p9 = por %p15775_p10, %p15774_p3 }
0x10ef   : > { %p15772_p1 = pneg %p15771_p2 }
0x10f1   : > { %p15777_p12 = pnand %p15776_p9, %p15772_p1 }
0x10f3   : > { %15780 = shalt.err (!%p15777_p12)
}
0x10f4   : > { %s15848_s19 = smov 128  }
0x10f5   : > { %15344 = dma.vmem_to_hbm [thread:$0]  (%p15977_p5), %s18737_s24, 512, %s18744_s18, %s18747_s28, %s15848_s19, %s15848_s19, %s15845_s22  }
0x10f6 PF: > { %s18861_s21 = sld [smem:[#allocation17_spill]] }
0x10f7   : > { %s18862_s29 = sld [smem:[#allocation15_spill]] }
0x10fc   : > { %p15371_p13 = scmp.ge.s32.totalorder %s18861_s21, 2 }
0x10fd   : > { %s14128_s23 = sand.u32 1, %s18862_s29  }
0x10fe   : > { %p15360_p4 = pnand %p15371_p13, %p15981_p6  ;;  %s14129_s26 = scalar_lea.sflag [#allocation4], %s14128_s23 }
0x1100   : > { %p15361_p7 = pneg %p15360_p4 }
0x1102   : > { %15810 = dma.done.wait (%p15361_p7), %s14129_s26, 512  }
0x1103   : > { %15812 = vsyncadd (%p15361_p7), %s14129_s26, 4294966784  ;;  %s18864_s27 = sld [smem:[#allocation18_spill]]  ;;  %s18867_s24 = smov %s15819_s25 }
0x1104   : > { %s18865_s1 = sld [smem:[#allocation16_spill]] }
0x1105   : > { %s18866_s26 = sld [smem:[#allocation19_spill]] }
0x1109   : > { %p30_p8 = scmp.ge.s32.totalorder %s18864_s27, 4  }
0x110a   : > { %s18868_s25 = smov %s18865_s1 }
0x110b   :  { %32 = sbr.rel (!%p30_p8) target bundleno = 9 (0x9), region = 140 }
0x1110   :  { %14134 = vsyncpa [#allocation3], 1 }
0x1111   :  { %14136 = vsyncpa [#allocation3 + $0x1], 1 }
0x1112   :  { %14137 = vsyncpa [#allocation6], 1 }
0x1113   :  { %14138 = vsyncpa [#allocation9], 1 }
0x1114   :  { %14139 = vsyncpa [#allocation4], 1 }
0x1115   :  { %14141 = vsyncpa [#allocation4 + $0x1], 1 }

</bundles_post_ra>
